<compile_context>
chip_gen: v6e
topology: v6e:2x2x1
jax: 0.10.0
libtpu: 0.0.40
codegen_flags: <defaults>
</compile_context>

<pallas_src>
import jax
import jax.numpy as jnp
import numpy as np
from jax.experimental import pallas as pl
from jax.experimental.pallas import tpu as pltpu


# ------------------------------- fused kernel ------------------------------- #

def seq2seq_fused_kernel(src_ref, x0_ref,
                         enc_wih_ref, enc_whh_ref, enc_bih_ref, enc_bhh_ref,
                         att_wae_ref, att_was_ref, att_ba_ref, att_v_ref,
                         dec_wihx_ref, dec_wbig_ref, dec_bbig_ref,
                         head_w_ref, head_b_ref, out_wx_ref,
                         fc_w_ref, fc_b_ref, sel_ref,
                         out_ref):
    """Whole forward pass in a single kernel invocation (no grid, fully unrolled)."""
    f32 = jnp.float32
    SB, _ = src_ref.shape                 # S*B, Din
    B = x0_ref.shape[0]
    S = SB // B
    H = enc_whh_ref.shape[0]
    G = 3 * H
    Ha = att_wae_ref.shape[1]
    T, O = fc_w_ref.shape

    def gru_gates(gi, gh, h):
        r = jax.nn.sigmoid(gi[:, 0:H] + gh[:, 0:H])
        z = jax.nn.sigmoid(gi[:, H:2 * H] + gh[:, H:2 * H])
        n = jnp.tanh(gi[:, 2 * H:G] + r * gh[:, 2 * H:G])
        return (1.0 - z) * n + z * h

    # ---------------- encoder: single-layer GRU over src (s-major flat) ----------------
    # One batched matmul for all S input projections; only h @ Whh stays serial.
    gi_all = (jnp.dot(src_ref[...], enc_wih_ref[...], preferred_element_type=f32)
              + enc_bih_ref[...])                                    # (S*B, 3H)
    enc_whh = enc_whh_ref[...]
    enc_bhh = enc_bhh_ref[...]

    h = jnp.zeros((B, H), f32)
    hs = []
    for t in range(S):                                               # static unroll
        gi = gi_all[t * B:(t + 1) * B, :]                            # leading-axis slice
        gh = jnp.dot(h, enc_whh, preferred_element_type=f32) + enc_bhh
        h = gru_gates(gi, gh, h)
        hs.append(h)
    enc_flat = jnp.concatenate(hs, axis=0)                           # (S*B, H), row = s*B + b
    s = h                                                            # final hidden == s

    # ---------------- loop-invariant attention precompute ----------------
    proj_e = jnp.dot(enc_flat, att_wae_ref[...],
                     preferred_element_type=f32)                     # (S*B, Ha)
    enc_aug = jnp.concatenate([enc_flat, jnp.ones((SB, 1), f32)],
                              axis=1)                                # (S*B, H+1): [enc | 1]
    sel = sel_ref[...]                                               # (B, S*B) 0/1 selector
    dec_wihx = dec_wihx_ref[...]                                     # (1, 3H)
    dec_bbig = dec_bbig_ref[...]                                     # (1, 6H)
    head_b = head_b_ref[...]                                         # (1, 1+Ha)
    out_wx = out_wx_ref[...]                                         # (1, 1)
    fc_w = fc_w_ref[...]                                             # (T, O)

    # fc folded into the decode loop: out = fc_b + sum_t y_t * fc_W[t, :]
    # outputs[:, 0] is identically zero (like the PyTorch loop), so t starts at 1.
    acc = jnp.zeros((B, O), f32) + fc_b_ref[...]

    x = x0_ref[...]                                                  # dec_input = trg[0]  (B, 1)
    proj_s = (jnp.dot(s, att_was_ref[...], preferred_element_type=f32)
              + att_ba_ref[...])                                     # (B, Ha)

    for t in range(1, T):                                            # static unroll
        # --- additive attention, flat layout; softmax-over-S + ctx reduce on the MXU ---
        energy = jnp.tanh(proj_e + jnp.concatenate([proj_s] * S, axis=0))    # (S*B, Ha)
        w = jnp.exp(jnp.dot(energy, att_v_ref[...],
                            preferred_element_type=f32))                     # (S*B, 1)
        res = jnp.dot(sel, w * enc_aug, preferred_element_type=f32)          # (B, H+1)
        inv_den = pl.reciprocal(res[:, H:H + 1], approx=True)                # (B, 1)
        ctx = res[:, :H] * inv_den                                           # (B, H)

        # --- GRU gates in ONE dot: [ctx, s] @ block_diag(W_ihc, W_hh) ---
        gates = (jnp.dot(jnp.concatenate([ctx, s], axis=1), dec_wbig_ref[...],
                         preferred_element_type=f32) + dec_bbig)             # (B, 6H)
        gi = gates[:, :G] + x * dec_wihx
        gh = gates[:, G:]
        s = gru_gates(gi, gh, s)

        # --- fused output head + next-step attention query projection ---
        hy = (jnp.dot(jnp.concatenate([s, ctx], axis=1), head_w_ref[...],
                      preferred_element_type=f32) + head_b)                  # (B, 1+Ha)
        y = hy[:, 0:1] + x * out_wx                                          # (B, 1)
        proj_s = hy[:, 1:]                                                   # (B, Ha)

        acc = acc + y * fc_w[t:t + 1, :]                                     # fold fc
        x = y                                                                # feed back

    out_ref[...] = acc


# --------------------------------- wrapper ---------------------------------- #

_VMEM_SPEC = pl.BlockSpec(memory_space=pltpu.MemorySpace.VMEM)


@jax.jit
def seq2seq_forward(src, trg, P):
    """src: (B, S, Din) batch-first; trg: (B, T, 1) batch-first — like the module."""
    B, S, Din = src.shape
    T = trg.shape[1]
    H = P["enc_Whh"].shape[0]
    Ha = P["att_Wae"].shape[1]
    O = P["fc_W"].shape[1]
    G = 3 * H
    f32 = jnp.float32

    # s-major flat src operand (row = s*B + b) and the only trg slice the loop uses.
    src_flat = jnp.transpose(src, (1, 0, 2)).reshape(S * B, Din)
    x0 = trg[:, 0, :]

    # Fused lane-dense weights (tiny one-time XLA concats, off the kernel's serial path).
    zeros_h3h = jnp.zeros((H, G), f32)
    dec_wbig = jnp.concatenate(
        [jnp.concatenate([P["dec_Wihc"], zeros_h3h], axis=1),
         jnp.concatenate([zeros_h3h, P["dec_Whh"]], axis=1)], axis=0)        # (2H, 6H)
    dec_bbig = jnp.concatenate([P["dec_bih"], P["dec_bhh"]], axis=1)          # (1, 6H)
    head_w = jnp.concatenate(
        [jnp.concatenate([P["out_Wh"], P["att_Was"]], axis=1),
         jnp.concatenate([P["out_Wc"], jnp.zeros((H, Ha), f32)], axis=1)],
        axis=0)                                                               # (2H, 1+Ha)
    head_b = jnp.concatenate([P["out_b"], P["att_ba"]], axis=1)               # (1, 1+Ha)

    # Static batch-selector: sel[b, j] = 1 iff j % B == b  (row j of flat enc is s*B + b).
    sel = jnp.asarray((np.arange(S * B)[None, :] % B) == np.arange(B)[:, None],
                      dtype=f32)                                              # (B, S*B)

    args = (src_flat, x0,
            P["enc_Wih"], P["enc_Whh"], P["enc_bih"], P["enc_bhh"],
            P["att_Wae"], P["att_Was"], P["att_ba"], P["att_v"],
            P["dec_Wihx"], dec_wbig, dec_bbig,
            head_w, head_b, P["out_Wx"],
            P["fc_W"], P["fc_b"], sel)

    return pl.pallas_call(
        seq2seq_fused_kernel,
        out_shape=jax.ShapeDtypeStruct((B, O), f32),
        in_specs=[_VMEM_SPEC] * len(args),
        out_specs=_VMEM_SPEC,
    )(*args)


# --------------------------- pure-JAX reference ----------------------------- #

def ref_forward(src, trg, P):
    hp = jax.lax.Precision.HIGHEST
    src_tm = jnp.transpose(src, (1, 0, 2))
    trg_tm = jnp.transpose(trg, (1, 0, 2))
    S, B, _ = src_tm.shape
    T = trg_tm.shape[0]
    H = P["enc_Whh"].shape[0]

    def gru(gi, h, Whh, bhh):
        gh = jnp.dot(h, Whh, precision=hp) + bhh
        r = jax.nn.sigmoid(gi[:, :H] + gh[:, :H])
        z = jax.nn.sigmoid(gi[:, H:2 * H] + gh[:, H:2 * H])
        n = jnp.tanh(gi[:, 2 * H:] + r * gh[:, 2 * H:])
        return (1.0 - z) * n + z * h

    h = jnp.zeros((B, H), jnp.float32)
    enc_list = []
    for t in range(S):
        gi = jnp.dot(src_tm[t], P["enc_Wih"], precision=hp) + P["enc_bih"]
        h = gru(gi, h, P["enc_Whh"], P["enc_bhh"])
        enc_list.append(h)
    enc = jnp.stack(enc_list, axis=0)                          # (S, B, H)
    s, x = h, trg_tm[0]

    outs = [jnp.zeros((B, 1), jnp.float32)]                    # outputs[0] stays zero
    for t in range(1, T):
        proj_e = jnp.dot(enc.reshape(S * B, H), P["att_Wae"],
                         precision=hp).reshape(S, B, -1)
        proj_s = jnp.dot(s, P["att_Was"], precision=hp) + P["att_ba"]
        energy = jnp.tanh(proj_e + proj_s[None])
        scores = jnp.einsum("sba,ak->sbk", energy, P["att_v"],
                            precision=hp)[..., 0]              # (S, B)
        scores = scores - jnp.max(scores, axis=0, keepdims=True)
        w = jnp.exp(scores)
        attn = w / jnp.sum(w, axis=0, keepdims=True)
        ctx = jnp.sum(attn[:, :, None] * enc, axis=0)
        gi = (x * P["dec_Wihx"] + jnp.dot(ctx, P["dec_Wihc"], precision=hp)
              + P["dec_bih"])
        s = gru(gi, s, P["dec_Whh"], P["dec_bhh"])
        y = (jnp.dot(s, P["out_Wh"], precision=hp)
             + jnp.dot(ctx, P["out_Wc"], precision=hp)
             + x * P["out_Wx"] + P["out_b"])
        outs.append(y)
        x = y
    outs = jnp.stack(outs, axis=0)                             # (T, B, 1)
    ob = jnp.transpose(outs, (1, 0, 2))[:, :, 0]               # (B, T)
    return jnp.dot(ob, P["fc_W"], precision=hp) + P["fc_b"]


# ----------------------------------- main ----------------------------------- #

if __name__ == "__main__":
    # B=batch, S=src len, T=trg len (== decoder.output_dim), Din=src feature dim,
    # H=hidden, Ha=attention dim, O=output_dimm, decoder.emb_dim == 1.
    B, S, T, Din, H, Ha, O = 2, 10, 8, 4, 32, 32, 6

    key = jax.random.PRNGKey(0)
    ks = jax.random.split(key, 24)

    def nrm(k, shape, scale=0.1):
        return (scale * jax.random.normal(k, shape)).astype(jnp.float32)

    P = {
        "enc_Wih": nrm(ks[0], (Din, 3 * H)),
        "enc_Whh": nrm(ks[1], (H, 3 * H)),
        "enc_bih": nrm(ks[2], (1, 3 * H)),
        "enc_bhh": nrm(ks[3], (1, 3 * H)),
        "att_Wae": nrm(ks[4], (H, Ha)),
        "att_Was": nrm(ks[5], (H, Ha)),
        "att_ba":  nrm(ks[6], (1, Ha)),
        "att_v":   nrm(ks[7], (Ha, 1)),          # column vector -> MXU score reduce
        "dec_Wihx": nrm(ks[8], (1, 3 * H)),
        "dec_Wihc": nrm(ks[9], (H, 3 * H)),
        "dec_Whh": nrm(ks[10], (H, 3 * H)),
        "dec_bih": nrm(ks[11], (1, 3 * H)),
        "dec_bhh": nrm(ks[12], (1, 3 * H)),
        "out_Wh":  nrm(ks[13], (H, 1)),
        "out_Wc":  nrm(ks[14], (H, 1)),
        "out_Wx":  nrm(ks[15], (1, 1)),
        "out_b":   nrm(ks[16], (1, 1)),
        "fc_W":    nrm(ks[17], (T, O)),
        "fc_b":    nrm(ks[18], (1, O)),
    }
    src = nrm(ks[19], (B, S, Din), scale=1.0)
    trg = nrm(ks[20], (B, T, 1), scale=1.0)

    out = jax.block_until_ready(seq2seq_forward(src, trg, P))
    ref = ref_forward(src, trg, P)
    np.testing.assert_allclose(np.asarray(out), np.asarray(ref), rtol=5e-3, atol=5e-3)
    print("KERNEL_OK")
</pallas_src>

<mosaic_0001>
module attributes {stable_mosaic.version = 11 : i64} {
  func.func @seq2seq_fused_kernel(%arg0: memref<20x4xf32, #tpu.memory_space<vmem>>, %arg1: memref<2x1xf32, #tpu.memory_space<vmem>>, %arg2: memref<4x96xf32, #tpu.memory_space<vmem>>, %arg3: memref<32x96xf32, #tpu.memory_space<vmem>>, %arg4: memref<1x96xf32, #tpu.memory_space<vmem>>, %arg5: memref<1x96xf32, #tpu.memory_space<vmem>>, %arg6: memref<32x32xf32, #tpu.memory_space<vmem>>, %arg7: memref<32x32xf32, #tpu.memory_space<vmem>>, %arg8: memref<1x32xf32, #tpu.memory_space<vmem>>, %arg9: memref<32x1xf32, #tpu.memory_space<vmem>>, %arg10: memref<1x96xf32, #tpu.memory_space<vmem>>, %arg11: memref<64x192xf32, #tpu.memory_space<vmem>>, %arg12: memref<1x192xf32, #tpu.memory_space<vmem>>, %arg13: memref<64x33xf32, #tpu.memory_space<vmem>>, %arg14: memref<1x33xf32, #tpu.memory_space<vmem>>, %arg15: memref<1x1xf32, #tpu.memory_space<vmem>>, %arg16: memref<8x6xf32, #tpu.memory_space<vmem>>, %arg17: memref<1x6xf32, #tpu.memory_space<vmem>>, %arg18: memref<2x20xf32, #tpu.memory_space<vmem>>, %arg19: memref<2x6xf32, #tpu.memory_space<vmem>>) attributes {dimension_semantics = [], scalar_prefetch = 0 : i64, scratch_operands = 0 : i64, tpu.core_type = #tpu.core_type<tc>} {
    %c0 = arith.constant 0 : index
    %c0_0 = arith.constant 0 : index
    %0 = vector.load %arg0[%c0, %c0_0] : memref<20x4xf32, #tpu.memory_space<vmem>>, vector<20x4xf32>
    %c0_1 = arith.constant 0 : index
    %c0_2 = arith.constant 0 : index
    %1 = vector.load %arg2[%c0_1, %c0_2] : memref<4x96xf32, #tpu.memory_space<vmem>>, vector<4x96xf32>
    %cst = arith.constant dense<0.000000e+00> : vector<20x96xf32>
    %2 = tpu.matmul %0, %1, %cst {dimension_numbers = #tpu.dot_dimension_numbers<[1], [0], [0], [1], [0, 0, 1, 1], [], []>} : vector<20x4xf32>, vector<4x96xf32>, vector<20x96xf32> -> vector<20x96xf32>
    %c0_3 = arith.constant 0 : index
    %c0_4 = arith.constant 0 : index
    %3 = vector.load %arg4[%c0_3, %c0_4] : memref<1x96xf32, #tpu.memory_space<vmem>>, vector<1x96xf32>
    %4 = vector.broadcast %3 : vector<1x96xf32> to vector<20x96xf32>
    %5 = arith.addf %2, %4 : vector<20x96xf32>
    %c0_5 = arith.constant 0 : index
    %c0_6 = arith.constant 0 : index
    %6 = vector.load %arg3[%c0_5, %c0_6] : memref<32x96xf32, #tpu.memory_space<vmem>>, vector<32x96xf32>
    %c0_7 = arith.constant 0 : index
    %c0_8 = arith.constant 0 : index
    %7 = vector.load %arg5[%c0_7, %c0_8] : memref<1x96xf32, #tpu.memory_space<vmem>>, vector<1x96xf32>
    %cst_9 = arith.constant 0.000000e+00 : f32
    %8 = vector.broadcast %cst_9 : f32 to vector<2x32xf32>
    %9 = vector.extract_strided_slice %5 {offsets = [0, 0], sizes = [2, 96], strides = [1, 1]} : vector<20x96xf32> to vector<2x96xf32>
    %cst_10 = arith.constant dense<0.000000e+00> : vector<2x96xf32>
    %10 = tpu.matmul %8, %6, %cst_10 {dimension_numbers = #tpu.dot_dimension_numbers<[1], [0], [0], [1], [0, 0, 1, 1], [], []>} : vector<2x32xf32>, vector<32x96xf32>, vector<2x96xf32> -> vector<2x96xf32>
    %11 = vector.broadcast %7 : vector<1x96xf32> to vector<2x96xf32>
    %12 = arith.addf %10, %11 : vector<2x96xf32>
    %13 = vector.extract_strided_slice %9 {offsets = [0, 0], sizes = [2, 32], strides = [1, 1]} : vector<2x96xf32> to vector<2x32xf32>
    %14 = vector.extract_strided_slice %12 {offsets = [0, 0], sizes = [2, 32], strides = [1, 1]} : vector<2x96xf32> to vector<2x32xf32>
    %15 = arith.addf %13, %14 : vector<2x32xf32>
    %16 = arith.negf %15 : vector<2x32xf32>
    %17 = math.exp %16 : vector<2x32xf32>
    %cst_11 = arith.constant 1.000000e+00 : f32
    %18 = vector.broadcast %cst_11 : f32 to vector<2x32xf32>
    %19 = arith.addf %18, %17 : vector<2x32xf32>
    %20 = arith.divf %18, %19 : vector<2x32xf32>
    %21 = vector.extract_strided_slice %9 {offsets = [0, 32], sizes = [2, 32], strides = [1, 1]} : vector<2x96xf32> to vector<2x32xf32>
    %22 = vector.extract_strided_slice %12 {offsets = [0, 32], sizes = [2, 32], strides = [1, 1]} : vector<2x96xf32> to vector<2x32xf32>
    %23 = arith.addf %21, %22 : vector<2x32xf32>
    %24 = arith.negf %23 : vector<2x32xf32>
    %25 = math.exp %24 : vector<2x32xf32>
    %cst_12 = arith.constant 1.000000e+00 : f32
    %26 = vector.broadcast %cst_12 : f32 to vector<2x32xf32>
    %27 = arith.addf %26, %25 : vector<2x32xf32>
    %28 = arith.divf %26, %27 : vector<2x32xf32>
    %29 = vector.extract_strided_slice %9 {offsets = [0, 64], sizes = [2, 32], strides = [1, 1]} : vector<2x96xf32> to vector<2x32xf32>
    %30 = vector.extract_strided_slice %12 {offsets = [0, 64], sizes = [2, 32], strides = [1, 1]} : vector<2x96xf32> to vector<2x32xf32>
    %31 = arith.mulf %20, %30 : vector<2x32xf32>
    %32 = arith.addf %29, %31 : vector<2x32xf32>
    %33 = math.tanh %32 : vector<2x32xf32>
    %cst_13 = arith.constant 1.000000e+00 : f32
    %34 = vector.broadcast %cst_13 : f32 to vector<2x32xf32>
    %35 = arith.subf %34, %28 : vector<2x32xf32>
    %36 = arith.mulf %35, %33 : vector<2x32xf32>
    %37 = arith.mulf %28, %8 : vector<2x32xf32>
    %38 = arith.addf %36, %37 : vector<2x32xf32>
    %39 = vector.extract_strided_slice %5 {offsets = [2, 0], sizes = [2, 96], strides = [1, 1]} : vector<20x96xf32> to vector<2x96xf32>
    %cst_14 = arith.constant dense<0.000000e+00> : vector<2x96xf32>
    %40 = tpu.matmul %38, %6, %cst_14 {dimension_numbers = #tpu.dot_dimension_numbers<[1], [0], [0], [1], [0, 0, 1, 1], [], []>} : vector<2x32xf32>, vector<32x96xf32>, vector<2x96xf32> -> vector<2x96xf32>
    %41 = vector.broadcast %7 : vector<1x96xf32> to vector<2x96xf32>
    %42 = arith.addf %40, %41 : vector<2x96xf32>
    %43 = vector.extract_strided_slice %39 {offsets = [0, 0], sizes = [2, 32], strides = [1, 1]} : vector<2x96xf32> to vector<2x32xf32>
    %44 = vector.extract_strided_slice %42 {offsets = [0, 0], sizes = [2, 32], strides = [1, 1]} : vector<2x96xf32> to vector<2x32xf32>
    %45 = arith.addf %43, %44 : vector<2x32xf32>
    %46 = arith.negf %45 : vector<2x32xf32>
    %47 = math.exp %46 : vector<2x32xf32>
    %cst_15 = arith.constant 1.000000e+00 : f32
    %48 = vector.broadcast %cst_15 : f32 to vector<2x32xf32>
    %49 = arith.addf %48, %47 : vector<2x32xf32>
    %50 = arith.divf %48, %49 : vector<2x32xf32>
    %51 = vector.extract_strided_slice %39 {offsets = [0, 32], sizes = [2, 32], strides = [1, 1]} : vector<2x96xf32> to vector<2x32xf32>
    %52 = vector.extract_strided_slice %42 {offsets = [0, 32], sizes = [2, 32], strides = [1, 1]} : vector<2x96xf32> to vector<2x32xf32>
    %53 = arith.addf %51, %52 : vector<2x32xf32>
    %54 = arith.negf %53 : vector<2x32xf32>
    %55 = math.exp %54 : vector<2x32xf32>
    %cst_16 = arith.constant 1.000000e+00 : f32
    %56 = vector.broadcast %cst_16 : f32 to vector<2x32xf32>
    %57 = arith.addf %56, %55 : vector<2x32xf32>
    %58 = arith.divf %56, %57 : vector<2x32xf32>
    %59 = vector.extract_strided_slice %39 {offsets = [0, 64], sizes = [2, 32], strides = [1, 1]} : vector<2x96xf32> to vector<2x32xf32>
    %60 = vector.extract_strided_slice %42 {offsets = [0, 64], sizes = [2, 32], strides = [1, 1]} : vector<2x96xf32> to vector<2x32xf32>
    %61 = arith.mulf %50, %60 : vector<2x32xf32>
    %62 = arith.addf %59, %61 : vector<2x32xf32>
    %63 = math.tanh %62 : vector<2x32xf32>
    %cst_17 = arith.constant 1.000000e+00 : f32
    %64 = vector.broadcast %cst_17 : f32 to vector<2x32xf32>
    %65 = arith.subf %64, %58 : vector<2x32xf32>
    %66 = arith.mulf %65, %63 : vector<2x32xf32>
    %67 = arith.mulf %58, %38 : vector<2x32xf32>
    %68 = arith.addf %66, %67 : vector<2x32xf32>
    %69 = vector.extract_strided_slice %5 {offsets = [4, 0], sizes = [2, 96], strides = [1, 1]} : vector<20x96xf32> to vector<2x96xf32>
    %cst_18 = arith.constant dense<0.000000e+00> : vector<2x96xf32>
    %70 = tpu.matmul %68, %6, %cst_18 {dimension_numbers = #tpu.dot_dimension_numbers<[1], [0], [0], [1], [0, 0, 1, 1], [], []>} : vector<2x32xf32>, vector<32x96xf32>, vector<2x96xf32> -> vector<2x96xf32>
    %71 = vector.broadcast %7 : vector<1x96xf32> to vector<2x96xf32>
    %72 = arith.addf %70, %71 : vector<2x96xf32>
    %73 = vector.extract_strided_slice %69 {offsets = [0, 0], sizes = [2, 32], strides = [1, 1]} : vector<2x96xf32> to vector<2x32xf32>
    %74 = vector.extract_strided_slice %72 {offsets = [0, 0], sizes = [2, 32], strides = [1, 1]} : vector<2x96xf32> to vector<2x32xf32>
    %75 = arith.addf %73, %74 : vector<2x32xf32>
    %76 = arith.negf %75 : vector<2x32xf32>
    %77 = math.exp %76 : vector<2x32xf32>
    %cst_19 = arith.constant 1.000000e+00 : f32
    %78 = vector.broadcast %cst_19 : f32 to vector<2x32xf32>
    %79 = arith.addf %78, %77 : vector<2x32xf32>
    %80 = arith.divf %78, %79 : vector<2x32xf32>
    %81 = vector.extract_strided_slice %69 {offsets = [0, 32], sizes = [2, 32], strides = [1, 1]} : vector<2x96xf32> to vector<2x32xf32>
    %82 = vector.extract_strided_slice %72 {offsets = [0, 32], sizes = [2, 32], strides = [1, 1]} : vector<2x96xf32> to vector<2x32xf32>
    %83 = arith.addf %81, %82 : vector<2x32xf32>
    %84 = arith.negf %83 : vector<2x32xf32>
    %85 = math.exp %84 : vector<2x32xf32>
    %cst_20 = arith.constant 1.000000e+00 : f32
    %86 = vector.broadcast %cst_20 : f32 to vector<2x32xf32>
    %87 = arith.addf %86, %85 : vector<2x32xf32>
    %88 = arith.divf %86, %87 : vector<2x32xf32>
    %89 = vector.extract_strided_slice %69 {offsets = [0, 64], sizes = [2, 32], strides = [1, 1]} : vector<2x96xf32> to vector<2x32xf32>
    %90 = vector.extract_strided_slice %72 {offsets = [0, 64], sizes = [2, 32], strides = [1, 1]} : vector<2x96xf32> to vector<2x32xf32>
    %91 = arith.mulf %80, %90 : vector<2x32xf32>
    %92 = arith.addf %89, %91 : vector<2x32xf32>
    %93 = math.tanh %92 : vector<2x32xf32>
    %cst_21 = arith.constant 1.000000e+00 : f32
    %94 = vector.broadcast %cst_21 : f32 to vector<2x32xf32>
    %95 = arith.subf %94, %88 : vector<2x32xf32>
    %96 = arith.mulf %95, %93 : vector<2x32xf32>
    %97 = arith.mulf %88, %68 : vector<2x32xf32>
    %98 = arith.addf %96, %97 : vector<2x32xf32>
    %99 = vector.extract_strided_slice %5 {offsets = [6, 0], sizes = [2, 96], strides = [1, 1]} : vector<20x96xf32> to vector<2x96xf32>
    %cst_22 = arith.constant dense<0.000000e+00> : vector<2x96xf32>
    %100 = tpu.matmul %98, %6, %cst_22 {dimension_numbers = #tpu.dot_dimension_numbers<[1], [0], [0], [1], [0, 0, 1, 1], [], []>} : vector<2x32xf32>, vector<32x96xf32>, vector<2x96xf32> -> vector<2x96xf32>
    %101 = vector.broadcast %7 : vector<1x96xf32> to vector<2x96xf32>
    %102 = arith.addf %100, %101 : vector<2x96xf32>
    %103 = vector.extract_strided_slice %99 {offsets = [0, 0], sizes = [2, 32], strides = [1, 1]} : vector<2x96xf32> to vector<2x32xf32>
    %104 = vector.extract_strided_slice %102 {offsets = [0, 0], sizes = [2, 32], strides = [1, 1]} : vector<2x96xf32> to vector<2x32xf32>
    %105 = arith.addf %103, %104 : vector<2x32xf32>
    %106 = arith.negf %105 : vector<2x32xf32>
    %107 = math.exp %106 : vector<2x32xf32>
    %cst_23 = arith.constant 1.000000e+00 : f32
    %108 = vector.broadcast %cst_23 : f32 to vector<2x32xf32>
    %109 = arith.addf %108, %107 : vector<2x32xf32>
    %110 = arith.divf %108, %109 : vector<2x32xf32>
    %111 = vector.extract_strided_slice %99 {offsets = [0, 32], sizes = [2, 32], strides = [1, 1]} : vector<2x96xf32> to vector<2x32xf32>
    %112 = vector.extract_strided_slice %102 {offsets = [0, 32], sizes = [2, 32], strides = [1, 1]} : vector<2x96xf32> to vector<2x32xf32>
    %113 = arith.addf %111, %112 : vector<2x32xf32>
    %114 = arith.negf %113 : vector<2x32xf32>
    %115 = math.exp %114 : vector<2x32xf32>
    %cst_24 = arith.constant 1.000000e+00 : f32
    %116 = vector.broadcast %cst_24 : f32 to vector<2x32xf32>
    %117 = arith.addf %116, %115 : vector<2x32xf32>
    %118 = arith.divf %116, %117 : vector<2x32xf32>
    %119 = vector.extract_strided_slice %99 {offsets = [0, 64], sizes = [2, 32], strides = [1, 1]} : vector<2x96xf32> to vector<2x32xf32>
    %120 = vector.extract_strided_slice %102 {offsets = [0, 64], sizes = [2, 32], strides = [1, 1]} : vector<2x96xf32> to vector<2x32xf32>
    %121 = arith.mulf %110, %120 : vector<2x32xf32>
    %122 = arith.addf %119, %121 : vector<2x32xf32>
    %123 = math.tanh %122 : vector<2x32xf32>
    %cst_25 = arith.constant 1.000000e+00 : f32
    %124 = vector.broadcast %cst_25 : f32 to vector<2x32xf32>
    %125 = arith.subf %124, %118 : vector<2x32xf32>
    %126 = arith.mulf %125, %123 : vector<2x32xf32>
    %127 = arith.mulf %118, %98 : vector<2x32xf32>
    %128 = arith.addf %126, %127 : vector<2x32xf32>
    %129 = vector.extract_strided_slice %5 {offsets = [8, 0], sizes = [2, 96], strides = [1, 1]} : vector<20x96xf32> to vector<2x96xf32>
    %cst_26 = arith.constant dense<0.000000e+00> : vector<2x96xf32>
    %130 = tpu.matmul %128, %6, %cst_26 {dimension_numbers = #tpu.dot_dimension_numbers<[1], [0], [0], [1], [0, 0, 1, 1], [], []>} : vector<2x32xf32>, vector<32x96xf32>, vector<2x96xf32> -> vector<2x96xf32>
    %131 = vector.broadcast %7 : vector<1x96xf32> to vector<2x96xf32>
    %132 = arith.addf %130, %131 : vector<2x96xf32>
    %133 = vector.extract_strided_slice %129 {offsets = [0, 0], sizes = [2, 32], strides = [1, 1]} : vector<2x96xf32> to vector<2x32xf32>
    %134 = vector.extract_strided_slice %132 {offsets = [0, 0], sizes = [2, 32], strides = [1, 1]} : vector<2x96xf32> to vector<2x32xf32>
    %135 = arith.addf %133, %134 : vector<2x32xf32>
    %136 = arith.negf %135 : vector<2x32xf32>
    %137 = math.exp %136 : vector<2x32xf32>
    %cst_27 = arith.constant 1.000000e+00 : f32
    %138 = vector.broadcast %cst_27 : f32 to vector<2x32xf32>
    %139 = arith.addf %138, %137 : vector<2x32xf32>
    %140 = arith.divf %138, %139 : vector<2x32xf32>
    %141 = vector.extract_strided_slice %129 {offsets = [0, 32], sizes = [2, 32], strides = [1, 1]} : vector<2x96xf32> to vector<2x32xf32>
    %142 = vector.extract_strided_slice %132 {offsets = [0, 32], sizes = [2, 32], strides = [1, 1]} : vector<2x96xf32> to vector<2x32xf32>
    %143 = arith.addf %141, %142 : vector<2x32xf32>
    %144 = arith.negf %143 : vector<2x32xf32>
    %145 = math.exp %144 : vector<2x32xf32>
    %cst_28 = arith.constant 1.000000e+00 : f32
    %146 = vector.broadcast %cst_28 : f32 to vector<2x32xf32>
    %147 = arith.addf %146, %145 : vector<2x32xf32>
    %148 = arith.divf %146, %147 : vector<2x32xf32>
    %149 = vector.extract_strided_slice %129 {offsets = [0, 64], sizes = [2, 32], strides = [1, 1]} : vector<2x96xf32> to vector<2x32xf32>
    %150 = vector.extract_strided_slice %132 {offsets = [0, 64], sizes = [2, 32], strides = [1, 1]} : vector<2x96xf32> to vector<2x32xf32>
    %151 = arith.mulf %140, %150 : vector<2x32xf32>
    %152 = arith.addf %149, %151 : vector<2x32xf32>
    %153 = math.tanh %152 : vector<2x32xf32>
    %cst_29 = arith.constant 1.000000e+00 : f32
    %154 = vector.broadcast %cst_29 : f32 to vector<2x32xf32>
    %155 = arith.subf %154, %148 : vector<2x32xf32>
    %156 = arith.mulf %155, %153 : vector<2x32xf32>
    %157 = arith.mulf %148, %128 : vector<2x32xf32>
    %158 = arith.addf %156, %157 : vector<2x32xf32>
    %159 = vector.extract_strided_slice %5 {offsets = [10, 0], sizes = [2, 96], strides = [1, 1]} : vector<20x96xf32> to vector<2x96xf32>
    %cst_30 = arith.constant dense<0.000000e+00> : vector<2x96xf32>
    %160 = tpu.matmul %158, %6, %cst_30 {dimension_numbers = #tpu.dot_dimension_numbers<[1], [0], [0], [1], [0, 0, 1, 1], [], []>} : vector<2x32xf32>, vector<32x96xf32>, vector<2x96xf32> -> vector<2x96xf32>
    %161 = vector.broadcast %7 : vector<1x96xf32> to vector<2x96xf32>
    %162 = arith.addf %160, %161 : vector<2x96xf32>
    %163 = vector.extract_strided_slice %159 {offsets = [0, 0], sizes = [2, 32], strides = [1, 1]} : vector<2x96xf32> to vector<2x32xf32>
    %164 = vector.extract_strided_slice %162 {offsets = [0, 0], sizes = [2, 32], strides = [1, 1]} : vector<2x96xf32> to vector<2x32xf32>
    %165 = arith.addf %163, %164 : vector<2x32xf32>
    %166 = arith.negf %165 : vector<2x32xf32>
    %167 = math.exp %166 : vector<2x32xf32>
    %cst_31 = arith.constant 1.000000e+00 : f32
    %168 = vector.broadcast %cst_31 : f32 to vector<2x32xf32>
    %169 = arith.addf %168, %167 : vector<2x32xf32>
    %170 = arith.divf %168, %169 : vector<2x32xf32>
    %171 = vector.extract_strided_slice %159 {offsets = [0, 32], sizes = [2, 32], strides = [1, 1]} : vector<2x96xf32> to vector<2x32xf32>
    %172 = vector.extract_strided_slice %162 {offsets = [0, 32], sizes = [2, 32], strides = [1, 1]} : vector<2x96xf32> to vector<2x32xf32>
    %173 = arith.addf %171, %172 : vector<2x32xf32>
    %174 = arith.negf %173 : vector<2x32xf32>
    %175 = math.exp %174 : vector<2x32xf32>
    %cst_32 = arith.constant 1.000000e+00 : f32
    %176 = vector.broadcast %cst_32 : f32 to vector<2x32xf32>
    %177 = arith.addf %176, %175 : vector<2x32xf32>
    %178 = arith.divf %176, %177 : vector<2x32xf32>
    %179 = vector.extract_strided_slice %159 {offsets = [0, 64], sizes = [2, 32], strides = [1, 1]} : vector<2x96xf32> to vector<2x32xf32>
    %180 = vector.extract_strided_slice %162 {offsets = [0, 64], sizes = [2, 32], strides = [1, 1]} : vector<2x96xf32> to vector<2x32xf32>
    %181 = arith.mulf %170, %180 : vector<2x32xf32>
    %182 = arith.addf %179, %181 : vector<2x32xf32>
    %183 = math.tanh %182 : vector<2x32xf32>
    %cst_33 = arith.constant 1.000000e+00 : f32
    %184 = vector.broadcast %cst_33 : f32 to vector<2x32xf32>
    %185 = arith.subf %184, %178 : vector<2x32xf32>
    %186 = arith.mulf %185, %183 : vector<2x32xf32>
    %187 = arith.mulf %178, %158 : vector<2x32xf32>
    %188 = arith.addf %186, %187 : vector<2x32xf32>
    %189 = vector.extract_strided_slice %5 {offsets = [12, 0], sizes = [2, 96], strides = [1, 1]} : vector<20x96xf32> to vector<2x96xf32>
    %cst_34 = arith.constant dense<0.000000e+00> : vector<2x96xf32>
    %190 = tpu.matmul %188, %6, %cst_34 {dimension_numbers = #tpu.dot_dimension_numbers<[1], [0], [0], [1], [0, 0, 1, 1], [], []>} : vector<2x32xf32>, vector<32x96xf32>, vector<2x96xf32> -> vector<2x96xf32>
    %191 = vector.broadcast %7 : vector<1x96xf32> to vector<2x96xf32>
    %192 = arith.addf %190, %191 : vector<2x96xf32>
    %193 = vector.extract_strided_slice %189 {offsets = [0, 0], sizes = [2, 32], strides = [1, 1]} : vector<2x96xf32> to vector<2x32xf32>
    %194 = vector.extract_strided_slice %192 {offsets = [0, 0], sizes = [2, 32], strides = [1, 1]} : vector<2x96xf32> to vector<2x32xf32>
    %195 = arith.addf %193, %194 : vector<2x32xf32>
    %196 = arith.negf %195 : vector<2x32xf32>
    %197 = math.exp %196 : vector<2x32xf32>
    %cst_35 = arith.constant 1.000000e+00 : f32
    %198 = vector.broadcast %cst_35 : f32 to vector<2x32xf32>
    %199 = arith.addf %198, %197 : vector<2x32xf32>
    %200 = arith.divf %198, %199 : vector<2x32xf32>
    %201 = vector.extract_strided_slice %189 {offsets = [0, 32], sizes = [2, 32], strides = [1, 1]} : vector<2x96xf32> to vector<2x32xf32>
    %202 = vector.extract_strided_slice %192 {offsets = [0, 32], sizes = [2, 32], strides = [1, 1]} : vector<2x96xf32> to vector<2x32xf32>
    %203 = arith.addf %201, %202 : vector<2x32xf32>
    %204 = arith.negf %203 : vector<2x32xf32>
    %205 = math.exp %204 : vector<2x32xf32>
    %cst_36 = arith.constant 1.000000e+00 : f32
    %206 = vector.broadcast %cst_36 : f32 to vector<2x32xf32>
    %207 = arith.addf %206, %205 : vector<2x32xf32>
    %208 = arith.divf %206, %207 : vector<2x32xf32>
    %209 = vector.extract_strided_slice %189 {offsets = [0, 64], sizes = [2, 32], strides = [1, 1]} : vector<2x96xf32> to vector<2x32xf32>
    %210 = vector.extract_strided_slice %192 {offsets = [0, 64], sizes = [2, 32], strides = [1, 1]} : vector<2x96xf32> to vector<2x32xf32>
    %211 = arith.mulf %200, %210 : vector<2x32xf32>
    %212 = arith.addf %209, %211 : vector<2x32xf32>
    %213 = math.tanh %212 : vector<2x32xf32>
    %cst_37 = arith.constant 1.000000e+00 : f32
    %214 = vector.broadcast %cst_37 : f32 to vector<2x32xf32>
    %215 = arith.subf %214, %208 : vector<2x32xf32>
    %216 = arith.mulf %215, %213 : vector<2x32xf32>
    %217 = arith.mulf %208, %188 : vector<2x32xf32>
    %218 = arith.addf %216, %217 : vector<2x32xf32>
    %219 = vector.extract_strided_slice %5 {offsets = [14, 0], sizes = [2, 96], strides = [1, 1]} : vector<20x96xf32> to vector<2x96xf32>
    %cst_38 = arith.constant dense<0.000000e+00> : vector<2x96xf32>
    %220 = tpu.matmul %218, %6, %cst_38 {dimension_numbers = #tpu.dot_dimension_numbers<[1], [0], [0], [1], [0, 0, 1, 1], [], []>} : vector<2x32xf32>, vector<32x96xf32>, vector<2x96xf32> -> vector<2x96xf32>
    %221 = vector.broadcast %7 : vector<1x96xf32> to vector<2x96xf32>
    %222 = arith.addf %220, %221 : vector<2x96xf32>
    %223 = vector.extract_strided_slice %219 {offsets = [0, 0], sizes = [2, 32], strides = [1, 1]} : vector<2x96xf32> to vector<2x32xf32>
    %224 = vector.extract_strided_slice %222 {offsets = [0, 0], sizes = [2, 32], strides = [1, 1]} : vector<2x96xf32> to vector<2x32xf32>
    %225 = arith.addf %223, %224 : vector<2x32xf32>
    %226 = arith.negf %225 : vector<2x32xf32>
    %227 = math.exp %226 : vector<2x32xf32>
    %cst_39 = arith.constant 1.000000e+00 : f32
    %228 = vector.broadcast %cst_39 : f32 to vector<2x32xf32>
    %229 = arith.addf %228, %227 : vector<2x32xf32>
    %230 = arith.divf %228, %229 : vector<2x32xf32>
    %231 = vector.extract_strided_slice %219 {offsets = [0, 32], sizes = [2, 32], strides = [1, 1]} : vector<2x96xf32> to vector<2x32xf32>
    %232 = vector.extract_strided_slice %222 {offsets = [0, 32], sizes = [2, 32], strides = [1, 1]} : vector<2x96xf32> to vector<2x32xf32>
    %233 = arith.addf %231, %232 : vector<2x32xf32>
    %234 = arith.negf %233 : vector<2x32xf32>
    %235 = math.exp %234 : vector<2x32xf32>
    %cst_40 = arith.constant 1.000000e+00 : f32
    %236 = vector.broadcast %cst_40 : f32 to vector<2x32xf32>
    %237 = arith.addf %236, %235 : vector<2x32xf32>
    %238 = arith.divf %236, %237 : vector<2x32xf32>
    %239 = vector.extract_strided_slice %219 {offsets = [0, 64], sizes = [2, 32], strides = [1, 1]} : vector<2x96xf32> to vector<2x32xf32>
    %240 = vector.extract_strided_slice %222 {offsets = [0, 64], sizes = [2, 32], strides = [1, 1]} : vector<2x96xf32> to vector<2x32xf32>
    %241 = arith.mulf %230, %240 : vector<2x32xf32>
    %242 = arith.addf %239, %241 : vector<2x32xf32>
    %243 = math.tanh %242 : vector<2x32xf32>
    %cst_41 = arith.constant 1.000000e+00 : f32
    %244 = vector.broadcast %cst_41 : f32 to vector<2x32xf32>
    %245 = arith.subf %244, %238 : vector<2x32xf32>
    %246 = arith.mulf %245, %243 : vector<2x32xf32>
    %247 = arith.mulf %238, %218 : vector<2x32xf32>
    %248 = arith.addf %246, %247 : vector<2x32xf32>
    %249 = vector.extract_strided_slice %5 {offsets = [16, 0], sizes = [2, 96], strides = [1, 1]} : vector<20x96xf32> to vector<2x96xf32>
    %cst_42 = arith.constant dense<0.000000e+00> : vector<2x96xf32>
    %250 = tpu.matmul %248, %6, %cst_42 {dimension_numbers = #tpu.dot_dimension_numbers<[1], [0], [0], [1], [0, 0, 1, 1], [], []>} : vector<2x32xf32>, vector<32x96xf32>, vector<2x96xf32> -> vector<2x96xf32>
    %251 = vector.broadcast %7 : vector<1x96xf32> to vector<2x96xf32>
    %252 = arith.addf %250, %251 : vector<2x96xf32>
    %253 = vector.extract_strided_slice %249 {offsets = [0, 0], sizes = [2, 32], strides = [1, 1]} : vector<2x96xf32> to vector<2x32xf32>
    %254 = vector.extract_strided_slice %252 {offsets = [0, 0], sizes = [2, 32], strides = [1, 1]} : vector<2x96xf32> to vector<2x32xf32>
    %255 = arith.addf %253, %254 : vector<2x32xf32>
    %256 = arith.negf %255 : vector<2x32xf32>
    %257 = math.exp %256 : vector<2x32xf32>
    %cst_43 = arith.constant 1.000000e+00 : f32
    %258 = vector.broadcast %cst_43 : f32 to vector<2x32xf32>
    %259 = arith.addf %258, %257 : vector<2x32xf32>
    %260 = arith.divf %258, %259 : vector<2x32xf32>
    %261 = vector.extract_strided_slice %249 {offsets = [0, 32], sizes = [2, 32], strides = [1, 1]} : vector<2x96xf32> to vector<2x32xf32>
    %262 = vector.extract_strided_slice %252 {offsets = [0, 32], sizes = [2, 32], strides = [1, 1]} : vector<2x96xf32> to vector<2x32xf32>
    %263 = arith.addf %261, %262 : vector<2x32xf32>
    %264 = arith.negf %263 : vector<2x32xf32>
    %265 = math.exp %264 : vector<2x32xf32>
    %cst_44 = arith.constant 1.000000e+00 : f32
    %266 = vector.broadcast %cst_44 : f32 to vector<2x32xf32>
    %267 = arith.addf %266, %265 : vector<2x32xf32>
    %268 = arith.divf %266, %267 : vector<2x32xf32>
    %269 = vector.extract_strided_slice %249 {offsets = [0, 64], sizes = [2, 32], strides = [1, 1]} : vector<2x96xf32> to vector<2x32xf32>
    %270 = vector.extract_strided_slice %252 {offsets = [0, 64], sizes = [2, 32], strides = [1, 1]} : vector<2x96xf32> to vector<2x32xf32>
    %271 = arith.mulf %260, %270 : vector<2x32xf32>
    %272 = arith.addf %269, %271 : vector<2x32xf32>
    %273 = math.tanh %272 : vector<2x32xf32>
    %cst_45 = arith.constant 1.000000e+00 : f32
    %274 = vector.broadcast %cst_45 : f32 to vector<2x32xf32>
    %275 = arith.subf %274, %268 : vector<2x32xf32>
    %276 = arith.mulf %275, %273 : vector<2x32xf32>
    %277 = arith.mulf %268, %248 : vector<2x32xf32>
    %278 = arith.addf %276, %277 : vector<2x32xf32>
    %279 = vector.extract_strided_slice %5 {offsets = [18, 0], sizes = [2, 96], strides = [1, 1]} : vector<20x96xf32> to vector<2x96xf32>
    %cst_46 = arith.constant dense<0.000000e+00> : vector<2x96xf32>
    %280 = tpu.matmul %278, %6, %cst_46 {dimension_numbers = #tpu.dot_dimension_numbers<[1], [0], [0], [1], [0, 0, 1, 1], [], []>} : vector<2x32xf32>, vector<32x96xf32>, vector<2x96xf32> -> vector<2x96xf32>
    %281 = vector.broadcast %7 : vector<1x96xf32> to vector<2x96xf32>
    %282 = arith.addf %280, %281 : vector<2x96xf32>
    %283 = vector.extract_strided_slice %279 {offsets = [0, 0], sizes = [2, 32], strides = [1, 1]} : vector<2x96xf32> to vector<2x32xf32>
    %284 = vector.extract_strided_slice %282 {offsets = [0, 0], sizes = [2, 32], strides = [1, 1]} : vector<2x96xf32> to vector<2x32xf32>
    %285 = arith.addf %283, %284 : vector<2x32xf32>
    %286 = arith.negf %285 : vector<2x32xf32>
    %287 = math.exp %286 : vector<2x32xf32>
    %cst_47 = arith.constant 1.000000e+00 : f32
    %288 = vector.broadcast %cst_47 : f32 to vector<2x32xf32>
    %289 = arith.addf %288, %287 : vector<2x32xf32>
    %290 = arith.divf %288, %289 : vector<2x32xf32>
    %291 = vector.extract_strided_slice %279 {offsets = [0, 32], sizes = [2, 32], strides = [1, 1]} : vector<2x96xf32> to vector<2x32xf32>
    %292 = vector.extract_strided_slice %282 {offsets = [0, 32], sizes = [2, 32], strides = [1, 1]} : vector<2x96xf32> to vector<2x32xf32>
    %293 = arith.addf %291, %292 : vector<2x32xf32>
    %294 = arith.negf %293 : vector<2x32xf32>
    %295 = math.exp %294 : vector<2x32xf32>
    %cst_48 = arith.constant 1.000000e+00 : f32
    %296 = vector.broadcast %cst_48 : f32 to vector<2x32xf32>
    %297 = arith.addf %296, %295 : vector<2x32xf32>
    %298 = arith.divf %296, %297 : vector<2x32xf32>
    %299 = vector.extract_strided_slice %279 {offsets = [0, 64], sizes = [2, 32], strides = [1, 1]} : vector<2x96xf32> to vector<2x32xf32>
    %300 = vector.extract_strided_slice %282 {offsets = [0, 64], sizes = [2, 32], strides = [1, 1]} : vector<2x96xf32> to vector<2x32xf32>
    %301 = arith.mulf %290, %300 : vector<2x32xf32>
    %302 = arith.addf %299, %301 : vector<2x32xf32>
    %303 = math.tanh %302 : vector<2x32xf32>
    %cst_49 = arith.constant 1.000000e+00 : f32
    %304 = vector.broadcast %cst_49 : f32 to vector<2x32xf32>
    %305 = arith.subf %304, %298 : vector<2x32xf32>
    %306 = arith.mulf %305, %303 : vector<2x32xf32>
    %307 = arith.mulf %298, %278 : vector<2x32xf32>
    %308 = arith.addf %306, %307 : vector<2x32xf32>
    %309 = tpu.concatenate %38, %68, %98, %128, %158, %188, %218, %248, %278, %308 in 0 : vector<2x32xf32>, vector<2x32xf32>, vector<2x32xf32>, vector<2x32xf32>, vector<2x32xf32>, vector<2x32xf32>, vector<2x32xf32>, vector<2x32xf32>, vector<2x32xf32>, vector<2x32xf32> -> vector<20x32xf32>
    %c0_50 = arith.constant 0 : index
    %c0_51 = arith.constant 0 : index
    %310 = vector.load %arg6[%c0_50, %c0_51] : memref<32x32xf32, #tpu.memory_space<vmem>>, vector<32x32xf32>
    %cst_52 = arith.constant dense<0.000000e+00> : vector<20x32xf32>
    %311 = tpu.matmul %309, %310, %cst_52 {dimension_numbers = #tpu.dot_dimension_numbers<[1], [0], [0], [1], [0, 0, 1, 1], [], []>} : vector<20x32xf32>, vector<32x32xf32>, vector<20x32xf32> -> vector<20x32xf32>
    %cst_53 = arith.constant 1.000000e+00 : f32
    %312 = vector.broadcast %cst_53 : f32 to vector<20x1xf32>
    %313 = tpu.concatenate %309, %312 in 1 : vector<20x32xf32>, vector<20x1xf32> -> vector<20x33xf32>
    %c0_54 = arith.constant 0 : index
    %c0_55 = arith.constant 0 : index
    %314 = vector.load %arg18[%c0_54, %c0_55] : memref<2x20xf32, #tpu.memory_space<vmem>>, vector<2x20xf32>
    %c0_56 = arith.constant 0 : index
    %c0_57 = arith.constant 0 : index
    %315 = vector.load %arg10[%c0_56, %c0_57] : memref<1x96xf32, #tpu.memory_space<vmem>>, vector<1x96xf32>
    %c0_58 = arith.constant 0 : index
    %c0_59 = arith.constant 0 : index
    %316 = vector.load %arg12[%c0_58, %c0_59] : memref<1x192xf32, #tpu.memory_space<vmem>>, vector<1x192xf32>
    %c0_60 = arith.constant 0 : index
    %c0_61 = arith.constant 0 : index
    %317 = vector.load %arg14[%c0_60, %c0_61] : memref<1x33xf32, #tpu.memory_space<vmem>>, vector<1x33xf32>
    %c0_62 = arith.constant 0 : index
    %c0_63 = arith.constant 0 : index
    %318 = vector.load %arg15[%c0_62, %c0_63] : memref<1x1xf32, #tpu.memory_space<vmem>>, vector<1x1xf32>
    %c0_64 = arith.constant 0 : index
    %c0_65 = arith.constant 0 : index
    %319 = vector.load %arg16[%c0_64, %c0_65] : memref<8x6xf32, #tpu.memory_space<vmem>>, vector<8x6xf32>
    %cst_66 = arith.constant 0.000000e+00 : f32
    %320 = vector.broadcast %cst_66 : f32 to vector<2x6xf32>
    %c0_67 = arith.constant 0 : index
    %c0_68 = arith.constant 0 : index
    %321 = vector.load %arg17[%c0_67, %c0_68] : memref<1x6xf32, #tpu.memory_space<vmem>>, vector<1x6xf32>
    %322 = vector.broadcast %321 : vector<1x6xf32> to vector<2x6xf32>
    %323 = arith.addf %320, %322 : vector<2x6xf32>
    %c0_69 = arith.constant 0 : index
    %c0_70 = arith.constant 0 : index
    %324 = vector.load %arg1[%c0_69, %c0_70] : memref<2x1xf32, #tpu.memory_space<vmem>>, vector<2x1xf32>
    %c0_71 = arith.constant 0 : index
    %c0_72 = arith.constant 0 : index
    %325 = vector.load %arg7[%c0_71, %c0_72] : memref<32x32xf32, #tpu.memory_space<vmem>>, vector<32x32xf32>
    %cst_73 = arith.constant dense<0.000000e+00> : vector<2x32xf32>
    %326 = tpu.matmul %308, %325, %cst_73 {dimension_numbers = #tpu.dot_dimension_numbers<[1], [0], [0], [1], [0, 0, 1, 1], [], []>} : vector<2x32xf32>, vector<32x32xf32>, vector<2x32xf32> -> vector<2x32xf32>
    %c0_74 = arith.constant 0 : index
    %c0_75 = arith.constant 0 : index
    %327 = vector.load %arg8[%c0_74, %c0_75] : memref<1x32xf32, #tpu.memory_space<vmem>>, vector<1x32xf32>
    %328 = vector.broadcast %327 : vector<1x32xf32> to vector<2x32xf32>
    %329 = arith.addf %326, %328 : vector<2x32xf32>
    %330 = tpu.concatenate %329, %329, %329, %329, %329, %329, %329, %329, %329, %329 in 0 : vector<2x32xf32>, vector<2x32xf32>, vector<2x32xf32>, vector<2x32xf32>, vector<2x32xf32>, vector<2x32xf32>, vector<2x32xf32>, vector<2x32xf32>, vector<2x32xf32>, vector<2x32xf32> -> vector<20x32xf32>
    %331 = arith.addf %311, %330 : vector<20x32xf32>
    %332 = math.tanh %331 : vector<20x32xf32>
    %c0_76 = arith.constant 0 : index
    %c0_77 = arith.constant 0 : index
    %333 = vector.load %arg9[%c0_76, %c0_77] : memref<32x1xf32, #tpu.memory_space<vmem>>, vector<32x1xf32>
    %cst_78 = arith.constant dense<0.000000e+00> : vector<20x1xf32>
    %334 = tpu.matmul %332, %333, %cst_78 {dimension_numbers = #tpu.dot_dimension_numbers<[1], [0], [0], [1], [0, 0, 1, 1], [], []>} : vector<20x32xf32>, vector<32x1xf32>, vector<20x1xf32> -> vector<20x1xf32>
    %335 = math.exp %334 : vector<20x1xf32>
    %336 = vector.broadcast %335 : vector<20x1xf32> to vector<20x33xf32>
    %337 = arith.mulf %336, %313 : vector<20x33xf32>
    %cst_79 = arith.constant dense<0.000000e+00> : vector<2x33xf32>
    %338 = tpu.matmul %314, %337, %cst_79 {dimension_numbers = #tpu.dot_dimension_numbers<[1], [0], [0], [1], [0, 0, 1, 1], [], []>} : vector<2x20xf32>, vector<20x33xf32>, vector<2x33xf32> -> vector<2x33xf32>
    %339 = vector.extract_strided_slice %338 {offsets = [0, 32], sizes = [2, 1], strides = [1, 1]} : vector<2x33xf32> to vector<2x1xf32>
    %340 = tpu.reciprocal %339 {approx = true} : vector<2x1xf32> -> vector<2x1xf32>
    %341 = vector.extract_strided_slice %338 {offsets = [0, 0], sizes = [2, 32], strides = [1, 1]} : vector<2x33xf32> to vector<2x32xf32>
    %342 = vector.broadcast %340 : vector<2x1xf32> to vector<2x32xf32>
    %343 = arith.mulf %341, %342 : vector<2x32xf32>
    %344 = tpu.concatenate %343, %308 in 1 : vector<2x32xf32>, vector<2x32xf32> -> vector<2x64xf32>
    %c0_80 = arith.constant 0 : index
    %c0_81 = arith.constant 0 : index
    %345 = vector.load %arg11[%c0_80, %c0_81] : memref<64x192xf32, #tpu.memory_space<vmem>>, vector<64x192xf32>
    %cst_82 = arith.constant dense<0.000000e+00> : vector<2x192xf32>
    %346 = tpu.matmul %344, %345, %cst_82 {dimension_numbers = #tpu.dot_dimension_numbers<[1], [0], [0], [1], [0, 0, 1, 1], [], []>} : vector<2x64xf32>, vector<64x192xf32>, vector<2x192xf32> -> vector<2x192xf32>
    %347 = vector.broadcast %316 : vector<1x192xf32> to vector<2x192xf32>
    %348 = arith.addf %346, %347 : vector<2x192xf32>
    %349 = vector.extract_strided_slice %348 {offsets = [0, 0], sizes = [2, 96], strides = [1, 1]} : vector<2x192xf32> to vector<2x96xf32>
    %350 = vector.broadcast %324 : vector<2x1xf32> to vector<2x96xf32>
    %351 = vector.broadcast %315 : vector<1x96xf32> to vector<2x96xf32>
    %352 = arith.mulf %350, %351 : vector<2x96xf32>
    %353 = arith.addf %349, %352 : vector<2x96xf32>
    %354 = vector.extract_strided_slice %348 {offsets = [0, 96], sizes = [2, 96], strides = [1, 1]} : vector<2x192xf32> to vector<2x96xf32>
    %355 = vector.extract_strided_slice %353 {offsets = [0, 0], sizes = [2, 32], strides = [1, 1]} : vector<2x96xf32> to vector<2x32xf32>
    %356 = vector.extract_strided_slice %354 {offsets = [0, 0], sizes = [2, 32], strides = [1, 1]} : vector<2x96xf32> to vector<2x32xf32>
    %357 = arith.addf %355, %356 : vector<2x32xf32>
    %358 = arith.negf %357 : vector<2x32xf32>
    %359 = math.exp %358 : vector<2x32xf32>
    %cst_83 = arith.constant 1.000000e+00 : f32
    %360 = vector.broadcast %cst_83 : f32 to vector<2x32xf32>
    %361 = arith.addf %360, %359 : vector<2x32xf32>
    %362 = arith.divf %360, %361 : vector<2x32xf32>
    %363 = vector.extract_strided_slice %353 {offsets = [0, 32], sizes = [2, 32], strides = [1, 1]} : vector<2x96xf32> to vector<2x32xf32>
    %364 = vector.extract_strided_slice %354 {offsets = [0, 32], sizes = [2, 32], strides = [1, 1]} : vector<2x96xf32> to vector<2x32xf32>
    %365 = arith.addf %363, %364 : vector<2x32xf32>
    %366 = arith.negf %365 : vector<2x32xf32>
    %367 = math.exp %366 : vector<2x32xf32>
    %cst_84 = arith.constant 1.000000e+00 : f32
    %368 = vector.broadcast %cst_84 : f32 to vector<2x32xf32>
    %369 = arith.addf %368, %367 : vector<2x32xf32>
    %370 = arith.divf %368, %369 : vector<2x32xf32>
    %371 = vector.extract_strided_slice %353 {offsets = [0, 64], sizes = [2, 32], strides = [1, 1]} : vector<2x96xf32> to vector<2x32xf32>
    %372 = vector.extract_strided_slice %354 {offsets = [0, 64], sizes = [2, 32], strides = [1, 1]} : vector<2x96xf32> to vector<2x32xf32>
    %373 = arith.mulf %362, %372 : vector<2x32xf32>
    %374 = arith.addf %371, %373 : vector<2x32xf32>
    %375 = math.tanh %374 : vector<2x32xf32>
    %cst_85 = arith.constant 1.000000e+00 : f32
    %376 = vector.broadcast %cst_85 : f32 to vector<2x32xf32>
    %377 = arith.subf %376, %370 : vector<2x32xf32>
    %378 = arith.mulf %377, %375 : vector<2x32xf32>
    %379 = arith.mulf %370, %308 : vector<2x32xf32>
    %380 = arith.addf %378, %379 : vector<2x32xf32>
    %381 = tpu.concatenate %380, %343 in 1 : vector<2x32xf32>, vector<2x32xf32> -> vector<2x64xf32>
    %c0_86 = arith.constant 0 : index
    %c0_87 = arith.constant 0 : index
    %382 = vector.load %arg13[%c0_86, %c0_87] : memref<64x33xf32, #tpu.memory_space<vmem>>, vector<64x33xf32>
    %cst_88 = arith.constant dense<0.000000e+00> : vector<2x33xf32>
    %383 = tpu.matmul %381, %382, %cst_88 {dimension_numbers = #tpu.dot_dimension_numbers<[1], [0], [0], [1], [0, 0, 1, 1], [], []>} : vector<2x64xf32>, vector<64x33xf32>, vector<2x33xf32> -> vector<2x33xf32>
    %384 = vector.broadcast %317 : vector<1x33xf32> to vector<2x33xf32>
    %385 = arith.addf %383, %384 : vector<2x33xf32>
    %386 = vector.extract_strided_slice %385 {offsets = [0, 0], sizes = [2, 1], strides = [1, 1]} : vector<2x33xf32> to vector<2x1xf32>
    %387 = vector.broadcast %318 : vector<1x1xf32> to vector<2x1xf32>
    %388 = arith.mulf %324, %387 : vector<2x1xf32>
    %389 = arith.addf %386, %388 : vector<2x1xf32>
    %390 = vector.extract_strided_slice %385 {offsets = [0, 1], sizes = [2, 32], strides = [1, 1]} : vector<2x33xf32> to vector<2x32xf32>
    %391 = vector.extract_strided_slice %319 {offsets = [1, 0], sizes = [1, 6], strides = [1, 1]} : vector<8x6xf32> to vector<1x6xf32>
    %392 = vector.broadcast %389 : vector<2x1xf32> to vector<2x6xf32>
    %393 = vector.broadcast %391 : vector<1x6xf32> to vector<2x6xf32>
    %394 = arith.mulf %392, %393 : vector<2x6xf32>
    %395 = arith.addf %323, %394 : vector<2x6xf32>
    %396 = tpu.concatenate %390, %390, %390, %390, %390, %390, %390, %390, %390, %390 in 0 : vector<2x32xf32>, vector<2x32xf32>, vector<2x32xf32>, vector<2x32xf32>, vector<2x32xf32>, vector<2x32xf32>, vector<2x32xf32>, vector<2x32xf32>, vector<2x32xf32>, vector<2x32xf32> -> vector<20x32xf32>
    %397 = arith.addf %311, %396 : vector<20x32xf32>
    %398 = math.tanh %397 : vector<20x32xf32>
    %c0_89 = arith.constant 0 : index
    %c0_90 = arith.constant 0 : index
    %399 = vector.load %arg9[%c0_89, %c0_90] : memref<32x1xf32, #tpu.memory_space<vmem>>, vector<32x1xf32>
    %cst_91 = arith.constant dense<0.000000e+00> : vector<20x1xf32>
    %400 = tpu.matmul %398, %399, %cst_91 {dimension_numbers = #tpu.dot_dimension_numbers<[1], [0], [0], [1], [0, 0, 1, 1], [], []>} : vector<20x32xf32>, vector<32x1xf32>, vector<20x1xf32> -> vector<20x1xf32>
    %401 = math.exp %400 : vector<20x1xf32>
    %402 = vector.broadcast %401 : vector<20x1xf32> to vector<20x33xf32>
    %403 = arith.mulf %402, %313 : vector<20x33xf32>
    %cst_92 = arith.constant dense<0.000000e+00> : vector<2x33xf32>
    %404 = tpu.matmul %314, %403, %cst_92 {dimension_numbers = #tpu.dot_dimension_numbers<[1], [0], [0], [1], [0, 0, 1, 1], [], []>} : vector<2x20xf32>, vector<20x33xf32>, vector<2x33xf32> -> vector<2x33xf32>
    %405 = vector.extract_strided_slice %404 {offsets = [0, 32], sizes = [2, 1], strides = [1, 1]} : vector<2x33xf32> to vector<2x1xf32>
    %406 = tpu.reciprocal %405 {approx = true} : vector<2x1xf32> -> vector<2x1xf32>
    %407 = vector.extract_strided_slice %404 {offsets = [0, 0], sizes = [2, 32], strides = [1, 1]} : vector<2x33xf32> to vector<2x32xf32>
    %408 = vector.broadcast %406 : vector<2x1xf32> to vector<2x32xf32>
    %409 = arith.mulf %407, %408 : vector<2x32xf32>
    %410 = tpu.concatenate %409, %380 in 1 : vector<2x32xf32>, vector<2x32xf32> -> vector<2x64xf32>
    %c0_93 = arith.constant 0 : index
    %c0_94 = arith.constant 0 : index
    %411 = vector.load %arg11[%c0_93, %c0_94] : memref<64x192xf32, #tpu.memory_space<vmem>>, vector<64x192xf32>
    %cst_95 = arith.constant dense<0.000000e+00> : vector<2x192xf32>
    %412 = tpu.matmul %410, %411, %cst_95 {dimension_numbers = #tpu.dot_dimension_numbers<[1], [0], [0], [1], [0, 0, 1, 1], [], []>} : vector<2x64xf32>, vector<64x192xf32>, vector<2x192xf32> -> vector<2x192xf32>
    %413 = vector.broadcast %316 : vector<1x192xf32> to vector<2x192xf32>
    %414 = arith.addf %412, %413 : vector<2x192xf32>
    %415 = vector.extract_strided_slice %414 {offsets = [0, 0], sizes = [2, 96], strides = [1, 1]} : vector<2x192xf32> to vector<2x96xf32>
    %416 = vector.broadcast %389 : vector<2x1xf32> to vector<2x96xf32>
    %417 = vector.broadcast %315 : vector<1x96xf32> to vector<2x96xf32>
    %418 = arith.mulf %416, %417 : vector<2x96xf32>
    %419 = arith.addf %415, %418 : vector<2x96xf32>
    %420 = vector.extract_strided_slice %414 {offsets = [0, 96], sizes = [2, 96], strides = [1, 1]} : vector<2x192xf32> to vector<2x96xf32>
    %421 = vector.extract_strided_slice %419 {offsets = [0, 0], sizes = [2, 32], strides = [1, 1]} : vector<2x96xf32> to vector<2x32xf32>
    %422 = vector.extract_strided_slice %420 {offsets = [0, 0], sizes = [2, 32], strides = [1, 1]} : vector<2x96xf32> to vector<2x32xf32>
    %423 = arith.addf %421, %422 : vector<2x32xf32>
    %424 = arith.negf %423 : vector<2x32xf32>
    %425 = math.exp %424 : vector<2x32xf32>
    %cst_96 = arith.constant 1.000000e+00 : f32
    %426 = vector.broadcast %cst_96 : f32 to vector<2x32xf32>
    %427 = arith.addf %426, %425 : vector<2x32xf32>
    %428 = arith.divf %426, %427 : vector<2x32xf32>
    %429 = vector.extract_strided_slice %419 {offsets = [0, 32], sizes = [2, 32], strides = [1, 1]} : vector<2x96xf32> to vector<2x32xf32>
    %430 = vector.extract_strided_slice %420 {offsets = [0, 32], sizes = [2, 32], strides = [1, 1]} : vector<2x96xf32> to vector<2x32xf32>
    %431 = arith.addf %429, %430 : vector<2x32xf32>
    %432 = arith.negf %431 : vector<2x32xf32>
    %433 = math.exp %432 : vector<2x32xf32>
    %cst_97 = arith.constant 1.000000e+00 : f32
    %434 = vector.broadcast %cst_97 : f32 to vector<2x32xf32>
    %435 = arith.addf %434, %433 : vector<2x32xf32>
    %436 = arith.divf %434, %435 : vector<2x32xf32>
    %437 = vector.extract_strided_slice %419 {offsets = [0, 64], sizes = [2, 32], strides = [1, 1]} : vector<2x96xf32> to vector<2x32xf32>
    %438 = vector.extract_strided_slice %420 {offsets = [0, 64], sizes = [2, 32], strides = [1, 1]} : vector<2x96xf32> to vector<2x32xf32>
    %439 = arith.mulf %428, %438 : vector<2x32xf32>
    %440 = arith.addf %437, %439 : vector<2x32xf32>
    %441 = math.tanh %440 : vector<2x32xf32>
    %cst_98 = arith.constant 1.000000e+00 : f32
    %442 = vector.broadcast %cst_98 : f32 to vector<2x32xf32>
    %443 = arith.subf %442, %436 : vector<2x32xf32>
    %444 = arith.mulf %443, %441 : vector<2x32xf32>
    %445 = arith.mulf %436, %380 : vector<2x32xf32>
    %446 = arith.addf %444, %445 : vector<2x32xf32>
    %447 = tpu.concatenate %446, %409 in 1 : vector<2x32xf32>, vector<2x32xf32> -> vector<2x64xf32>
    %c0_99 = arith.constant 0 : index
    %c0_100 = arith.constant 0 : index
    %448 = vector.load %arg13[%c0_99, %c0_100] : memref<64x33xf32, #tpu.memory_space<vmem>>, vector<64x33xf32>
    %cst_101 = arith.constant dense<0.000000e+00> : vector<2x33xf32>
    %449 = tpu.matmul %447, %448, %cst_101 {dimension_numbers = #tpu.dot_dimension_numbers<[1], [0], [0], [1], [0, 0, 1, 1], [], []>} : vector<2x64xf32>, vector<64x33xf32>, vector<2x33xf32> -> vector<2x33xf32>
    %450 = vector.broadcast %317 : vector<1x33xf32> to vector<2x33xf32>
    %451 = arith.addf %449, %450 : vector<2x33xf32>
    %452 = vector.extract_strided_slice %451 {offsets = [0, 0], sizes = [2, 1], strides = [1, 1]} : vector<2x33xf32> to vector<2x1xf32>
    %453 = vector.broadcast %318 : vector<1x1xf32> to vector<2x1xf32>
    %454 = arith.mulf %389, %453 : vector<2x1xf32>
    %455 = arith.addf %452, %454 : vector<2x1xf32>
    %456 = vector.extract_strided_slice %451 {offsets = [0, 1], sizes = [2, 32], strides = [1, 1]} : vector<2x33xf32> to vector<2x32xf32>
    %457 = vector.extract_strided_slice %319 {offsets = [2, 0], sizes = [1, 6], strides = [1, 1]} : vector<8x6xf32> to vector<1x6xf32>
    %458 = vector.broadcast %455 : vector<2x1xf32> to vector<2x6xf32>
    %459 = vector.broadcast %457 : vector<1x6xf32> to vector<2x6xf32>
    %460 = arith.mulf %458, %459 : vector<2x6xf32>
    %461 = arith.addf %395, %460 : vector<2x6xf32>
    %462 = tpu.concatenate %456, %456, %456, %456, %456, %456, %456, %456, %456, %456 in 0 : vector<2x32xf32>, vector<2x32xf32>, vector<2x32xf32>, vector<2x32xf32>, vector<2x32xf32>, vector<2x32xf32>, vector<2x32xf32>, vector<2x32xf32>, vector<2x32xf32>, vector<2x32xf32> -> vector<20x32xf32>
    %463 = arith.addf %311, %462 : vector<20x32xf32>
    %464 = math.tanh %463 : vector<20x32xf32>
    %c0_102 = arith.constant 0 : index
    %c0_103 = arith.constant 0 : index
    %465 = vector.load %arg9[%c0_102, %c0_103] : memref<32x1xf32, #tpu.memory_space<vmem>>, vector<32x1xf32>
    %cst_104 = arith.constant dense<0.000000e+00> : vector<20x1xf32>
    %466 = tpu.matmul %464, %465, %cst_104 {dimension_numbers = #tpu.dot_dimension_numbers<[1], [0], [0], [1], [0, 0, 1, 1], [], []>} : vector<20x32xf32>, vector<32x1xf32>, vector<20x1xf32> -> vector<20x1xf32>
    %467 = math.exp %466 : vector<20x1xf32>
    %468 = vector.broadcast %467 : vector<20x1xf32> to vector<20x33xf32>
    %469 = arith.mulf %468, %313 : vector<20x33xf32>
    %cst_105 = arith.constant dense<0.000000e+00> : vector<2x33xf32>
    %470 = tpu.matmul %314, %469, %cst_105 {dimension_numbers = #tpu.dot_dimension_numbers<[1], [0], [0], [1], [0, 0, 1, 1], [], []>} : vector<2x20xf32>, vector<20x33xf32>, vector<2x33xf32> -> vector<2x33xf32>
    %471 = vector.extract_strided_slice %470 {offsets = [0, 32], sizes = [2, 1], strides = [1, 1]} : vector<2x33xf32> to vector<2x1xf32>
    %472 = tpu.reciprocal %471 {approx = true} : vector<2x1xf32> -> vector<2x1xf32>
    %473 = vector.extract_strided_slice %470 {offsets = [0, 0], sizes = [2, 32], strides = [1, 1]} : vector<2x33xf32> to vector<2x32xf32>
    %474 = vector.broadcast %472 : vector<2x1xf32> to vector<2x32xf32>
    %475 = arith.mulf %473, %474 : vector<2x32xf32>
    %476 = tpu.concatenate %475, %446 in 1 : vector<2x32xf32>, vector<2x32xf32> -> vector<2x64xf32>
    %c0_106 = arith.constant 0 : index
    %c0_107 = arith.constant 0 : index
    %477 = vector.load %arg11[%c0_106, %c0_107] : memref<64x192xf32, #tpu.memory_space<vmem>>, vector<64x192xf32>
    %cst_108 = arith.constant dense<0.000000e+00> : vector<2x192xf32>
    %478 = tpu.matmul %476, %477, %cst_108 {dimension_numbers = #tpu.dot_dimension_numbers<[1], [0], [0], [1], [0, 0, 1, 1], [], []>} : vector<2x64xf32>, vector<64x192xf32>, vector<2x192xf32> -> vector<2x192xf32>
    %479 = vector.broadcast %316 : vector<1x192xf32> to vector<2x192xf32>
    %480 = arith.addf %478, %479 : vector<2x192xf32>
    %481 = vector.extract_strided_slice %480 {offsets = [0, 0], sizes = [2, 96], strides = [1, 1]} : vector<2x192xf32> to vector<2x96xf32>
    %482 = vector.broadcast %455 : vector<2x1xf32> to vector<2x96xf32>
    %483 = vector.broadcast %315 : vector<1x96xf32> to vector<2x96xf32>
    %484 = arith.mulf %482, %483 : vector<2x96xf32>
    %485 = arith.addf %481, %484 : vector<2x96xf32>
    %486 = vector.extract_strided_slice %480 {offsets = [0, 96], sizes = [2, 96], strides = [1, 1]} : vector<2x192xf32> to vector<2x96xf32>
    %487 = vector.extract_strided_slice %485 {offsets = [0, 0], sizes = [2, 32], strides = [1, 1]} : vector<2x96xf32> to vector<2x32xf32>
    %488 = vector.extract_strided_slice %486 {offsets = [0, 0], sizes = [2, 32], strides = [1, 1]} : vector<2x96xf32> to vector<2x32xf32>
    %489 = arith.addf %487, %488 : vector<2x32xf32>
    %490 = arith.negf %489 : vector<2x32xf32>
    %491 = math.exp %490 : vector<2x32xf32>
    %cst_109 = arith.constant 1.000000e+00 : f32
    %492 = vector.broadcast %cst_109 : f32 to vector<2x32xf32>
    %493 = arith.addf %492, %491 : vector<2x32xf32>
    %494 = arith.divf %492, %493 : vector<2x32xf32>
    %495 = vector.extract_strided_slice %485 {offsets = [0, 32], sizes = [2, 32], strides = [1, 1]} : vector<2x96xf32> to vector<2x32xf32>
    %496 = vector.extract_strided_slice %486 {offsets = [0, 32], sizes = [2, 32], strides = [1, 1]} : vector<2x96xf32> to vector<2x32xf32>
    %497 = arith.addf %495, %496 : vector<2x32xf32>
    %498 = arith.negf %497 : vector<2x32xf32>
    %499 = math.exp %498 : vector<2x32xf32>
    %cst_110 = arith.constant 1.000000e+00 : f32
    %500 = vector.broadcast %cst_110 : f32 to vector<2x32xf32>
    %501 = arith.addf %500, %499 : vector<2x32xf32>
    %502 = arith.divf %500, %501 : vector<2x32xf32>
    %503 = vector.extract_strided_slice %485 {offsets = [0, 64], sizes = [2, 32], strides = [1, 1]} : vector<2x96xf32> to vector<2x32xf32>
    %504 = vector.extract_strided_slice %486 {offsets = [0, 64], sizes = [2, 32], strides = [1, 1]} : vector<2x96xf32> to vector<2x32xf32>
    %505 = arith.mulf %494, %504 : vector<2x32xf32>
    %506 = arith.addf %503, %505 : vector<2x32xf32>
    %507 = math.tanh %506 : vector<2x32xf32>
    %cst_111 = arith.constant 1.000000e+00 : f32
    %508 = vector.broadcast %cst_111 : f32 to vector<2x32xf32>
    %509 = arith.subf %508, %502 : vector<2x32xf32>
    %510 = arith.mulf %509, %507 : vector<2x32xf32>
    %511 = arith.mulf %502, %446 : vector<2x32xf32>
    %512 = arith.addf %510, %511 : vector<2x32xf32>
    %513 = tpu.concatenate %512, %475 in 1 : vector<2x32xf32>, vector<2x32xf32> -> vector<2x64xf32>
    %c0_112 = arith.constant 0 : index
    %c0_113 = arith.constant 0 : index
    %514 = vector.load %arg13[%c0_112, %c0_113] : memref<64x33xf32, #tpu.memory_space<vmem>>, vector<64x33xf32>
    %cst_114 = arith.constant dense<0.000000e+00> : vector<2x33xf32>
    %515 = tpu.matmul %513, %514, %cst_114 {dimension_numbers = #tpu.dot_dimension_numbers<[1], [0], [0], [1], [0, 0, 1, 1], [], []>} : vector<2x64xf32>, vector<64x33xf32>, vector<2x33xf32> -> vector<2x33xf32>
    %516 = vector.broadcast %317 : vector<1x33xf32> to vector<2x33xf32>
    %517 = arith.addf %515, %516 : vector<2x33xf32>
    %518 = vector.extract_strided_slice %517 {offsets = [0, 0], sizes = [2, 1], strides = [1, 1]} : vector<2x33xf32> to vector<2x1xf32>
    %519 = vector.broadcast %318 : vector<1x1xf32> to vector<2x1xf32>
    %520 = arith.mulf %455, %519 : vector<2x1xf32>
    %521 = arith.addf %518, %520 : vector<2x1xf32>
    %522 = vector.extract_strided_slice %517 {offsets = [0, 1], sizes = [2, 32], strides = [1, 1]} : vector<2x33xf32> to vector<2x32xf32>
    %523 = vector.extract_strided_slice %319 {offsets = [3, 0], sizes = [1, 6], strides = [1, 1]} : vector<8x6xf32> to vector<1x6xf32>
    %524 = vector.broadcast %521 : vector<2x1xf32> to vector<2x6xf32>
    %525 = vector.broadcast %523 : vector<1x6xf32> to vector<2x6xf32>
    %526 = arith.mulf %524, %525 : vector<2x6xf32>
    %527 = arith.addf %461, %526 : vector<2x6xf32>
    %528 = tpu.concatenate %522, %522, %522, %522, %522, %522, %522, %522, %522, %522 in 0 : vector<2x32xf32>, vector<2x32xf32>, vector<2x32xf32>, vector<2x32xf32>, vector<2x32xf32>, vector<2x32xf32>, vector<2x32xf32>, vector<2x32xf32>, vector<2x32xf32>, vector<2x32xf32> -> vector<20x32xf32>
    %529 = arith.addf %311, %528 : vector<20x32xf32>
    %530 = math.tanh %529 : vector<20x32xf32>
    %c0_115 = arith.constant 0 : index
    %c0_116 = arith.constant 0 : index
    %531 = vector.load %arg9[%c0_115, %c0_116] : memref<32x1xf32, #tpu.memory_space<vmem>>, vector<32x1xf32>
    %cst_117 = arith.constant dense<0.000000e+00> : vector<20x1xf32>
    %532 = tpu.matmul %530, %531, %cst_117 {dimension_numbers = #tpu.dot_dimension_numbers<[1], [0], [0], [1], [0, 0, 1, 1], [], []>} : vector<20x32xf32>, vector<32x1xf32>, vector<20x1xf32> -> vector<20x1xf32>
    %533 = math.exp %532 : vector<20x1xf32>
    %534 = vector.broadcast %533 : vector<20x1xf32> to vector<20x33xf32>
    %535 = arith.mulf %534, %313 : vector<20x33xf32>
    %cst_118 = arith.constant dense<0.000000e+00> : vector<2x33xf32>
    %536 = tpu.matmul %314, %535, %cst_118 {dimension_numbers = #tpu.dot_dimension_numbers<[1], [0], [0], [1], [0, 0, 1, 1], [], []>} : vector<2x20xf32>, vector<20x33xf32>, vector<2x33xf32> -> vector<2x33xf32>
    %537 = vector.extract_strided_slice %536 {offsets = [0, 32], sizes = [2, 1], strides = [1, 1]} : vector<2x33xf32> to vector<2x1xf32>
    %538 = tpu.reciprocal %537 {approx = true} : vector<2x1xf32> -> vector<2x1xf32>
    %539 = vector.extract_strided_slice %536 {offsets = [0, 0], sizes = [2, 32], strides = [1, 1]} : vector<2x33xf32> to vector<2x32xf32>
    %540 = vector.broadcast %538 : vector<2x1xf32> to vector<2x32xf32>
    %541 = arith.mulf %539, %540 : vector<2x32xf32>
    %542 = tpu.concatenate %541, %512 in 1 : vector<2x32xf32>, vector<2x32xf32> -> vector<2x64xf32>
    %c0_119 = arith.constant 0 : index
    %c0_120 = arith.constant 0 : index
    %543 = vector.load %arg11[%c0_119, %c0_120] : memref<64x192xf32, #tpu.memory_space<vmem>>, vector<64x192xf32>
    %cst_121 = arith.constant dense<0.000000e+00> : vector<2x192xf32>
    %544 = tpu.matmul %542, %543, %cst_121 {dimension_numbers = #tpu.dot_dimension_numbers<[1], [0], [0], [1], [0, 0, 1, 1], [], []>} : vector<2x64xf32>, vector<64x192xf32>, vector<2x192xf32> -> vector<2x192xf32>
    %545 = vector.broadcast %316 : vector<1x192xf32> to vector<2x192xf32>
    %546 = arith.addf %544, %545 : vector<2x192xf32>
    %547 = vector.extract_strided_slice %546 {offsets = [0, 0], sizes = [2, 96], strides = [1, 1]} : vector<2x192xf32> to vector<2x96xf32>
    %548 = vector.broadcast %521 : vector<2x1xf32> to vector<2x96xf32>
    %549 = vector.broadcast %315 : vector<1x96xf32> to vector<2x96xf32>
    %550 = arith.mulf %548, %549 : vector<2x96xf32>
    %551 = arith.addf %547, %550 : vector<2x96xf32>
    %552 = vector.extract_strided_slice %546 {offsets = [0, 96], sizes = [2, 96], strides = [1, 1]} : vector<2x192xf32> to vector<2x96xf32>
    %553 = vector.extract_strided_slice %551 {offsets = [0, 0], sizes = [2, 32], strides = [1, 1]} : vector<2x96xf32> to vector<2x32xf32>
    %554 = vector.extract_strided_slice %552 {offsets = [0, 0], sizes = [2, 32], strides = [1, 1]} : vector<2x96xf32> to vector<2x32xf32>
    %555 = arith.addf %553, %554 : vector<2x32xf32>
    %556 = arith.negf %555 : vector<2x32xf32>
    %557 = math.exp %556 : vector<2x32xf32>
    %cst_122 = arith.constant 1.000000e+00 : f32
    %558 = vector.broadcast %cst_122 : f32 to vector<2x32xf32>
    %559 = arith.addf %558, %557 : vector<2x32xf32>
    %560 = arith.divf %558, %559 : vector<2x32xf32>
    %561 = vector.extract_strided_slice %551 {offsets = [0, 32], sizes = [2, 32], strides = [1, 1]} : vector<2x96xf32> to vector<2x32xf32>
    %562 = vector.extract_strided_slice %552 {offsets = [0, 32], sizes = [2, 32], strides = [1, 1]} : vector<2x96xf32> to vector<2x32xf32>
    %563 = arith.addf %561, %562 : vector<2x32xf32>
    %564 = arith.negf %563 : vector<2x32xf32>
    %565 = math.exp %564 : vector<2x32xf32>
    %cst_123 = arith.constant 1.000000e+00 : f32
    %566 = vector.broadcast %cst_123 : f32 to vector<2x32xf32>
    %567 = arith.addf %566, %565 : vector<2x32xf32>
    %568 = arith.divf %566, %567 : vector<2x32xf32>
    %569 = vector.extract_strided_slice %551 {offsets = [0, 64], sizes = [2, 32], strides = [1, 1]} : vector<2x96xf32> to vector<2x32xf32>
    %570 = vector.extract_strided_slice %552 {offsets = [0, 64], sizes = [2, 32], strides = [1, 1]} : vector<2x96xf32> to vector<2x32xf32>
    %571 = arith.mulf %560, %570 : vector<2x32xf32>
    %572 = arith.addf %569, %571 : vector<2x32xf32>
    %573 = math.tanh %572 : vector<2x32xf32>
    %cst_124 = arith.constant 1.000000e+00 : f32
    %574 = vector.broadcast %cst_124 : f32 to vector<2x32xf32>
    %575 = arith.subf %574, %568 : vector<2x32xf32>
    %576 = arith.mulf %575, %573 : vector<2x32xf32>
    %577 = arith.mulf %568, %512 : vector<2x32xf32>
    %578 = arith.addf %576, %577 : vector<2x32xf32>
    %579 = tpu.concatenate %578, %541 in 1 : vector<2x32xf32>, vector<2x32xf32> -> vector<2x64xf32>
    %c0_125 = arith.constant 0 : index
    %c0_126 = arith.constant 0 : index
    %580 = vector.load %arg13[%c0_125, %c0_126] : memref<64x33xf32, #tpu.memory_space<vmem>>, vector<64x33xf32>
    %cst_127 = arith.constant dense<0.000000e+00> : vector<2x33xf32>
    %581 = tpu.matmul %579, %580, %cst_127 {dimension_numbers = #tpu.dot_dimension_numbers<[1], [0], [0], [1], [0, 0, 1, 1], [], []>} : vector<2x64xf32>, vector<64x33xf32>, vector<2x33xf32> -> vector<2x33xf32>
    %582 = vector.broadcast %317 : vector<1x33xf32> to vector<2x33xf32>
    %583 = arith.addf %581, %582 : vector<2x33xf32>
    %584 = vector.extract_strided_slice %583 {offsets = [0, 0], sizes = [2, 1], strides = [1, 1]} : vector<2x33xf32> to vector<2x1xf32>
    %585 = vector.broadcast %318 : vector<1x1xf32> to vector<2x1xf32>
    %586 = arith.mulf %521, %585 : vector<2x1xf32>
    %587 = arith.addf %584, %586 : vector<2x1xf32>
    %588 = vector.extract_strided_slice %583 {offsets = [0, 1], sizes = [2, 32], strides = [1, 1]} : vector<2x33xf32> to vector<2x32xf32>
    %589 = vector.extract_strided_slice %319 {offsets = [4, 0], sizes = [1, 6], strides = [1, 1]} : vector<8x6xf32> to vector<1x6xf32>
    %590 = vector.broadcast %587 : vector<2x1xf32> to vector<2x6xf32>
    %591 = vector.broadcast %589 : vector<1x6xf32> to vector<2x6xf32>
    %592 = arith.mulf %590, %591 : vector<2x6xf32>
    %593 = arith.addf %527, %592 : vector<2x6xf32>
    %594 = tpu.concatenate %588, %588, %588, %588, %588, %588, %588, %588, %588, %588 in 0 : vector<2x32xf32>, vector<2x32xf32>, vector<2x32xf32>, vector<2x32xf32>, vector<2x32xf32>, vector<2x32xf32>, vector<2x32xf32>, vector<2x32xf32>, vector<2x32xf32>, vector<2x32xf32> -> vector<20x32xf32>
    %595 = arith.addf %311, %594 : vector<20x32xf32>
    %596 = math.tanh %595 : vector<20x32xf32>
    %c0_128 = arith.constant 0 : index
    %c0_129 = arith.constant 0 : index
    %597 = vector.load %arg9[%c0_128, %c0_129] : memref<32x1xf32, #tpu.memory_space<vmem>>, vector<32x1xf32>
    %cst_130 = arith.constant dense<0.000000e+00> : vector<20x1xf32>
    %598 = tpu.matmul %596, %597, %cst_130 {dimension_numbers = #tpu.dot_dimension_numbers<[1], [0], [0], [1], [0, 0, 1, 1], [], []>} : vector<20x32xf32>, vector<32x1xf32>, vector<20x1xf32> -> vector<20x1xf32>
    %599 = math.exp %598 : vector<20x1xf32>
    %600 = vector.broadcast %599 : vector<20x1xf32> to vector<20x33xf32>
    %601 = arith.mulf %600, %313 : vector<20x33xf32>
    %cst_131 = arith.constant dense<0.000000e+00> : vector<2x33xf32>
    %602 = tpu.matmul %314, %601, %cst_131 {dimension_numbers = #tpu.dot_dimension_numbers<[1], [0], [0], [1], [0, 0, 1, 1], [], []>} : vector<2x20xf32>, vector<20x33xf32>, vector<2x33xf32> -> vector<2x33xf32>
    %603 = vector.extract_strided_slice %602 {offsets = [0, 32], sizes = [2, 1], strides = [1, 1]} : vector<2x33xf32> to vector<2x1xf32>
    %604 = tpu.reciprocal %603 {approx = true} : vector<2x1xf32> -> vector<2x1xf32>
    %605 = vector.extract_strided_slice %602 {offsets = [0, 0], sizes = [2, 32], strides = [1, 1]} : vector<2x33xf32> to vector<2x32xf32>
    %606 = vector.broadcast %604 : vector<2x1xf32> to vector<2x32xf32>
    %607 = arith.mulf %605, %606 : vector<2x32xf32>
    %608 = tpu.concatenate %607, %578 in 1 : vector<2x32xf32>, vector<2x32xf32> -> vector<2x64xf32>
    %c0_132 = arith.constant 0 : index
    %c0_133 = arith.constant 0 : index
    %609 = vector.load %arg11[%c0_132, %c0_133] : memref<64x192xf32, #tpu.memory_space<vmem>>, vector<64x192xf32>
    %cst_134 = arith.constant dense<0.000000e+00> : vector<2x192xf32>
    %610 = tpu.matmul %608, %609, %cst_134 {dimension_numbers = #tpu.dot_dimension_numbers<[1], [0], [0], [1], [0, 0, 1, 1], [], []>} : vector<2x64xf32>, vector<64x192xf32>, vector<2x192xf32> -> vector<2x192xf32>
    %611 = vector.broadcast %316 : vector<1x192xf32> to vector<2x192xf32>
    %612 = arith.addf %610, %611 : vector<2x192xf32>
    %613 = vector.extract_strided_slice %612 {offsets = [0, 0], sizes = [2, 96], strides = [1, 1]} : vector<2x192xf32> to vector<2x96xf32>
    %614 = vector.broadcast %587 : vector<2x1xf32> to vector<2x96xf32>
    %615 = vector.broadcast %315 : vector<1x96xf32> to vector<2x96xf32>
    %616 = arith.mulf %614, %615 : vector<2x96xf32>
    %617 = arith.addf %613, %616 : vector<2x96xf32>
    %618 = vector.extract_strided_slice %612 {offsets = [0, 96], sizes = [2, 96], strides = [1, 1]} : vector<2x192xf32> to vector<2x96xf32>
    %619 = vector.extract_strided_slice %617 {offsets = [0, 0], sizes = [2, 32], strides = [1, 1]} : vector<2x96xf32> to vector<2x32xf32>
    %620 = vector.extract_strided_slice %618 {offsets = [0, 0], sizes = [2, 32], strides = [1, 1]} : vector<2x96xf32> to vector<2x32xf32>
    %621 = arith.addf %619, %620 : vector<2x32xf32>
    %622 = arith.negf %621 : vector<2x32xf32>
    %623 = math.exp %622 : vector<2x32xf32>
    %cst_135 = arith.constant 1.000000e+00 : f32
    %624 = vector.broadcast %cst_135 : f32 to vector<2x32xf32>
    %625 = arith.addf %624, %623 : vector<2x32xf32>
    %626 = arith.divf %624, %625 : vector<2x32xf32>
    %627 = vector.extract_strided_slice %617 {offsets = [0, 32], sizes = [2, 32], strides = [1, 1]} : vector<2x96xf32> to vector<2x32xf32>
    %628 = vector.extract_strided_slice %618 {offsets = [0, 32], sizes = [2, 32], strides = [1, 1]} : vector<2x96xf32> to vector<2x32xf32>
    %629 = arith.addf %627, %628 : vector<2x32xf32>
    %630 = arith.negf %629 : vector<2x32xf32>
    %631 = math.exp %630 : vector<2x32xf32>
    %cst_136 = arith.constant 1.000000e+00 : f32
    %632 = vector.broadcast %cst_136 : f32 to vector<2x32xf32>
    %633 = arith.addf %632, %631 : vector<2x32xf32>
    %634 = arith.divf %632, %633 : vector<2x32xf32>
    %635 = vector.extract_strided_slice %617 {offsets = [0, 64], sizes = [2, 32], strides = [1, 1]} : vector<2x96xf32> to vector<2x32xf32>
    %636 = vector.extract_strided_slice %618 {offsets = [0, 64], sizes = [2, 32], strides = [1, 1]} : vector<2x96xf32> to vector<2x32xf32>
    %637 = arith.mulf %626, %636 : vector<2x32xf32>
    %638 = arith.addf %635, %637 : vector<2x32xf32>
    %639 = math.tanh %638 : vector<2x32xf32>
    %cst_137 = arith.constant 1.000000e+00 : f32
    %640 = vector.broadcast %cst_137 : f32 to vector<2x32xf32>
    %641 = arith.subf %640, %634 : vector<2x32xf32>
    %642 = arith.mulf %641, %639 : vector<2x32xf32>
    %643 = arith.mulf %634, %578 : vector<2x32xf32>
    %644 = arith.addf %642, %643 : vector<2x32xf32>
    %645 = tpu.concatenate %644, %607 in 1 : vector<2x32xf32>, vector<2x32xf32> -> vector<2x64xf32>
    %c0_138 = arith.constant 0 : index
    %c0_139 = arith.constant 0 : index
    %646 = vector.load %arg13[%c0_138, %c0_139] : memref<64x33xf32, #tpu.memory_space<vmem>>, vector<64x33xf32>
    %cst_140 = arith.constant dense<0.000000e+00> : vector<2x33xf32>
    %647 = tpu.matmul %645, %646, %cst_140 {dimension_numbers = #tpu.dot_dimension_numbers<[1], [0], [0], [1], [0, 0, 1, 1], [], []>} : vector<2x64xf32>, vector<64x33xf32>, vector<2x33xf32> -> vector<2x33xf32>
    %648 = vector.broadcast %317 : vector<1x33xf32> to vector<2x33xf32>
    %649 = arith.addf %647, %648 : vector<2x33xf32>
    %650 = vector.extract_strided_slice %649 {offsets = [0, 0], sizes = [2, 1], strides = [1, 1]} : vector<2x33xf32> to vector<2x1xf32>
    %651 = vector.broadcast %318 : vector<1x1xf32> to vector<2x1xf32>
    %652 = arith.mulf %587, %651 : vector<2x1xf32>
    %653 = arith.addf %650, %652 : vector<2x1xf32>
    %654 = vector.extract_strided_slice %649 {offsets = [0, 1], sizes = [2, 32], strides = [1, 1]} : vector<2x33xf32> to vector<2x32xf32>
    %655 = vector.extract_strided_slice %319 {offsets = [5, 0], sizes = [1, 6], strides = [1, 1]} : vector<8x6xf32> to vector<1x6xf32>
    %656 = vector.broadcast %653 : vector<2x1xf32> to vector<2x6xf32>
    %657 = vector.broadcast %655 : vector<1x6xf32> to vector<2x6xf32>
    %658 = arith.mulf %656, %657 : vector<2x6xf32>
    %659 = arith.addf %593, %658 : vector<2x6xf32>
    %660 = tpu.concatenate %654, %654, %654, %654, %654, %654, %654, %654, %654, %654 in 0 : vector<2x32xf32>, vector<2x32xf32>, vector<2x32xf32>, vector<2x32xf32>, vector<2x32xf32>, vector<2x32xf32>, vector<2x32xf32>, vector<2x32xf32>, vector<2x32xf32>, vector<2x32xf32> -> vector<20x32xf32>
    %661 = arith.addf %311, %660 : vector<20x32xf32>
    %662 = math.tanh %661 : vector<20x32xf32>
    %c0_141 = arith.constant 0 : index
    %c0_142 = arith.constant 0 : index
    %663 = vector.load %arg9[%c0_141, %c0_142] : memref<32x1xf32, #tpu.memory_space<vmem>>, vector<32x1xf32>
    %cst_143 = arith.constant dense<0.000000e+00> : vector<20x1xf32>
    %664 = tpu.matmul %662, %663, %cst_143 {dimension_numbers = #tpu.dot_dimension_numbers<[1], [0], [0], [1], [0, 0, 1, 1], [], []>} : vector<20x32xf32>, vector<32x1xf32>, vector<20x1xf32> -> vector<20x1xf32>
    %665 = math.exp %664 : vector<20x1xf32>
    %666 = vector.broadcast %665 : vector<20x1xf32> to vector<20x33xf32>
    %667 = arith.mulf %666, %313 : vector<20x33xf32>
    %cst_144 = arith.constant dense<0.000000e+00> : vector<2x33xf32>
    %668 = tpu.matmul %314, %667, %cst_144 {dimension_numbers = #tpu.dot_dimension_numbers<[1], [0], [0], [1], [0, 0, 1, 1], [], []>} : vector<2x20xf32>, vector<20x33xf32>, vector<2x33xf32> -> vector<2x33xf32>
    %669 = vector.extract_strided_slice %668 {offsets = [0, 32], sizes = [2, 1], strides = [1, 1]} : vector<2x33xf32> to vector<2x1xf32>
    %670 = tpu.reciprocal %669 {approx = true} : vector<2x1xf32> -> vector<2x1xf32>
    %671 = vector.extract_strided_slice %668 {offsets = [0, 0], sizes = [2, 32], strides = [1, 1]} : vector<2x33xf32> to vector<2x32xf32>
    %672 = vector.broadcast %670 : vector<2x1xf32> to vector<2x32xf32>
    %673 = arith.mulf %671, %672 : vector<2x32xf32>
    %674 = tpu.concatenate %673, %644 in 1 : vector<2x32xf32>, vector<2x32xf32> -> vector<2x64xf32>
    %c0_145 = arith.constant 0 : index
    %c0_146 = arith.constant 0 : index
    %675 = vector.load %arg11[%c0_145, %c0_146] : memref<64x192xf32, #tpu.memory_space<vmem>>, vector<64x192xf32>
    %cst_147 = arith.constant dense<0.000000e+00> : vector<2x192xf32>
    %676 = tpu.matmul %674, %675, %cst_147 {dimension_numbers = #tpu.dot_dimension_numbers<[1], [0], [0], [1], [0, 0, 1, 1], [], []>} : vector<2x64xf32>, vector<64x192xf32>, vector<2x192xf32> -> vector<2x192xf32>
    %677 = vector.broadcast %316 : vector<1x192xf32> to vector<2x192xf32>
    %678 = arith.addf %676, %677 : vector<2x192xf32>
    %679 = vector.extract_strided_slice %678 {offsets = [0, 0], sizes = [2, 96], strides = [1, 1]} : vector<2x192xf32> to vector<2x96xf32>
    %680 = vector.broadcast %653 : vector<2x1xf32> to vector<2x96xf32>
    %681 = vector.broadcast %315 : vector<1x96xf32> to vector<2x96xf32>
    %682 = arith.mulf %680, %681 : vector<2x96xf32>
    %683 = arith.addf %679, %682 : vector<2x96xf32>
    %684 = vector.extract_strided_slice %678 {offsets = [0, 96], sizes = [2, 96], strides = [1, 1]} : vector<2x192xf32> to vector<2x96xf32>
    %685 = vector.extract_strided_slice %683 {offsets = [0, 0], sizes = [2, 32], strides = [1, 1]} : vector<2x96xf32> to vector<2x32xf32>
    %686 = vector.extract_strided_slice %684 {offsets = [0, 0], sizes = [2, 32], strides = [1, 1]} : vector<2x96xf32> to vector<2x32xf32>
    %687 = arith.addf %685, %686 : vector<2x32xf32>
    %688 = arith.negf %687 : vector<2x32xf32>
    %689 = math.exp %688 : vector<2x32xf32>
    %cst_148 = arith.constant 1.000000e+00 : f32
    %690 = vector.broadcast %cst_148 : f32 to vector<2x32xf32>
    %691 = arith.addf %690, %689 : vector<2x32xf32>
    %692 = arith.divf %690, %691 : vector<2x32xf32>
    %693 = vector.extract_strided_slice %683 {offsets = [0, 32], sizes = [2, 32], strides = [1, 1]} : vector<2x96xf32> to vector<2x32xf32>
    %694 = vector.extract_strided_slice %684 {offsets = [0, 32], sizes = [2, 32], strides = [1, 1]} : vector<2x96xf32> to vector<2x32xf32>
    %695 = arith.addf %693, %694 : vector<2x32xf32>
    %696 = arith.negf %695 : vector<2x32xf32>
    %697 = math.exp %696 : vector<2x32xf32>
    %cst_149 = arith.constant 1.000000e+00 : f32
    %698 = vector.broadcast %cst_149 : f32 to vector<2x32xf32>
    %699 = arith.addf %698, %697 : vector<2x32xf32>
    %700 = arith.divf %698, %699 : vector<2x32xf32>
    %701 = vector.extract_strided_slice %683 {offsets = [0, 64], sizes = [2, 32], strides = [1, 1]} : vector<2x96xf32> to vector<2x32xf32>
    %702 = vector.extract_strided_slice %684 {offsets = [0, 64], sizes = [2, 32], strides = [1, 1]} : vector<2x96xf32> to vector<2x32xf32>
    %703 = arith.mulf %692, %702 : vector<2x32xf32>
    %704 = arith.addf %701, %703 : vector<2x32xf32>
    %705 = math.tanh %704 : vector<2x32xf32>
    %cst_150 = arith.constant 1.000000e+00 : f32
    %706 = vector.broadcast %cst_150 : f32 to vector<2x32xf32>
    %707 = arith.subf %706, %700 : vector<2x32xf32>
    %708 = arith.mulf %707, %705 : vector<2x32xf32>
    %709 = arith.mulf %700, %644 : vector<2x32xf32>
    %710 = arith.addf %708, %709 : vector<2x32xf32>
    %711 = tpu.concatenate %710, %673 in 1 : vector<2x32xf32>, vector<2x32xf32> -> vector<2x64xf32>
    %c0_151 = arith.constant 0 : index
    %c0_152 = arith.constant 0 : index
    %712 = vector.load %arg13[%c0_151, %c0_152] : memref<64x33xf32, #tpu.memory_space<vmem>>, vector<64x33xf32>
    %cst_153 = arith.constant dense<0.000000e+00> : vector<2x33xf32>
    %713 = tpu.matmul %711, %712, %cst_153 {dimension_numbers = #tpu.dot_dimension_numbers<[1], [0], [0], [1], [0, 0, 1, 1], [], []>} : vector<2x64xf32>, vector<64x33xf32>, vector<2x33xf32> -> vector<2x33xf32>
    %714 = vector.broadcast %317 : vector<1x33xf32> to vector<2x33xf32>
    %715 = arith.addf %713, %714 : vector<2x33xf32>
    %716 = vector.extract_strided_slice %715 {offsets = [0, 0], sizes = [2, 1], strides = [1, 1]} : vector<2x33xf32> to vector<2x1xf32>
    %717 = vector.broadcast %318 : vector<1x1xf32> to vector<2x1xf32>
    %718 = arith.mulf %653, %717 : vector<2x1xf32>
    %719 = arith.addf %716, %718 : vector<2x1xf32>
    %720 = vector.extract_strided_slice %715 {offsets = [0, 1], sizes = [2, 32], strides = [1, 1]} : vector<2x33xf32> to vector<2x32xf32>
    %721 = vector.extract_strided_slice %319 {offsets = [6, 0], sizes = [1, 6], strides = [1, 1]} : vector<8x6xf32> to vector<1x6xf32>
    %722 = vector.broadcast %719 : vector<2x1xf32> to vector<2x6xf32>
    %723 = vector.broadcast %721 : vector<1x6xf32> to vector<2x6xf32>
    %724 = arith.mulf %722, %723 : vector<2x6xf32>
    %725 = arith.addf %659, %724 : vector<2x6xf32>
    %726 = tpu.concatenate %720, %720, %720, %720, %720, %720, %720, %720, %720, %720 in 0 : vector<2x32xf32>, vector<2x32xf32>, vector<2x32xf32>, vector<2x32xf32>, vector<2x32xf32>, vector<2x32xf32>, vector<2x32xf32>, vector<2x32xf32>, vector<2x32xf32>, vector<2x32xf32> -> vector<20x32xf32>
    %727 = arith.addf %311, %726 : vector<20x32xf32>
    %728 = math.tanh %727 : vector<20x32xf32>
    %c0_154 = arith.constant 0 : index
    %c0_155 = arith.constant 0 : index
    %729 = vector.load %arg9[%c0_154, %c0_155] : memref<32x1xf32, #tpu.memory_space<vmem>>, vector<32x1xf32>
    %cst_156 = arith.constant dense<0.000000e+00> : vector<20x1xf32>
    %730 = tpu.matmul %728, %729, %cst_156 {dimension_numbers = #tpu.dot_dimension_numbers<[1], [0], [0], [1], [0, 0, 1, 1], [], []>} : vector<20x32xf32>, vector<32x1xf32>, vector<20x1xf32> -> vector<20x1xf32>
    %731 = math.exp %730 : vector<20x1xf32>
    %732 = vector.broadcast %731 : vector<20x1xf32> to vector<20x33xf32>
    %733 = arith.mulf %732, %313 : vector<20x33xf32>
    %cst_157 = arith.constant dense<0.000000e+00> : vector<2x33xf32>
    %734 = tpu.matmul %314, %733, %cst_157 {dimension_numbers = #tpu.dot_dimension_numbers<[1], [0], [0], [1], [0, 0, 1, 1], [], []>} : vector<2x20xf32>, vector<20x33xf32>, vector<2x33xf32> -> vector<2x33xf32>
    %735 = vector.extract_strided_slice %734 {offsets = [0, 32], sizes = [2, 1], strides = [1, 1]} : vector<2x33xf32> to vector<2x1xf32>
    %736 = tpu.reciprocal %735 {approx = true} : vector<2x1xf32> -> vector<2x1xf32>
    %737 = vector.extract_strided_slice %734 {offsets = [0, 0], sizes = [2, 32], strides = [1, 1]} : vector<2x33xf32> to vector<2x32xf32>
    %738 = vector.broadcast %736 : vector<2x1xf32> to vector<2x32xf32>
    %739 = arith.mulf %737, %738 : vector<2x32xf32>
    %740 = tpu.concatenate %739, %710 in 1 : vector<2x32xf32>, vector<2x32xf32> -> vector<2x64xf32>
    %c0_158 = arith.constant 0 : index
    %c0_159 = arith.constant 0 : index
    %741 = vector.load %arg11[%c0_158, %c0_159] : memref<64x192xf32, #tpu.memory_space<vmem>>, vector<64x192xf32>
    %cst_160 = arith.constant dense<0.000000e+00> : vector<2x192xf32>
    %742 = tpu.matmul %740, %741, %cst_160 {dimension_numbers = #tpu.dot_dimension_numbers<[1], [0], [0], [1], [0, 0, 1, 1], [], []>} : vector<2x64xf32>, vector<64x192xf32>, vector<2x192xf32> -> vector<2x192xf32>
    %743 = vector.broadcast %316 : vector<1x192xf32> to vector<2x192xf32>
    %744 = arith.addf %742, %743 : vector<2x192xf32>
    %745 = vector.extract_strided_slice %744 {offsets = [0, 0], sizes = [2, 96], strides = [1, 1]} : vector<2x192xf32> to vector<2x96xf32>
    %746 = vector.broadcast %719 : vector<2x1xf32> to vector<2x96xf32>
    %747 = vector.broadcast %315 : vector<1x96xf32> to vector<2x96xf32>
    %748 = arith.mulf %746, %747 : vector<2x96xf32>
    %749 = arith.addf %745, %748 : vector<2x96xf32>
    %750 = vector.extract_strided_slice %744 {offsets = [0, 96], sizes = [2, 96], strides = [1, 1]} : vector<2x192xf32> to vector<2x96xf32>
    %751 = vector.extract_strided_slice %749 {offsets = [0, 0], sizes = [2, 32], strides = [1, 1]} : vector<2x96xf32> to vector<2x32xf32>
    %752 = vector.extract_strided_slice %750 {offsets = [0, 0], sizes = [2, 32], strides = [1, 1]} : vector<2x96xf32> to vector<2x32xf32>
    %753 = arith.addf %751, %752 : vector<2x32xf32>
    %754 = arith.negf %753 : vector<2x32xf32>
    %755 = math.exp %754 : vector<2x32xf32>
    %cst_161 = arith.constant 1.000000e+00 : f32
    %756 = vector.broadcast %cst_161 : f32 to vector<2x32xf32>
    %757 = arith.addf %756, %755 : vector<2x32xf32>
    %758 = arith.divf %756, %757 : vector<2x32xf32>
    %759 = vector.extract_strided_slice %749 {offsets = [0, 32], sizes = [2, 32], strides = [1, 1]} : vector<2x96xf32> to vector<2x32xf32>
    %760 = vector.extract_strided_slice %750 {offsets = [0, 32], sizes = [2, 32], strides = [1, 1]} : vector<2x96xf32> to vector<2x32xf32>
    %761 = arith.addf %759, %760 : vector<2x32xf32>
    %762 = arith.negf %761 : vector<2x32xf32>
    %763 = math.exp %762 : vector<2x32xf32>
    %cst_162 = arith.constant 1.000000e+00 : f32
    %764 = vector.broadcast %cst_162 : f32 to vector<2x32xf32>
    %765 = arith.addf %764, %763 : vector<2x32xf32>
    %766 = arith.divf %764, %765 : vector<2x32xf32>
    %767 = vector.extract_strided_slice %749 {offsets = [0, 64], sizes = [2, 32], strides = [1, 1]} : vector<2x96xf32> to vector<2x32xf32>
    %768 = vector.extract_strided_slice %750 {offsets = [0, 64], sizes = [2, 32], strides = [1, 1]} : vector<2x96xf32> to vector<2x32xf32>
    %769 = arith.mulf %758, %768 : vector<2x32xf32>
    %770 = arith.addf %767, %769 : vector<2x32xf32>
    %771 = math.tanh %770 : vector<2x32xf32>
    %cst_163 = arith.constant 1.000000e+00 : f32
    %772 = vector.broadcast %cst_163 : f32 to vector<2x32xf32>
    %773 = arith.subf %772, %766 : vector<2x32xf32>
    %774 = arith.mulf %773, %771 : vector<2x32xf32>
    %775 = arith.mulf %766, %710 : vector<2x32xf32>
    %776 = arith.addf %774, %775 : vector<2x32xf32>
    %777 = tpu.concatenate %776, %739 in 1 : vector<2x32xf32>, vector<2x32xf32> -> vector<2x64xf32>
    %c0_164 = arith.constant 0 : index
    %c0_165 = arith.constant 0 : index
    %778 = vector.load %arg13[%c0_164, %c0_165] : memref<64x33xf32, #tpu.memory_space<vmem>>, vector<64x33xf32>
    %cst_166 = arith.constant dense<0.000000e+00> : vector<2x33xf32>
    %779 = tpu.matmul %777, %778, %cst_166 {dimension_numbers = #tpu.dot_dimension_numbers<[1], [0], [0], [1], [0, 0, 1, 1], [], []>} : vector<2x64xf32>, vector<64x33xf32>, vector<2x33xf32> -> vector<2x33xf32>
    %780 = vector.broadcast %317 : vector<1x33xf32> to vector<2x33xf32>
    %781 = arith.addf %779, %780 : vector<2x33xf32>
    %782 = vector.extract_strided_slice %781 {offsets = [0, 0], sizes = [2, 1], strides = [1, 1]} : vector<2x33xf32> to vector<2x1xf32>
    %783 = vector.broadcast %318 : vector<1x1xf32> to vector<2x1xf32>
    %784 = arith.mulf %719, %783 : vector<2x1xf32>
    %785 = arith.addf %782, %784 : vector<2x1xf32>
    %786 = vector.extract_strided_slice %319 {offsets = [7, 0], sizes = [1, 6], strides = [1, 1]} : vector<8x6xf32> to vector<1x6xf32>
    %787 = vector.broadcast %785 : vector<2x1xf32> to vector<2x6xf32>
    %788 = vector.broadcast %786 : vector<1x6xf32> to vector<2x6xf32>
    %789 = arith.mulf %787, %788 : vector<2x6xf32>
    %790 = arith.addf %725, %789 : vector<2x6xf32>
    %c0_167 = arith.constant 0 : index
    %c0_168 = arith.constant 0 : index
    %791 = vector.load %arg19[%c0_167, %c0_168] : memref<2x6xf32, #tpu.memory_space<vmem>>, vector<2x6xf32>
    tpu.vector_store %arg19[%c0_167, %c0_168], %790 {strides = array<i32>} : memref<2x6xf32, #tpu.memory_space<vmem>>, vector<2x6xf32>,
    return
  }
}

</mosaic_0001>

<bundles_post_ra>
// kernel: seq2seq_forward.1
= control target key start
LH: loop header
LB: loop body
LE: loop exit
PB: predicated region body
PF: predicated region fallthrough
CT: control target
= control target key end

     0   :  { %s7143_s0 = inlined_call_operand.vmem [shape: f32[20,4], index: 0, kind: input, shape index: {}]   ;;  %s7144_s1 = inlined_call_operand.vmem [shape: f32[2,1], index: 1, kind: input, shape index: {}]   ;;  %s7145_s2 = inlined_call_operand.vmem [shape: f32[4,96], index: 2, kind: input, shape index: {}]   ;;  %s7146_s3 = inlined_call_operand.vmem [shape: f32[32,96], index: 3, kind: input, shape index: {}]   ;;  %s7147_s4 = inlined_call_operand.vmem [shape: f32[1,96], index: 4, kind: input, shape index: {}]   ;;  %s7148_s5 = inlined_call_operand.vmem [shape: f32[1,96], index: 5, kind: input, shape index: {}]   ;;  %s7149_s6 = inlined_call_operand.vmem [shape: f32[32,32], index: 6, kind: input, shape index: {}]   ;;  %s7150_s7 = inlined_call_operand.vmem [shape: f32[32,32], index: 7, kind: input, shape index: {}]   ;;  %s7151_s8 = inlined_call_operand.vmem [shape: f32[1,32], index: 8, kind: input, shape index: {}]   ;;  %s7152_s9 = inlined_call_operand.vmem [shape: f32[32,1], index: 9, kind: input, shape index: {}]   ;;  %s7153_s10 = inlined_call_operand.vmem [shape: f32[1,96], index: 10, kind: input, shape index: {}]   ;;  %s7154_s11 = inlined_call_operand.vmem [shape: f32[64,192], index: 11, kind: input, shape index: {}]   ;;  %s7155_s12 = inlined_call_operand.vmem [shape: f32[1,192], index: 12, kind: input, shape index: {}]   ;;  %s7156_s13 = inlined_call_operand.vmem [shape: f32[64,33], index: 13, kind: input, shape index: {}]   ;;  %s7157_s14 = inlined_call_operand.vmem [shape: f32[1,33], index: 14, kind: input, shape index: {}]   ;;  %s7158_s15 = inlined_call_operand.<no memory space> [shape: f32[1,1], index: 15, kind: input, shape index: {}]   ;;  %s7159_s16 = inlined_call_operand.vmem [shape: f32[8,6], index: 16, kind: input, shape index: {}]   ;;  %s7160_s17 = inlined_call_operand.vmem [shape: f32[1,6], index: 17, kind: input, shape index: {}]   ;;  %s7161_s18 = inlined_call_operand.vmem [shape: f32[2,20], index: 18, kind: input, shape index: {}]   ;;  %s7162_s19 = inlined_call_operand.hbm [shape: f32[2,6], index: 19, kind: output, shape index: {}]  }
   0x1   :  { %7165 = sst [smem:[#allocation6_spill]] %s7143_s0  ;;  %v24_v0 = vstv %s7158_s15 }
   0x2   :  { %7166 = sst [smem:[#allocation7_spill]] %s7144_s1  ;;  %25 = vst [vmem:[#allocation2] sm:$0x1] %v24_v0 }
   0x3   :  { %7167 = sst [smem:[#allocation8_spill]] %s7145_s2 }
   0x4   :  { %7168 = sst [smem:[#allocation9_spill]] %s7146_s3 }
   0x5   :  { %s7169_s1 = sld [smem:[#allocation9_spill]]  ;;  %vm86_vm0 = vcmask 1043456   ;;  %v5594_v2 = vmov 0.0   ;;  %vm76_vm1 = vcmask 31744  }
   0x6   :  { %4835 = vmatprep.subr.mxu1 %v5594_v2  ;;  %4824 = vmatprep.subr.mxu0 %v5594_v2  ;;  %s7170_s15 = sld [smem:[#allocation8_spill]] }
   0x7   :  { %s7171_s26 = sld [smem:[#allocation6_spill]] }
   0xb   :  { %v5709_v1 = vld [vmem:[%s7169_s1 + $0x18] sm:$0xff]  ;;  %v5715_v3 = vld [vmem:[%s7169_s1 + $0x10] sm:$0xff] }
   0xc   :  { %v68_v4 = vld [vmem:[%s7170_s15] sm:$0xf]  ;;  %4836 = vmatpush3.msra.mxu1 %v5709_v1 }
   0xd   :  { %4825 = vmatpush3.msk.msra.mxu0 %vm86_vm0, %v68_v4  ;;  %v65_v5 = vld [vmem:[%s7171_s26] sm:$0xff] }
   0xe   :  { %26 = vsyncpa [#allocation4], 0  ;;  %4837 = vmatprep.subr.mxu1 %v5594_v2  ;;  %v5730_v6 = vld [vmem:[%s7169_s1 + $0x8] sm:$0xff]  ;;  %vm5595_vm2 = vmmov 0   ;;  %v5741_v7 = vld [vmem:[%s7169_s1] sm:$0xff]  ;;  %4846 = vmatprep.subr.mxu0 %v5594_v2  ;;  %s5596_s21 = smov 64  }
   0xf   :  { %4826 = vmatprep.mubr.msk.f32.mxu0 %vm5595_vm2, %v5594_v2  ;;  %4838 = vmatpush3.msra.mxu1 %v5715_v3  ;;  %v5773_v9 = vld [vmem:[%s7148_s5] ss:$0 sm:$0xff]  ;;  %v66_v25 = vld [vmem:[%s7171_s26 + $0x8] sm:$0xff]  ;;  %v67_v26 = vld [vmem:[%s7171_s26 + $0x10] sm:$0xf]  ;;  %s5597_s24 = smov 96  }
  0x10   :  { %4843 = vmatprep.mubr.msk.f32.mxu1 %vm5595_vm2, %v5594_v2  ;;  %4839 = vmatprep.subr.mxu1 %v5594_v2  ;;  %v5780_v14 = vld [vmem:[%s7147_s4] ss:$0 sm:$0xff]  ;;  %vm181_vm3 = vcmask 261120   ;;  %vm1226_vm4 = vcmask 1041408   ;;  %vm1229_vm5 = vcmask 1045504   ;;  %s7172_s20 = sld [smem:[#allocation7_spill]] }
  0x11   :  { %4827 = vmatmul.mubr.msk.f32.vlgmr.msra.gmra.mxu0 %vm76_vm1, %v65_v5  ;;  %4840 = vmatpush3.msra.mxu1 %v5730_v6  ;;  %vm1575_vm6 = vcmask 162816   ;;  %vm1688_vm7 = vcmask 523264   ;;  %s5600_s30 = smov 32   ;;  %vm4505_vm8 = vcmask 41984  }
  0x12   :  { %4841 = vmatprep.subr.mxu1 %v5594_v2  ;;  %4847 = vmatpush3.msra.mxu0 %v5709_v1 }
  0x13   :  { %4842 = vmatpush3.msra.mxu1 %v5741_v7  ;;  %4829 = vmatprep.mubr.msk.f32.mxu0 %vm5595_vm2, %v5594_v2 }
  0x14   :  { %4844 = vmatmul.mubr.f32.vlgmr.msra.gmra.mxu1 %v5594_v2  ;;  %4848 = vmatprep.subr.mxu0 %v5594_v2 }
  0x15   :  { %4849 = vmatpush3.msra.mxu0 %v5715_v3  ;;  %4857 = vmatprep.subr.mxu1 %v5594_v2 }
  0x16   :  { %4850 = vmatprep.subr.mxu0 %v5594_v2  ;;  %4858 = vmatpush3.msra.mxu1 %v5709_v1 }
  0x17   :  { %4851 = vmatpush3.msra.mxu0 %v5730_v6  ;;  %4859 = vmatprep.subr.mxu1 %v5594_v2 }
  0x18   :  { %4852 = vmatprep.subr.mxu0 %v5594_v2  ;;  %4860 = vmatpush3.msra.mxu1 %v5715_v3 }
  0x19   :  { %4853 = vmatpush3.msra.mxu0 %v5741_v7  ;;  %4861 = vmatprep.subr.mxu1 %v5594_v2 }
  0x1a   :  { %4862 = vmatpush3.msra.mxu1 %v5730_v6  ;;  %4865 = vmatprep.mubr.msk.f32.mxu1 %vm5595_vm2, %v5594_v2 }
  0x1b   :  { %4863 = vmatprep.subr.mxu1 %v5594_v2  ;;  %4868 = vmatprep.subr.mxu0 %v5594_v2 }
  0x1c   :  { %4864 = vmatpush3.msra.mxu1 %v5741_v7  ;;  %4830 = vmatmul.mubr.msk.f32.gmra.mxu0 %vm76_vm1, %v66_v25 }
  0x1d   :  { %4879 = vmatprep.subr.mxu1 %v5594_v2  ;;  %4832 = vmatprep.mubr.msk.f32.mxu0 %vm5595_vm2, %v5594_v2 }
  0x20   :  { %4833 = vmatmul.mubr.msk.f32.gmra.mxu0 %vm76_vm1, %v67_v26 }
  0x21   :  { %4854 = vmatprep.mubr.msk.f32.mxu0 %vm5595_vm2, %v5594_v2 }
  0xd1   :  { %v156_v8 = vpop.f32.mrf.mxu0 }
  0xd2   :  { %v5783_v15 = vadd.f32 %v5780_v14, %v156_v8 }
  0xd3   :  { %v4828_v10 = vpop.f32.mrf.mxu0 }
  0xd4   :  { %v251_v11 = vpop.f32.mrf.mxu1 }
  0xd5   :  { %v252_v12 = vadd.f32 %v5773_v9, %v251_v11 }
  0xd6   :  { %v4845_v13 = vpop.f32.mrf.mxu1 }
  0xd7   :  { %263 = vrot.lane.b32.xlu0 %v252_v12, %s5596_s21  ;;  %v255_v16 = vadd.f32 %v252_v12, %v5783_v15 }
  0xd9   :  { %v4527_v17 = vmul.f32 -1.442695, %v255_v16 }
  0xdb   :  { %5312 = vpow2.f32 %v4527_v17 }
  0xdc   :  { %v5805_v33 = vpop.f32.mrf.mxu0 }
  0xde   :  { %v4831_v34 = vpop.f32.mrf.mxu0 }
  0xe0   :  { %v5807_v35 = vpop.f32.mrf.mxu0 }
  0xe2   :  { %v4834_v36 = vpop.f32.mrf.mxu0 }
  0xe8   :  { %v5313_v18 = vpop.eup %5312 }
  0xe9   :  { %v259_v19 = vadd.f32 1.0, %v5313_v18 }
  0xeb   :  { %5314 = vrcp.f32 %v259_v19 }
  0xf8   :  { %v5315_v20 = vpop.eup %5314 }
  0xf9   :  { %v273_v28 = vsub.f32 1.0, %v5315_v20  ;;  %v279_v30 = vmul.f32 0.0, %v5315_v20 }
 0x149   :  { %v264_v21 = vpop.permute.xlu0 %263 }
 0x14a   :  { %v266_v22 = vmul.f32 %v5315_v20, %v264_v21 }
 0x14c   :  { %268 = vrot.lane.b32.xlu0 %v266_v22, %s5596_s21 }
 0x1be   :  { %v269_v23 = vpop.permute.xlu0 %268 }
 0x1bf   :  { %v271_v24 = vadd.f32 %v269_v23, %v5783_v15 }
 0x1c1   :  { %5316 = vtanh.f32 %v271_v24 }
 0x1ce   :  { %v5317_v27 = vpop.eup %5316 }
 0x1cf   :  { %275 = vrot.lane.b32.xlu1 %v5317_v27, %s5597_s24 }
 0x241   :  { %v276_v29 = vpop.permute.xlu1 %275 }
 0x242   :  { %v278_v31 = vmul.f32 %v276_v29, %v273_v28 }
 0x244   :  { %v5801_v32 = vadd.f32 %v279_v30, %v278_v31 }
 0x246   :  { %282 = vrot.lane.b32.xlu1 %v5801_v32, %s5597_s24  ;;  %v382_v53 = vrot.slane %v5801_v32, 6 }
 0x2b8   :  { %v283_v37 = vpop.permute.xlu1 %282 }
 0x2b9   :  { %4855 = vmatmul.mubr.msk.f32.vlgmr.msra.gmra.mxu0 %vm181_vm3, %v283_v37 }
 0x2ba   :  { %4869 = vmatpush3.msra.mxu0 %v5709_v1  ;;  %4876 = vmatprep.mubr.msk.f32.mxu0 %vm5595_vm2, %v5594_v2 }
 0x2bb   :  { %4870 = vmatprep.subr.mxu0 %v5594_v2 }
 0x2bc   :  { %4871 = vmatpush3.msra.mxu0 %v5715_v3 }
 0x2bd   :  { %4872 = vmatprep.subr.mxu0 %v5594_v2 }
 0x2be   :  { %4873 = vmatpush3.msra.mxu0 %v5730_v6 }
 0x2bf   :  { %4874 = vmatprep.subr.mxu0 %v5594_v2 }
 0x2c0   :  { %4875 = vmatpush3.msra.mxu0 %v5741_v7 }
 0x2c1   :  { %4890 = vmatprep.subr.mxu0 %v5594_v2 }
 0x379   :  { %v352_v38 = vpop.f32.mrf.mxu0 }
 0x37a   :  { %v353_v39 = vadd.f32 %v5773_v9, %v352_v38 }
 0x37b   :  { %v4856_v40 = vpop.f32.mrf.mxu0 }
 0x37c   :  { %v357_v41 = vrot.slane %v353_v39, 6 }
 0x37e   :  { %366 = vrot.lane.b32.xlu0 %v357_v41, %s5596_s21  ;;  %v359_v42 = vadd.f32 %v357_v41, %v5783_v15 }
 0x380   :  { %v4529_v43 = vmul.f32 -1.442695, %v359_v42 }
 0x382   :  { %5318 = vpow2.f32 %v4529_v43 }
 0x38f   :  { %v5319_v44 = vpop.eup %5318 }
 0x390   :  { %v363_v45 = vadd.f32 1.0, %v5319_v44 }
 0x392   :  { %5320 = vrcp.f32 %v363_v45 }
 0x39f   :  { %v5321_v46 = vpop.eup %5320 }
 0x3a0   :  { %v376_v52 = vsub.f32 1.0, %v5321_v46  ;;  %v384_v55 = vmul.f32 %v5321_v46, %v382_v53 }
 0x3f0   :  { %v367_v47 = vpop.permute.xlu0 %366 }
 0x3f1   :  { %v369_v48 = vmul.f32 %v5321_v46, %v367_v47 }
 0x3f3   :  { %371 = vrot.lane.b32.xlu1 %v369_v48, %s5596_s21 }
 0x465   :  { %v372_v49 = vpop.permute.xlu1 %371 }
 0x466   :  { %v374_v50 = vadd.f32 %v372_v49, %v5783_v15 }
 0x468   :  { %5322 = vtanh.f32 %v374_v50 }
 0x475   :  { %v5323_v51 = vpop.eup %5322 }
 0x476   :  { %378 = vrot.lane.b32.xlu0 %v5323_v51, %s5597_s24 }
 0x4e8   :  { %v379_v54 = vpop.permute.xlu0 %378 }
 0x4e9   :  { %v381_v56 = vmul.f32 %v379_v54, %v376_v52 }
 0x4eb   :  { %v385_v57 = vadd.f32 %v384_v55, %v381_v56  ;;  %v5885_v55 = vadd.f32 %v5780_v14, %v5805_v33 }
 0x4ed   :  { %v387_v58 = vrot.slane %v385_v57, 2  ;;  %v488_v19 = vrot.slane %v385_v57, 6  ;;  %v1227_v24 = vsel %vm1226_vm4, %v5801_v32, %v385_v57 }
 0x4ef   :  { %388 = vrot.lane.b32.xlu1 %v387_v58, %s5597_s24 }
 0x561   :  { %v389_v59 = vpop.permute.xlu1 %388 }
 0x562   :  { %4866 = vmatmul.mubr.msk.f32.vlgmr.msra.gmra.mxu1 %vm181_vm3, %v389_v59 }
 0x563   :  { %4880 = vmatpush3.msra.mxu1 %v5709_v1  ;;  %4887 = vmatprep.mubr.msk.f32.mxu1 %vm5595_vm2, %v5594_v2 }
 0x564   :  { %4881 = vmatprep.subr.mxu1 %v5594_v2 }
 0x565   :  { %4882 = vmatpush3.msra.mxu1 %v5715_v3 }
 0x566   :  { %4883 = vmatprep.subr.mxu1 %v5594_v2 }
 0x567   :  { %4884 = vmatpush3.msra.mxu1 %v5730_v6 }
 0x568   :  { %4885 = vmatprep.subr.mxu1 %v5594_v2 }
 0x569   :  { %4886 = vmatpush3.msra.mxu1 %v5741_v7 }
 0x56a   :  { %4901 = vmatprep.subr.mxu1 %v5594_v2 }
 0x622   :  { %v458_v60 = vpop.f32.mrf.mxu1 }
 0x623   :  { %v459_v61 = vadd.f32 %v5773_v9, %v458_v60 }
 0x624   :  { %v4867_v62 = vpop.f32.mrf.mxu1 }
 0x625   :  { %v463_v63 = vrot.slane %v459_v61, 4 }
 0x627   :  { %472 = vrot.lane.b32.xlu0 %v463_v63, %s5596_s21  ;;  %v465_v0 = vadd.f32 %v463_v63, %v5783_v15 }
 0x629   :  { %v4531_v4 = vmul.f32 -1.442695, %v465_v0 }
 0x62b   :  { %5324 = vpow2.f32 %v4531_v4 }
 0x638   :  { %v5325_v5 = vpop.eup %5324 }
 0x639   :  { %v469_v8 = vadd.f32 1.0, %v5325_v5 }
 0x63b   :  { %5326 = vrcp.f32 %v469_v8 }
 0x648   :  { %v5327_v10 = vpop.eup %5326 }
 0x649   :  { %v482_v18 = vsub.f32 1.0, %v5327_v10  ;;  %v490_v21 = vmul.f32 %v5327_v10, %v488_v19 }
 0x699   :  { %v473_v11 = vpop.permute.xlu0 %472 }
 0x69a   :  { %v475_v12 = vmul.f32 %v5327_v10, %v473_v11 }
 0x69c   :  { %477 = vrot.lane.b32.xlu1 %v475_v12, %s5596_s21 }
 0x70e   :  { %v478_v13 = vpop.permute.xlu1 %477 }
 0x70f   :  { %v480_v16 = vadd.f32 %v478_v13, %v5783_v15 }
 0x711   :  { %5328 = vtanh.f32 %v480_v16 }
 0x71e   :  { %v5329_v17 = vpop.eup %5328 }
 0x71f   :  { %484 = vrot.lane.b32.xlu0 %v5329_v17, %s5597_s24 }
 0x791   :  { %v485_v20 = vpop.permute.xlu0 %484 }
 0x792   :  { %v487_v22 = vmul.f32 %v485_v20, %v482_v18 }
 0x794   :  { %v491_v23 = vadd.f32 %v490_v21, %v487_v22 }
 0x796   :  { %v493_v25 = vrot.slane %v491_v23, 4  ;;  %v1228_v26 = vsel %vm86_vm0, %v1227_v24, %v491_v23  ;;  %v594_v45 = vrot.slane %v491_v23, 6 }
 0x798   :  { %494 = vrot.lane.b32.xlu1 %v493_v25, %s5597_s24 }
 0x80a   :  { %v495_v27 = vpop.permute.xlu1 %494 }
 0x80b   :  { %4877 = vmatmul.mubr.msk.f32.vlgmr.msra.gmra.mxu0 %vm181_vm3, %v495_v27 }
 0x80c   :  { %4891 = vmatpush3.msra.mxu0 %v5709_v1  ;;  %4898 = vmatprep.mubr.msk.f32.mxu0 %vm5595_vm2, %v5594_v2 }
 0x80d   :  { %4892 = vmatprep.subr.mxu0 %v5594_v2 }
 0x80e   :  { %4893 = vmatpush3.msra.mxu0 %v5715_v3 }
 0x80f   :  { %4894 = vmatprep.subr.mxu0 %v5594_v2 }
 0x810   :  { %4895 = vmatpush3.msra.mxu0 %v5730_v6 }
 0x811   :  { %4896 = vmatprep.subr.mxu0 %v5594_v2 }
 0x812   :  { %4897 = vmatpush3.msra.mxu0 %v5741_v7 }
 0x813   :  { %4912 = vmatprep.subr.mxu0 %v5594_v2 }
 0x8cb   :  { %v564_v28 = vpop.f32.mrf.mxu0 }
 0x8cc   :  { %v565_v29 = vadd.f32 %v5773_v9, %v564_v28 }
 0x8cd   :  { %v4878_v30 = vpop.f32.mrf.mxu0 }
 0x8ce   :  { %v569_v31 = vrot.slane %v565_v29, 2 }
 0x8d0   :  { %578 = vrot.lane.b32.xlu0 %v569_v31, %s5596_s21  ;;  %v571_v32 = vadd.f32 %v569_v31, %v5783_v15 }
 0x8d2   :  { %v4533_v34 = vmul.f32 -1.442695, %v571_v32 }
 0x8d4   :  { %5330 = vpow2.f32 %v4533_v34 }
 0x8e1   :  { %v5331_v36 = vpop.eup %5330 }
 0x8e2   :  { %v575_v37 = vadd.f32 1.0, %v5331_v36 }
 0x8e4   :  { %5332 = vrcp.f32 %v575_v37 }
 0x8f1   :  { %v5333_v38 = vpop.eup %5332 }
 0x8f2   :  { %v588_v44 = vsub.f32 1.0, %v5333_v38  ;;  %v596_v47 = vmul.f32 %v5333_v38, %v594_v45 }
 0x942   :  { %v579_v39 = vpop.permute.xlu0 %578 }
 0x943   :  { %v581_v40 = vmul.f32 %v5333_v38, %v579_v39 }
 0x945   :  { %583 = vrot.lane.b32.xlu1 %v581_v40, %s5596_s21 }
 0x9b7   :  { %v584_v41 = vpop.permute.xlu1 %583 }
 0x9b8   :  { %v586_v42 = vadd.f32 %v584_v41, %v5783_v15 }
 0x9ba   :  { %5334 = vtanh.f32 %v586_v42 }
 0x9c7   :  { %v5335_v43 = vpop.eup %5334 }
 0x9c8   :  { %590 = vrot.lane.b32.xlu0 %v5335_v43, %s5597_s24 }
 0xa3a   :  { %v591_v46 = vpop.permute.xlu0 %590 }
 0xa3b   :  { %v593_v48 = vmul.f32 %v591_v46, %v588_v44 }
 0xa3d   :  { %v597_v49 = vadd.f32 %v596_v47, %v593_v48 }
 0xa3f   :  { %v599_v50 = vrot.slane %v597_v49, 6  ;;  %v5867_v51 = vsel %vm1229_vm5, %v1228_v26, %v597_v49 }
 0xa41   :  { %600 = vrot.lane.b32.xlu1 %v599_v50, %s5597_s24 }
 0xab3   :  { %v601_v52 = vpop.permute.xlu1 %600 }
 0xab4   :  { %4888 = vmatmul.mubr.msk.f32.vlgmr.msra.gmra.mxu1 %vm181_vm3, %v601_v52 }
 0xab5   :  { %4902 = vmatpush3.msra.mxu1 %v5709_v1  ;;  %4909 = vmatprep.mubr.msk.f32.mxu1 %vm5595_vm2, %v5594_v2 }
 0xab6   :  { %4903 = vmatprep.subr.mxu1 %v5594_v2 }
 0xab7   :  { %4904 = vmatpush3.msra.mxu1 %v5715_v3 }
 0xab8   :  { %4905 = vmatprep.subr.mxu1 %v5594_v2 }
 0xab9   :  { %4906 = vmatpush3.msra.mxu1 %v5730_v6 }
 0xaba   :  { %4907 = vmatprep.subr.mxu1 %v5594_v2 }
 0xabb   :  { %4908 = vmatpush3.msra.mxu1 %v5741_v7 }
 0xabc   :  { %4923 = vmatprep.subr.mxu1 %v5594_v2 }
 0xb74   :  { %v670_v15 = vpop.f32.mrf.mxu1 }
 0xb75   :  { %v671_v53 = vadd.f32 %v5773_v9, %v670_v15 }
 0xb76   :  { %v4889_v54 = vpop.f32.mrf.mxu1 }
 0xb77   :  { %682 = vrot.lane.b32.xlu0 %v671_v53, %s5596_s21  ;;  %v674_v56 = vadd.f32 %v671_v53, %v5885_v55 }
 0xb79   :  { %v4535_v57 = vmul.f32 -1.442695, %v674_v56 }
 0xb7b   :  { %5336 = vpow2.f32 %v4535_v57 }
 0xb88   :  { %v5337_v58 = vpop.eup %5336 }
 0xb89   :  { %v678_v59 = vadd.f32 1.0, %v5337_v58 }
 0xb8b   :  { %5338 = vrcp.f32 %v678_v59 }
 0xb98   :  { %v5339_v60 = vpop.eup %5338 }
 0xb99   :  { %v692_v33 = vsub.f32 1.0, %v5339_v60  ;;  %v699_v8 = vmul.f32 %v5339_v60, %v599_v50 }
 0xbe9   :  { %v683_v61 = vpop.permute.xlu0 %682 }
 0xbea   :  { %v685_v62 = vmul.f32 %v5339_v60, %v683_v61 }
 0xbec   :  { %687 = vrot.lane.b32.xlu1 %v685_v62, %s5596_s21 }
 0xc5e   :  { %v688_v63 = vpop.permute.xlu1 %687 }
 0xc5f   :  { %v690_v0 = vadd.f32 %v688_v63, %v5885_v55 }
 0xc61   :  { %5340 = vtanh.f32 %v690_v0 }
 0xc6e   :  { %v5341_v4 = vpop.eup %5340 }
 0xc6f   :  { %694 = vrot.lane.b32.xlu0 %v5341_v4, %s5597_s24 }
 0xce1   :  { %v695_v5 = vpop.permute.xlu0 %694 }
 0xce2   :  { %v697_v10 = vmul.f32 %v695_v5, %v692_v33 }
 0xce4   :  { %v5891_v11 = vadd.f32 %v699_v8, %v697_v10 }
 0xce6   :  { %702 = vrot.lane.b32.xlu1 %v5891_v11, %s5597_s24  ;;  %v802_v30 = vrot.slane %v5891_v11, 6 }
 0xd58   :  { %v703_v12 = vpop.permute.xlu1 %702 }
 0xd59   :  { %4899 = vmatmul.mubr.msk.f32.vlgmr.msra.gmra.mxu0 %vm181_vm3, %v703_v12 }
 0xd5a   :  { %4913 = vmatpush3.msra.mxu0 %v5709_v1  ;;  %4920 = vmatprep.mubr.msk.f32.mxu0 %vm5595_vm2, %v5594_v2 }
 0xd5b   :  { %4914 = vmatprep.subr.mxu0 %v5594_v2 }
 0xd5c   :  { %4915 = vmatpush3.msra.mxu0 %v5715_v3 }
 0xd5d   :  { %4916 = vmatprep.subr.mxu0 %v5594_v2 }
 0xd5e   :  { %4917 = vmatpush3.msra.mxu0 %v5730_v6 }
 0xd5f   :  { %4918 = vmatprep.subr.mxu0 %v5594_v2 }
 0xd60   :  { %4919 = vmatpush3.msra.mxu0 %v5741_v7 }
 0xd61   :  { %4934 = vmatprep.subr.mxu0 %v5594_v2 }
 0xe19   :  { %v772_v13 = vpop.f32.mrf.mxu0 }
 0xe1a   :  { %v773_v16 = vadd.f32 %v5773_v9, %v772_v13 }
 0xe1b   :  { %v4900_v17 = vpop.f32.mrf.mxu0 }
 0xe1c   :  { %v777_v18 = vrot.slane %v773_v16, 6 }
 0xe1e   :  { %786 = vrot.lane.b32.xlu0 %v777_v18, %s5596_s21  ;;  %v779_v19 = vadd.f32 %v777_v18, %v5885_v55 }
 0xe20   :  { %v4537_v20 = vmul.f32 -1.442695, %v779_v19 }
 0xe22   :  { %5342 = vpow2.f32 %v4537_v20 }
 0xe2f   :  { %v5343_v21 = vpop.eup %5342 }
 0xe30   :  { %v783_v22 = vadd.f32 1.0, %v5343_v21 }
 0xe32   :  { %5344 = vrcp.f32 %v783_v22 }
 0xe3f   :  { %v5345_v23 = vpop.eup %5344 }
 0xe40   :  { %v796_v29 = vsub.f32 1.0, %v5345_v23  ;;  %v804_v32 = vmul.f32 %v5345_v23, %v802_v30 }
 0xe90   :  { %v787_v24 = vpop.permute.xlu0 %786 }
 0xe91   :  { %v789_v25 = vmul.f32 %v5345_v23, %v787_v24 }
 0xe93   :  { %791 = vrot.lane.b32.xlu1 %v789_v25, %s5596_s21 }
 0xf05   :  { %v792_v26 = vpop.permute.xlu1 %791 }
 0xf06   :  { %v794_v27 = vadd.f32 %v792_v26, %v5885_v55 }
 0xf08   :  { %5346 = vtanh.f32 %v794_v27 }
 0xf15   :  { %v5347_v28 = vpop.eup %5346 }
 0xf16   :  { %798 = vrot.lane.b32.xlu0 %v5347_v28, %s5597_s24  ;;  %v167_v28 = vadd.f32 %v5780_v14, %v5807_v35 }
 0xf88   :  { %v799_v31 = vpop.permute.xlu0 %798 }
 0xf89   :  { %v801_v34 = vmul.f32 %v799_v31, %v796_v29 }
 0xf8b   :  { %v805_v36 = vadd.f32 %v804_v32, %v801_v34 }
 0xf8d   :  { %v807_v37 = vrot.slane %v805_v36, 2  ;;  %v908_v54 = vrot.slane %v805_v36, 6  ;;  %v1231_v60 = vsel %vm1226_vm4, %v5891_v11, %v805_v36 }
 0xf8f   :  { %808 = vrot.lane.b32.xlu1 %v807_v37, %s5597_s24 }
0x1001   :  { %v809_v38 = vpop.permute.xlu1 %808 }
0x1002   :  { %4910 = vmatmul.mubr.msk.f32.vlgmr.msra.gmra.mxu1 %vm181_vm3, %v809_v38 }
0x1003   :  { %4924 = vmatpush3.msra.mxu1 %v5709_v1  ;;  %4931 = vmatprep.mubr.msk.f32.mxu1 %vm5595_vm2, %v5594_v2 }
0x1004   :  { %4925 = vmatprep.subr.mxu1 %v5594_v2 }
0x1005   :  { %4926 = vmatpush3.msra.mxu1 %v5715_v3 }
0x1006   :  { %4927 = vmatprep.subr.mxu1 %v5594_v2 }
0x1007   :  { %4928 = vmatpush3.msra.mxu1 %v5730_v6 }
0x1008   :  { %4929 = vmatprep.subr.mxu1 %v5594_v2 }
0x1009   :  { %4930 = vmatpush3.msra.mxu1 %v5741_v7 }
0x100a   :  { %4945 = vmatprep.subr.mxu1 %v5594_v2 }
0x10c2   :  { %v878_v39 = vpop.f32.mrf.mxu1 }
0x10c3   :  { %v879_v40 = vadd.f32 %v5773_v9, %v878_v39 }
0x10c4   :  { %v4911_v41 = vpop.f32.mrf.mxu1 }
0x10c5   :  { %v883_v42 = vrot.slane %v879_v40, 4 }
0x10c7   :  { %892 = vrot.lane.b32.xlu0 %v883_v42, %s5596_s21  ;;  %v885_v43 = vadd.f32 %v883_v42, %v5885_v55 }
0x10c9   :  { %v4539_v44 = vmul.f32 -1.442695, %v885_v43 }
0x10cb   :  { %5348 = vpow2.f32 %v4539_v44 }
0x10d8   :  { %v5349_v45 = vpop.eup %5348 }
0x10d9   :  { %v889_v46 = vadd.f32 1.0, %v5349_v45 }
0x10db   :  { %5350 = vrcp.f32 %v889_v46 }
0x10e8   :  { %v5351_v47 = vpop.eup %5350 }
0x10e9   :  { %v902_v53 = vsub.f32 1.0, %v5351_v47  ;;  %v910_v57 = vmul.f32 %v5351_v47, %v908_v54 }
0x1139   :  { %v893_v48 = vpop.permute.xlu0 %892 }
0x113a   :  { %v895_v49 = vmul.f32 %v5351_v47, %v893_v48 }
0x113c   :  { %897 = vrot.lane.b32.xlu1 %v895_v49, %s5596_s21 }
0x11ae   :  { %v898_v50 = vpop.permute.xlu1 %897 }
0x11af   :  { %v900_v52 = vadd.f32 %v898_v50, %v5885_v55 }
0x11b1   :  { %5352 = vtanh.f32 %v900_v52 }
0x11be   :  { %v5353_v15 = vpop.eup %5352 }
0x11bf   :  { %904 = vrot.lane.b32.xlu0 %v5353_v15, %s5597_s24 }
0x1231   :  { %v905_v56 = vpop.permute.xlu0 %904 }
0x1232   :  { %v907_v58 = vmul.f32 %v905_v56, %v902_v53 }
0x1234   :  { %v911_v59 = vadd.f32 %v910_v57, %v907_v58  ;;  %v1238_v57 = vld [vmem:[%s7149_s6 + $0x18] sm:$0xff] }
0x1236   :  { %v913_v61 = vrot.slane %v911_v59, 4  ;;  %v1232_v62 = vsel %vm86_vm0, %v1231_v60, %v911_v59  ;;  %v1014_v18 = vrot.slane %v911_v59, 6  ;;  %v1236_v60 = vld [vmem:[%s7149_s6 + $0x8] sm:$0xff] }
0x1238   :  { %914 = vrot.lane.b32.xlu1 %v913_v61, %s5597_s24  ;;  %v1235_v61 = vld [vmem:[%s7149_s6] sm:$0xff] }
0x12aa   :  { %v915_v63 = vpop.permute.xlu1 %914 }
0x12ab   :  { %4921 = vmatmul.mubr.msk.f32.vlgmr.msra.gmra.mxu0 %vm181_vm3, %v915_v63  ;;  %v1357_v63 = vld [vmem:[%s7150_s7 + $0x10] sm:$0xff] }
0x12ac   :  { %4935 = vmatpush3.msra.mxu0 %v5709_v1  ;;  %4942 = vmatprep.mubr.msk.f32.mxu0 %vm5595_vm2, %v5594_v2 }
0x12ad   :  { %4936 = vmatprep.subr.mxu0 %v5594_v2 }
0x12ae   :  { %4937 = vmatpush3.msra.mxu0 %v5715_v3 }
0x12af   :  { %4938 = vmatprep.subr.mxu0 %v5594_v2 }
0x12b0   :  { %4939 = vmatpush3.msra.mxu0 %v5730_v6 }
0x12b1   :  { %4940 = vmatprep.subr.mxu0 %v5594_v2 }
0x12b2   :  { %4941 = vmatpush3.msra.mxu0 %v5741_v7 }
0x12b3   :  { %4962 = vmatprep.subr.mxu0 %v5594_v2 }
0x136b   :  { %v984_v0 = vpop.f32.mrf.mxu0 }
0x136c   :  { %v985_v1 = vadd.f32 %v5773_v9, %v984_v0 }
0x136d   :  { %v4922_v4 = vpop.f32.mrf.mxu0 }
0x136e   :  { %v989_v33 = vrot.slane %v985_v1, 2  ;;  %v1356_v1 = vld [vmem:[%s7150_s7 + $0x8] sm:$0xff]  ;;  %v1355_v4 = vld [vmem:[%s7150_s7] sm:$0xff] }
0x1370   :  { %998 = vrot.lane.b32.xlu0 %v989_v33, %s5596_s21  ;;  %v991_v5 = vadd.f32 %v989_v33, %v5885_v55 }
0x1372   :  { %v4541_v3 = vmul.f32 -1.442695, %v991_v5 }
0x1374   :  { %5354 = vpow2.f32 %v4541_v3 }
0x1381   :  { %v5355_v8 = vpop.eup %5354 }
0x1382   :  { %v995_v10 = vadd.f32 1.0, %v5355_v8 }
0x1384   :  { %5356 = vrcp.f32 %v995_v10 }
0x1391   :  { %v5357_v6 = vpop.eup %5356 }
0x1392   :  { %v1008_v17 = vsub.f32 1.0, %v5357_v6  ;;  %v1016_v20 = vmul.f32 %v5357_v6, %v1014_v18  ;;  %v6041_v18 = vld [vmem:[%s7152_s9 + $0x18] sm:$0xff] }
0x13e2   :  { %v999_v11 = vpop.permute.xlu0 %998 }
0x13e3   :  { %v1001_v12 = vmul.f32 %v5357_v6, %v999_v11 }
0x13e5   :  { %1003 = vrot.lane.b32.xlu1 %v1001_v12, %s5596_s21 }
0x1457   :  { %v1004_v7 = vpop.permute.xlu1 %1003 }
0x1458   :  { %v1006_v13 = vadd.f32 %v1004_v7, %v5885_v55 }
0x145a   :  { %5358 = vtanh.f32 %v1006_v13 }
0x1467   :  { %v5359_v16 = vpop.eup %5358 }
0x1468   :  { %1010 = vrot.lane.b32.xlu0 %v5359_v16, %s5597_s24 }
0x14da   :  { %v1011_v19 = vpop.permute.xlu0 %1010 }
0x14db   :  { %v1013_v21 = vmul.f32 %v1011_v19, %v1008_v17  ;;  %v6046_v19 = vld [vmem:[%s7152_s9 + $0x10] sm:$0xff] }
0x14dd   :  { %v1017_v22 = vadd.f32 %v1016_v20, %v1013_v21  ;;  %v6053_v21 = vld [vmem:[%s7152_s9 + $0x8] sm:$0xff] }
0x14df   :  { %v1019_v23 = vrot.slane %v1017_v22, 6  ;;  %v5953_v24 = vsel %vm1229_vm5, %v1232_v62, %v1017_v22  ;;  %v1358_v62 = vld [vmem:[%s7150_s7 + $0x18] sm:$0xff]  ;;  %v6060_v22 = vld [vmem:[%s7152_s9] sm:$0xff] }
0x14e1   :  { %1020 = vrot.lane.b32.xlu1 %v1019_v23, %s5597_s24 }
0x1553   :  { %v1021_v25 = vpop.permute.xlu1 %1020 }
0x1554   :  { %4932 = vmatmul.mubr.msk.f32.vlgmr.msra.gmra.mxu1 %vm181_vm3, %v1021_v25 }
0x1555   :  { %4953 = vmatprep.mubr.msk.f32.mxu1 %vm5595_vm2, %v5594_v2  ;;  %4946 = vmatpush3.msra.mxu1 %v1238_v57 }
0x1556   :  { %4947 = vmatprep.subr.mxu1 %v5594_v2 }
0x1614   :  { %v1090_v55 = vpop.f32.mrf.mxu1 }
0x1615   :  { %v1091_v26 = vadd.f32 %v5773_v9, %v1090_v55 }
0x1616   :  { %v4933_v27 = vpop.f32.mrf.mxu1 }
0x1617   :  { %1102 = vrot.lane.b32.xlu0 %v1091_v26, %s5596_s21  ;;  %v1094_v29 = vadd.f32 %v1091_v26, %v167_v28 }
0x1619   :  { %v4543_v30 = vmul.f32 -1.442695, %v1094_v29 }
0x161b   :  { %5360 = vpow2.f32 %v4543_v30 }
0x1628   :  { %v5361_v31 = vpop.eup %5360 }
0x1629   :  { %v1098_v32 = vadd.f32 1.0, %v5361_v31 }
0x162b   :  { %5362 = vrcp.f32 %v1098_v32 }
0x1638   :  { %v5363_v34 = vpop.eup %5362 }
0x1639   :  { %v1112_v41 = vsub.f32 1.0, %v5363_v34  ;;  %v1119_v14 = vmul.f32 %v5363_v34, %v1019_v23  ;;  %v4550_v23 = vld [vmem:[%s7151_s8] ss:$0 sm:$0xff] }
0x1689   :  { %v1103_v36 = vpop.permute.xlu0 %1102 }
0x168a   :  { %v1105_v37 = vmul.f32 %v5363_v34, %v1103_v36 }
0x168c   :  { %1107 = vrot.lane.b32.xlu1 %v1105_v37, %s5596_s21 }
0x16fe   :  { %v1108_v38 = vpop.permute.xlu1 %1107 }
0x16ff   :  { %v1110_v39 = vadd.f32 %v1108_v38, %v167_v28 }
0x1701   :  { %5364 = vtanh.f32 %v1110_v39 }
0x170e   :  { %v5365_v40 = vpop.eup %5364 }
0x170f   :  { %1114 = vrot.lane.b32.xlu0 %v5365_v40, %s5597_s24 }
0x1781   :  { %v1115_v42 = vpop.permute.xlu0 %1114 }
0x1782   :  { %v1117_v35 = vmul.f32 %v1115_v42, %v1112_v41 }
0x1784   :  { %v1120_v43 = vadd.f32 %v1119_v14, %v1117_v35  ;;  %v5598_v35 = vmov 0  }
0x1785   :  { %5297 = vset.pattern.permute.xlu0 %v5598_v35  ;;  %5298 = vset.pattern.permute.xlu1 %v5598_v35 }
0x1786   :  { %1122 = vrot.lane.b32.xlu1 %v1120_v43, %s5597_s24  ;;  %v1222_v5 = vrot.slane %v1120_v43, 6 }
0x17f8   :  { %v1123_v44 = vpop.permute.xlu1 %1122 }
0x17f9   :  { %4943 = vmatmul.mubr.msk.f32.vlgmr.msra.gmra.mxu0 %vm181_vm3, %v1123_v44 }
0x17fa   :  { %4970 = vmatprep.mubr.msk.f32.mxu0 %vm5595_vm2, %v5594_v2  ;;  %4963 = vmatpush3.msra.mxu0 %v1358_v62 }
0x17fb   :  { %4964 = vmatprep.subr.mxu0 %v5594_v2 }
0x17fc   :  { %4965 = vmatpush3.msra.mxu0 %v1357_v63 }
0x17fd   :  { %4966 = vmatprep.subr.mxu0 %v5594_v2 }
0x17fe   :  { %4967 = vmatpush3.msra.mxu0 %v1356_v1  ;;  %v6116_v1 = vld [vmem:[%s7161_s18] sm:$0x3] }
0x17ff   :  { %4968 = vmatprep.subr.mxu0 %v5594_v2 }
0x1800   :  { %4969 = vmatpush3.msra.mxu0 %v1355_v4  ;;  %v5599_v4 = vmov 32  }
0x1801   :  { %4990 = vmatprep.subr.mxu0 %v5594_v2 }
0x18b9   :  { %v1192_v45 = vpop.f32.mrf.mxu0 }
0x18ba   :  { %v1193_v46 = vadd.f32 %v5773_v9, %v1192_v45  ;;  %v1237_v9 = vld [vmem:[%s7149_s6 + $0x10] sm:$0xff] }
0x18bb   :  { %v4944_v47 = vpop.f32.mrf.mxu0  ;;  %4948 = vmatpush3.msra.mxu1 %v1237_v9 }
0x18bc   :  { %v1197_v48 = vrot.slane %v1193_v46, 6  ;;  %4949 = vmatprep.subr.mxu1 %v5594_v2 }
0x18bd   :  { %4950 = vmatpush3.msra.mxu1 %v1236_v60 }
0x18be   :  { %1206 = vrot.lane.b32.xlu0 %v1197_v48, %s5596_s21  ;;  %v1199_v49 = vadd.f32 %v1197_v48, %v167_v28  ;;  %4951 = vmatprep.subr.mxu1 %v5594_v2 }
0x18bf   :  { %4952 = vmatpush3.msra.mxu1 %v1235_v61 }
0x18c0   :  { %v4545_v50 = vmul.f32 -1.442695, %v1199_v49  ;;  %4973 = vmatprep.subr.mxu1 %v5594_v2 }
0x18c2   :  { %5366 = vpow2.f32 %v4545_v50 }
0x18cf   :  { %v5367_v52 = vpop.eup %5366 }
0x18d0   :  { %v1203_v15 = vadd.f32 1.0, %v5367_v52 }
0x18d2   :  { %5368 = vrcp.f32 %v1203_v15 }
0x18df   :  { %v5369_v53 = vpop.eup %5368 }
0x18e0   :  { %v1216_v33 = vsub.f32 1.0, %v5369_v53  ;;  %v1224_v8 = vmul.f32 %v5369_v53, %v1222_v5  ;;  %v6131_v5 = vld [vmem:[%s7154_s11 + $0x70] sm:$0xff] }
0x1930   :  { %v1207_v54 = vpop.permute.xlu0 %1206 }
0x1931   :  { %v1209_v56 = vmul.f32 %v5369_v53, %v1207_v54  ;;  %v6093_v53 = vld [vmem:[%s7172_s20] sm:$0x3]  ;;  %s5601_s20 = smov 127  }
0x1933   :  { %1211 = vrot.lane.b32.xlu1 %v1209_v56, %s5596_s21 }
0x19a5   :  { %v1212_v58 = vpop.permute.xlu1 %1211 }
0x19a6   :  { %v1214_v59 = vadd.f32 %v1212_v58, %v167_v28 }
0x19a8   :  { %5370 = vtanh.f32 %v1214_v59 }
0x19b5   :  { %v5371_v0 = vpop.eup %5370 }
0x19b6   :  { %1218 = vrot.lane.b32.xlu0 %v5371_v0, %s5597_s24 }
0x19ba   :  { %1242 = vrot.lane.b32.xlu0 %v5867_v51, %s5597_s24 }
0x1a28   :  { %v1219_v3 = vpop.permute.xlu0 %1218 }
0x1a29   :  { %v1221_v10 = vmul.f32 %v1219_v3, %v1216_v33  ;;  %v6126_v33 = vld [vmem:[%s7154_s11 + $0x78] sm:$0xff]  ;;  %v6136_v3 = vld [vmem:[%s7154_s11 + $0x68] sm:$0xff] }
0x1a2b   :  { %v1225_v6 = vadd.f32 %v1224_v8, %v1221_v10  ;;  %v6142_v8 = vld [vmem:[%s7154_s11 + $0x60] sm:$0xff]  ;;  %v6148_v10 = vld [vmem:[%s7154_s11 + $0x58] sm:$0xff] }
0x1a2c   :  { %v6007_v11 = vpop.permute.xlu0 %1242 }
0x1a2d   :  { %4954 = vmatmul.mubr.msk.f32.vlgmr.msra.gmra.mxu1 %vm181_vm3, %v6007_v11  ;;  %v1234_v51 = vsel %vm1226_vm4, %v1120_v43, %v1225_v6  ;;  %v6012_v12 = vrot.slane %v1225_v6, 2  ;;  %v6109_v62 = vsel %vm181_vm3, %v6007_v11, 1.0  ;;  %v6154_v6 = vld [vmem:[%s7154_s11 + $0x50] sm:$0xff]  ;;  %v6160_v11 = vld [vmem:[%s7154_s11 + $0x48] sm:$0xff] }
0x1a2e   :  { %1246 = vrot.lane.b32.xlu0 %v1234_v51, %s5597_s24  ;;  %4956 = vmatprep.mubr.msk.f32.mxu1 %vm5595_vm2, %v5594_v2  ;;  %v6166_v51 = vld [vmem:[%s7154_s11 + $0x40] sm:$0xff] }
0x1a2f   :  { %1368 = vrot.lane.b32.xlu1 %v6012_v12, %s5597_s24  ;;  %4974 = vmatpush3.msra.mxu1 %v6041_v18 }
0x1a30   :  { %4975 = vmatprep.subr.mxu1 %v5594_v2 }
0x1a31   :  { %4976 = vmatpush3.msra.mxu1 %v6046_v19 }
0x1a32   :  { %4977 = vmatprep.subr.mxu1 %v5594_v2 }
0x1a33   :  { %1244 = vrot.lane.b32.xlu1 %v5953_v24, %s5597_s24  ;;  %4978 = vmatpush3.msra.mxu1 %v6053_v21 }
0x1a34   :  { %4979 = vmatprep.subr.mxu1 %v5594_v2 }
0x1a35   :  { %4980 = vmatpush3.msra.mxu1 %v6060_v22 }
0x1a36   :  { %4999 = vmatprep.subr.mxu1 %v5594_v2 }
0x1aa0   :  { %v6030_v16 = vpop.permute.xlu0 %1246 }
0x1aa1   :  { %v1369_v7 = vpop.permute.xlu1 %1368  ;;  %v6098_v57 = vsel %vm181_vm3, %v6030_v16, 1.0 }
0x1aa2   :  { %4971 = vmatmul.mubr.msk.f32.vlgmr.msra.gmra.mxu0 %vm181_vm3, %v1369_v7  ;;  %v6172_v7 = vld [vmem:[%s7154_s11 + $0x38] sm:$0xff] }
0x1aa3   :  { %4996 = vmatprep.mubr.msk.f32.mxu0 %vm5595_vm2, %v5594_v2 }
0x1aa5   :  { %v6024_v13 = vpop.permute.xlu1 %1244 }
0x1aa6   :  { %4957 = vmatmul.mubr.msk.f32.gmra.mxu1 %vm181_vm3, %v6024_v13  ;;  %v6103_v60 = vsel %vm181_vm3, %v6024_v13, 1.0  ;;  %v6178_v13 = vld [vmem:[%s7154_s11 + $0x30] sm:$0xff] }
0x1aa7   :  { %4959 = vmatprep.mubr.msk.f32.mxu1 %vm5595_vm2, %v5594_v2 }
0x1aaa   :  { %4960 = vmatmul.mubr.msk.f32.gmra.mxu1 %vm181_vm3, %v6030_v16  ;;  %v6184_v16 = vld [vmem:[%s7154_s11 + $0x28] sm:$0xff] }
0x1aab   :  { %4981 = vmatprep.mubr.msk.f32.mxu1 %vm5595_vm2, %v5594_v2 }
0x1aed   :  { %v6036_v17 = vpop.f32.mrf.mxu1 }
0x1aef   :  { %v4955_v20 = vpop.f32.mrf.mxu1 }
0x1af0   :  { %v6190_v20 = vld [vmem:[%s7154_s11 + $0x20] sm:$0xff] }
0x1b62   :  { %v1438_v24 = vpop.f32.mrf.mxu0 }
0x1b63   :  { %v1439_v25 = vadd.f32 %v4550_v23, %v1438_v24  ;;  %v6196_v23 = vld [vmem:[%s7154_s11 + $0x18] sm:$0xff] }
0x1b64   :  { %v4972_v55 = vpop.f32.mrf.mxu0 }
0x1b65   :  { %v1443_v26 = vrot.slane %v1439_v25, 6  ;;  %v1445_v27 = vrot.slane %v1439_v25, 4  ;;  %v1447_v29 = vrot.slane %v1439_v25, 2  ;;  %v6204_v55 = vld [vmem:[%s7154_s11 + $0x10] sm:$0xff] }
0x1b66   :  { %v6069_v28 = vpop.f32.mrf.mxu1 }
0x1b67   :  { %v1449_v30 = vsel %vm1226_vm4, %v1439_v25, %v1443_v26  ;;  %v6210_v26 = vld [vmem:[%s7154_s11 + $0x8] sm:$0xff] }
0x1b68   :  { %v1450_v31 = vsel %vm86_vm0, %v1449_v30, %v1445_v27  ;;  %v4958_v32 = vpop.f32.mrf.mxu1  ;;  %v6216_v27 = vld [vmem:[%s7154_s11] sm:$0xff] }
0x1b69   :  { %v1451_v34 = vsel %vm1229_vm5, %v1450_v31, %v1447_v29 }
0x1b6a   :  { %v1452_v36 = vadd.f32 %v1451_v34, %v6036_v17  ;;  %v6075_v37 = vpop.f32.mrf.mxu1  ;;  %v1453_v38 = vadd.f32 %v1451_v34, %v6069_v28  ;;  %v1678_v34 = vlaneseq }
0x1b6b   :  { %v1454_v40 = vadd.f32 %v1449_v30, %v6075_v37 }
0x1b6c   :  { %5372 = vtanh.f32 %v1452_v36  ;;  %v4961_v39 = vpop.f32.mrf.mxu1  ;;  %v6237_v36 = vshrl.u32 %v1678_v34, 7  ;;  %v6298_v34 = vld [vmem:[%s7156_s13 + $0x10] sm:$0xff] }
0x1b6d   :  { %5374 = vtanh.f32 %v1453_v38  ;;  %v1342_v39 = vld [vmem:[%s7155_s12] sm:$0x3] }
0x1b6e   :  { %5376 = vtanh.f32 %v1454_v40  ;;  %v1680_v38 = vsub.s32 0, %v6237_v36  ;;  %v1684_v40 = vsub.s32 1, %v6237_v36 }
0x1b79   :  { %v5373_v41 = vpop.eup %5372 }
0x1b7a   :  { %4982 = vmatmul.mubr.msk.f32.vlgmr.msra.gmra.mxu1 %vm181_vm3, %v5373_v41  ;;  %v5375_v42 = vpop.eup %5374  ;;  %v6244_v41 = vrot.slane %v1342_v39, %v1680_v38  ;;  %v6306_v38 = vld [vmem:[%s7156_s13 + $0x8] sm:$0xff] }
0x1b7b   :  { %4984 = vmatprep.mubr.msk.f32.mxu1 %vm5595_vm2, %v5594_v2  ;;  %v5377_v14 = vpop.eup %5376 }
0x1b7e   :  { %4985 = vmatmul.mubr.msk.f32.gmra.mxu1 %vm181_vm3, %v5375_v42  ;;  %v6248_v42 = vrot.slane %v1342_v39, %v1684_v40 }
0x1b7f   :  { %4987 = vmatprep.mubr.msk.f32.mxu1 %vm5595_vm2, %v5594_v2 }
0x1b82   :  { %4988 = vmatmul.mubr.msk.f32.gmra.mxu1 %vm181_vm3, %v5377_v14 }
0x1b83   :  { %5015 = vmatprep.mubr.msk.f32.mxu1 %vm5595_vm2, %v5594_v2 }
0x1c3a   :  { %v1537_v43 = vpop.f32.mrf.mxu1 }
0x1c3b   :  { %v1551_v52 = vmul.f32 1.442695, %v1537_v43 }
0x1c3c   :  { %v4983_v44 = vpop.f32.mrf.mxu1 }
0x1c3e   :  { %v1542_v45 = vpop.f32.mrf.mxu1 }
0x1c3f   :  { %v1553_v46 = vmul.f32 1.442695, %v1542_v45 }
0x1c40   :  { %v4986_v47 = vpop.f32.mrf.mxu1 }
0x1c41   :  { %5378 = vpow2.f32 %v1553_v46  ;;  %v6258_v46 = vld [vmem:[%s7153_s10] ss:$0 sm:$0xff] }
0x1c42   :  { %v1547_v48 = vpop.f32.mrf.mxu1 }
0x1c43   :  { %v1555_v49 = vmul.f32 1.442695, %v1547_v48 }
0x1c44   :  { %v4989_v50 = vpop.f32.mrf.mxu1 }
0x1c45   :  { %5380 = vpow2.f32 %v1555_v49 }
0x1c46   :  { %5382 = vpow2.f32 %v1551_v52 }
0x1c4e   :  { %v5379_v15 = vpop.eup %5378 }
0x1c4f   :  { %1564 = vperm.xlu0 %5297, %v5379_v15  }
0x1c52   :  { %v5381_v54 = vpop.eup %5380 }
0x1c53   :  { %1569 = vperm.xlu1 %5298, %v5381_v54   ;;  %1765 = vperm.xlu0 %5297, %v6093_v53   ;;  %v5383_v56 = vpop.eup %5382 }
0x1c57   :  { %1559 = vperm.xlu1 %5298, %v5383_v56  }
0x1c5b   :  { %5299 = vset.pattern.permute.xlu1 %v5599_v4 }
0x1cca   :  { %v1565_v9 = vpop.permute.xlu0 %1564 }
0x1ccb   :  { %v1573_v61 = vmul.f32 %v1565_v9, %v6103_v60 }
0x1cce   :  { %v1570_v58 = vpop.permute.xlu1 %1569  ;;  %v1766_v47 = vpop.permute.xlu0 %1765 }
0x1ccf   :  { %v1574_v59 = vmul.f32 %v1570_v58, %v6098_v57  ;;  %v1774_v48 = vmul.f32 %v6258_v46, %v1766_v47  ;;  %v6317_v47 = vld [vmem:[%s7156_s13] sm:$0xff] }
0x1cd1   :  { %4991 = vmatpush3.msk.msra.mxu0 %vm86_vm0, %v1574_v59 }
0x1cd2   :  { %4992 = vmatprep.subr.mxu0 %v5594_v2  ;;  %v1560_v63 = vpop.permute.xlu1 %1559 }
0x1cd3   :  { %v1572_v0 = vmul.f32 %v1560_v63, %v6109_v62  ;;  %4993 = vmatpush3.msra.mxu0 %v1573_v61 }
0x1cd4   :  { %4994 = vmatprep.subr.mxu0 %v5594_v2 }
0x1cd5   :  { %4995 = vmatpush3.msra.mxu0 %v1572_v0  ;;  %v6265_v0 = vld [vmem:[%s7156_s13 + $0x38] sm:$0xff] }
0x1cd6   :  { %4997 = vmatmul.mubr.msk.f32.vlgmr.msra.gmra.mxu0 %vm1575_vm6, %v6116_v1  ;;  %1708 = vmatprep.subr.mxu0 %v6126_v33 }
0x1cd7   :  { %1756 = vmatprep.mubr.f32.mxu0 %v5594_v2  ;;  %1709 = vmatpush1.msra.mxu0 %v6131_v5 }
0x1cd8   :  { %1710 = vmatprep.subr.mxu0 %v6136_v3  ;;  %5000 = vmatpush3.msra.mxu1 %v6265_v0 }
0x1cd9   :  { %1711 = vmatpush1.msra.mxu0 %v6142_v8  ;;  %5001 = vmatprep.subr.mxu1 %v5594_v2 }
0x1cda   :  { %1712 = vmatprep.subr.mxu0 %v6148_v10 }
0x1cdb   :  { %1713 = vmatpush1.msra.mxu0 %v6154_v6 }
0x1cdc   :  { %1714 = vmatprep.subr.mxu0 %v6160_v11 }
0x1cdd   :  { %1715 = vmatpush1.msra.mxu0 %v6166_v51 }
0x1cde   :  { %1716 = vmatprep.subr.mxu0 %v6172_v7 }
0x1cdf   :  { %1717 = vmatpush1.msra.mxu0 %v6178_v13 }
0x1ce0   :  { %1718 = vmatprep.subr.mxu0 %v6184_v16 }
0x1ce1   :  { %1719 = vmatpush1.msra.mxu0 %v6190_v20 }
0x1ce2   :  { %1720 = vmatprep.subr.mxu0 %v6196_v23 }
0x1ce3   :  { %1721 = vmatpush1.msra.mxu0 %v6204_v55 }
0x1ce4   :  { %1722 = vmatprep.subr.mxu0 %v6210_v26 }
0x1ce5   :  { %1723 = vmatpush1.msra.mxu0 %v6216_v27 }
0x1ce6   :  { %5018 = vmatprep.subr.mxu0 %v5594_v2 }
0x1d96   :  { %v1648_v24 = vpop.f32.mrf.mxu0 }
0x1d97   :  { %5384 = vrcp.f32 %v1648_v24 }
0x1d98   :  { %v4998_v25 = vpop.f32.mrf.mxu0 }
0x1d99   :  { %v6277_v25 = vld [vmem:[%s7156_s13 + $0x28] sm:$0xff] }
0x1da4   :  { %v5385_v29 = vpop.eup %5384 }
0x1da5   :  { %1655 = vperm.xlu1 %5299, %v5385_v29   ;;  %v6284_v29 = vld [vmem:[%s7156_s13 + $0x20] sm:$0xff] }
0x1da9   :  { %5300 = vset.pattern.permute.xlu1 %v5598_v35 }
0x1e20   :  { %v1656_v30 = vpop.permute.xlu1 %1655 }
0x1e21   :  { %v6221_v31 = vmul.f32 %v1656_v30, %v1648_v24  ;;  %v6270_v24 = vld [vmem:[%s7156_s13 + $0x30] sm:$0xff]  ;;  %v6291_v30 = vld [vmem:[%s7156_s13 + $0x18] sm:$0xff] }
0x1e22   :  { %5002 = vmatpush3.msra.mxu1 %v6270_v24 }
0x1e23   :  { %v1660_v32 = vsel %vm181_vm3, %v6221_v31, %v6012_v12  ;;  %5003 = vmatprep.subr.mxu1 %v5594_v2 }
0x1e24   :  { %4557 = vmatmul.mubr.msk.f32.vlgmr.msra.gmra.mxu0 %vm1688_vm7, %v1660_v32  ;;  %5004 = vmatpush3.msra.mxu1 %v6277_v25 }
0x1e25   :  { %5019 = vmatpush3.msra.mxu0 %v6041_v18  ;;  %5026 = vmatprep.mubr.msk.f32.mxu0 %vm5595_vm2, %v5594_v2 }
0x1e26   :  { %5020 = vmatprep.subr.mxu0 %v5594_v2  ;;  %5005 = vmatprep.subr.mxu1 %v5594_v2 }
0x1e27   :  { %5021 = vmatpush3.msra.mxu0 %v6046_v19  ;;  %5006 = vmatpush3.msra.mxu1 %v6284_v29 }
0x1e28   :  { %5022 = vmatprep.subr.mxu0 %v5594_v2  ;;  %5007 = vmatprep.subr.mxu1 %v5594_v2 }
0x1e29   :  { %5023 = vmatpush3.msra.mxu0 %v6053_v21  ;;  %5008 = vmatpush3.msra.mxu1 %v6291_v30 }
0x1e2a   :  { %5024 = vmatprep.subr.mxu0 %v5594_v2  ;;  %5009 = vmatprep.subr.mxu1 %v5594_v2 }
0x1e2b   :  { %5025 = vmatpush3.msra.mxu0 %v6060_v22  ;;  %5010 = vmatpush3.msra.mxu1 %v6298_v34 }
0x1e2c   :  { %5044 = vmatprep.subr.mxu0 %v5594_v2  ;;  %5011 = vmatprep.subr.mxu1 %v5594_v2 }
0x1e2d   :  { %5012 = vmatpush3.msra.mxu1 %v6306_v38 }
0x1e2e   :  { %5013 = vmatprep.subr.mxu1 %v5594_v2 }
0x1e2f   :  { %5014 = vmatpush3.msra.mxu1 %v6317_v47 }
0x1e30   :  { %5035 = vmatprep.subr.mxu1 %v5594_v2 }
0x1ee4   :  { %v1758_v14 = vpop.f32.mrf.mxu0 }
0x1ee5   :  { %v1759_v43 = vadd.f32 %v1758_v14, %v6244_v41 }
0x1ee6   :  { %v1760_v44 = vpop.f32.mrf.mxu0 }
0x1ee7   :  { %v1761_v45 = vadd.f32 %v1760_v44, %v6248_v42  ;;  %1777 = vrot.lane.b32.xlu1 %v1759_v43, %s5600_s30  ;;  %v1775_v49 = vadd.f32 %v1774_v48, %v1759_v43 }
0x1ee9   :  { %1798 = vrot.lane.b32.xlu0 %v1761_v45, %s5597_s24 }
0x1eed   :  { %1788 = vrot.lane.b32.xlu0 %v1761_v45, %s5600_s30 }
0x1f59   :  { %v1778_v50 = vpop.permute.xlu1 %1777 }
0x1f5a   :  { %v1780_v52 = vadd.f32 %v1778_v50, %v1775_v49 }
0x1f5b   :  { %v1799_v58 = vpop.permute.xlu0 %1798 }
0x1f5c   :  { %v4559_v15 = vmul.f32 -1.442695, %v1780_v52 }
0x1f5e   :  { %5386 = vpow2.f32 %v4559_v15 }
0x1f5f   :  { %v1789_v39 = vpop.permute.xlu0 %1788 }
0x1f60   :  { %v1791_v14 = vadd.f32 %v1789_v39, %v1775_v49 }
0x1f62   :  { %v4560_v43 = vmul.f32 -1.442695, %v1791_v14 }
0x1f6b   :  { %v5387_v54 = vpop.eup %5386 }
0x1f6c   :  { %v1784_v56 = vadd.f32 1.0, %v5387_v54 }
0x1f6e   :  { %5388 = vrcp.f32 %v1784_v56 }
0x1f7b   :  { %v5389_v9 = vpop.eup %5388 }
0x1f7c   :  { %v1801_v59 = vmul.f32 %v5389_v9, %v1799_v58  ;;  %v6333_v58 = vld [vmem:[%s7157_s14] ss:$0 sm:$0xff] }
0x1f7e   :  { %1803 = vrot.lane.b32.xlu1 %v1801_v59, %s5596_s21 }
0x1ff0   :  { %v1804_v61 = vpop.permute.xlu1 %1803 }
0x1ff1   :  { %v1806_v63 = vadd.f32 %v1804_v61, %v1775_v49 }
0x1ff3   :  { %5390 = vtanh.f32 %v1806_v63 }
0x1ff4   :  { %5392 = vpow2.f32 %v4560_v43 }
0x2000   :  { %v5391_v32 = vpop.eup %5390 }
0x2001   :  { %1810 = vrot.lane.b32.xlu1 %v5391_v32, %s5597_s24  ;;  %v5393_v44 = vpop.eup %5392 }
0x2002   :  { %v1795_v45 = vadd.f32 1.0, %v5393_v44 }
0x2004   :  { %5394 = vrcp.f32 %v1795_v45 }
0x2005   :  { %1821 = vrot.lane.b32.xlu1 %v6221_v31, %s5600_s30 }
0x2011   :  { %v5395_v31 = vpop.eup %5394 }
0x2012   :  { %v1808_v48 = vsub.f32 1.0, %v5395_v31  ;;  %v1814_v52 = vmul.f32 %v5395_v31, %v6012_v12 }
0x2073   :  { %v1811_v50 = vpop.permute.xlu1 %1810 }
0x2074   :  { %v1813_v49 = vmul.f32 %v1811_v50, %v1808_v48 }
0x2076   :  { %v6322_v15 = vadd.f32 %v1814_v52, %v1813_v49 }
0x2077   :  { %v1822_v54 = vpop.permute.xlu1 %1821 }
0x2078   :  { %1817 = vrot.lane.b32.xlu0 %v6322_v15, %s5597_s24 }
0x20ea   :  { %v1818_v56 = vpop.permute.xlu0 %1817 }
0x20eb   :  { %v1824_v9 = vsel %vm181_vm3, %v1818_v56, %v1822_v54 }
0x20ec   :  { %5016 = vmatmul.mubr.msk.f32.vlgmr.msra.gmra.mxu1 %vm1688_vm7, %v1824_v9 }
0x20ed   :  { %5041 = vmatprep.mubr.msk.f32.mxu1 %vm5595_vm2, %v5594_v2 }
0x21ac   :  { %v1908_v12 = vpop.f32.mrf.mxu1 }
0x21ad   :  { %v6336_v59 = vadd.f32 %v6333_v58, %v1908_v12 }
0x21ae   :  { %v5017_v61 = vpop.f32.mrf.mxu1 }
0x21af   :  { %v1932_v63 = vrot.slane %v6336_v59, 6  ;;  %v1934_v32 = vrot.slane %v6336_v59, 4  ;;  %v1936_v14 = vrot.slane %v6336_v59, 2 }
0x21b1   :  { %v1938_v39 = vsel %vm1226_vm4, %v6336_v59, %v1932_v63 }
0x21b2   :  { %1945 = vrot.lane.b32.xlu1 %v1938_v39, %s5601_s20  ;;  %v1939_v43 = vsel %vm86_vm0, %v1938_v39, %v1934_v32 }
0x21b3   :  { %v1940_v44 = vsel %vm1229_vm5, %v1939_v43, %v1936_v14 }
0x21b4   :  { %1943 = vrot.lane.b32.xlu0 %v1940_v44, %s5601_s20 }
0x2224   :  { %v1946_v50 = vpop.permute.xlu1 %1945 }
0x2225   :  { %v1951_v52 = vadd.f32 %v1946_v50, %v6075_v37 }
0x2226   :  { %v1944_v45 = vpop.permute.xlu0 %1943 }
0x2227   :  { %v1949_v31 = vadd.f32 %v1944_v45, %v6036_v17  ;;  %v1950_v48 = vadd.f32 %v1944_v45, %v6069_v28 }
0x2229   :  { %5396 = vtanh.f32 %v1949_v31 }
0x222a   :  { %5398 = vtanh.f32 %v1950_v48  ;;  %v6375_v48 = vld [vmem:[#allocation2] ss:$0 sm:$0xff] }
0x222b   :  { %5400 = vtanh.f32 %v1951_v52  ;;  %v1918_v50 = vmul.f32 %v6375_v48, %v6093_v53 }
0x2236   :  { %v5397_v49 = vpop.eup %5396 }
0x2237   :  { %5027 = vmatmul.mubr.msk.f32.vlgmr.msra.gmra.mxu0 %vm181_vm3, %v5397_v49  ;;  %v5399_v54 = vpop.eup %5398  ;;  %v6381_v49 = vadd.f32 %v1918_v50, %v6336_v59 }
0x2238   :  { %5029 = vmatprep.mubr.msk.f32.mxu0 %vm5595_vm2, %v5594_v2  ;;  %5045 = vmatpush3.msra.mxu0 %v6265_v0  ;;  %v5401_v56 = vpop.eup %5400 }
0x2239   :  { %5046 = vmatprep.subr.mxu0 %v5594_v2 }
0x223a   :  { %5047 = vmatpush3.msra.mxu0 %v6270_v24 }
0x223b   :  { %5030 = vmatmul.mubr.msk.f32.gmra.mxu0 %vm181_vm3, %v5399_v54  ;;  %5048 = vmatprep.subr.mxu0 %v5594_v2 }
0x223c   :  { %5032 = vmatprep.mubr.msk.f32.mxu0 %vm5595_vm2, %v5594_v2  ;;  %5049 = vmatpush3.msra.mxu0 %v6277_v25 }
0x223d   :  { %5050 = vmatprep.subr.mxu0 %v5594_v2 }
0x223e   :  { %5051 = vmatpush3.msra.mxu0 %v6284_v29 }
0x223f   :  { %5033 = vmatmul.mubr.msk.f32.gmra.mxu0 %vm181_vm3, %v5401_v56  ;;  %5052 = vmatprep.subr.mxu0 %v5594_v2 }
0x2240   :  { %5053 = vmatpush3.msra.mxu0 %v6291_v30  ;;  %5060 = vmatprep.mubr.msk.f32.mxu0 %vm5595_vm2, %v5594_v2 }
0x2241   :  { %5054 = vmatprep.subr.mxu0 %v5594_v2 }
0x2242   :  { %5055 = vmatpush3.msra.mxu0 %v6298_v34 }
0x2243   :  { %5056 = vmatprep.subr.mxu0 %v5594_v2 }
0x2244   :  { %5057 = vmatpush3.msra.mxu0 %v6306_v38 }
0x2245   :  { %5058 = vmatprep.subr.mxu0 %v5594_v2 }
0x2246   :  { %5059 = vmatpush3.msra.mxu0 %v6317_v47 }
0x2247   :  { %5080 = vmatprep.subr.mxu0 %v5594_v2 }
0x22f7   :  { %v2030_v9 = vpop.f32.mrf.mxu0 }
0x22f8   :  { %v2044_v44 = vmul.f32 1.442695, %v2030_v9 }
0x22f9   :  { %v5028_v12 = vpop.f32.mrf.mxu0 }
0x22fb   :  { %v2035_v61 = vpop.f32.mrf.mxu0 }
0x22fc   :  { %v2046_v63 = vmul.f32 1.442695, %v2035_v61 }
0x22fd   :  { %v5031_v32 = vpop.f32.mrf.mxu0 }
0x22fe   :  { %5402 = vpow2.f32 %v2046_v63 }
0x22ff   :  { %v2040_v39 = vpop.f32.mrf.mxu0 }
0x2300   :  { %v2048_v14 = vmul.f32 1.442695, %v2040_v39 }
0x2301   :  { %v5034_v43 = vpop.f32.mrf.mxu0 }
0x2302   :  { %5404 = vpow2.f32 %v2048_v14 }
0x2303   :  { %5406 = vpow2.f32 %v2044_v44 }
0x230b   :  { %v5403_v45 = vpop.eup %5402 }
0x230c   :  { %2057 = vperm.xlu1 %5300, %v5403_v45  }
0x230f   :  { %v5405_v31 = vpop.eup %5404 }
0x2310   :  { %2062 = vperm.xlu0 %5297, %v5405_v31   ;;  %5301 = vset.pattern.permute.xlu1 %v5599_v4  ;;  %v5407_v52 = vpop.eup %5406 }
0x2314   :  { %2052 = vperm.xlu0 %5297, %v5407_v52  }
0x2318   :  { %1922 = vperm.xlu0 %5297, %v6381_v49  }
0x2387   :  { %v2058_v54 = vpop.permute.xlu1 %2057 }
0x2388   :  { %v2066_v12 = vmul.f32 %v2058_v54, %v6103_v60 }
0x238b   :  { %v2063_v56 = vpop.permute.xlu0 %2062 }
0x238c   :  { %v2067_v9 = vmul.f32 %v2063_v56, %v6098_v57 }
0x238e   :  { %5036 = vmatpush3.msk.msra.mxu1 %vm86_vm0, %v2067_v9 }
0x238f   :  { %5037 = vmatprep.subr.mxu1 %v5594_v2  ;;  %v2053_v61 = vpop.permute.xlu0 %2052 }
0x2390   :  { %v2065_v53 = vmul.f32 %v2053_v61, %v6109_v62  ;;  %5038 = vmatpush3.msra.mxu1 %v2066_v12 }
0x2391   :  { %5039 = vmatprep.subr.mxu1 %v5594_v2 }
0x2392   :  { %5040 = vmatpush3.msra.mxu1 %v2065_v53 }
0x2393   :  { %5042 = vmatmul.mubr.msk.f32.vlgmr.msra.gmra.mxu1 %vm1575_vm6, %v6116_v1  ;;  %2168 = vmatprep.subr.mxu1 %v6126_v33  ;;  %v6429_v52 = vpop.permute.xlu0 %1922 }
0x2394   :  { %2169 = vmatpush1.msra.mxu1 %v6131_v5  ;;  %2216 = vmatprep.mubr.f32.mxu1 %v5594_v2  ;;  %v2223_v54 = vmul.f32 %v6258_v46, %v6429_v52 }
0x2395   :  { %2170 = vmatprep.subr.mxu1 %v6136_v3 }
0x2396   :  { %2171 = vmatpush1.msra.mxu1 %v6142_v8 }
0x2397   :  { %2172 = vmatprep.subr.mxu1 %v6148_v10 }
0x2398   :  { %2173 = vmatpush1.msra.mxu1 %v6154_v6 }
0x2399   :  { %2174 = vmatprep.subr.mxu1 %v6160_v11 }
0x239a   :  { %2175 = vmatpush1.msra.mxu1 %v6166_v51 }
0x239b   :  { %2176 = vmatprep.subr.mxu1 %v6172_v7 }
0x239c   :  { %2177 = vmatpush1.msra.mxu1 %v6178_v13 }
0x239d   :  { %2178 = vmatprep.subr.mxu1 %v6184_v16 }
0x239e   :  { %2179 = vmatpush1.msra.mxu1 %v6190_v20 }
0x239f   :  { %2180 = vmatprep.subr.mxu1 %v6196_v23 }
0x23a0   :  { %2181 = vmatpush1.msra.mxu1 %v6204_v55 }
0x23a1   :  { %2182 = vmatprep.subr.mxu1 %v6210_v26 }
0x23a2   :  { %2183 = vmatpush1.msra.mxu1 %v6216_v27 }
0x23a3   :  { %5063 = vmatprep.subr.mxu1 %v5594_v2 }
0x2453   :  { %v2137_v59 = vpop.f32.mrf.mxu1 }
0x2454   :  { %5408 = vrcp.f32 %v2137_v59 }
0x2455   :  { %v5043_v63 = vpop.f32.mrf.mxu1 }
0x2461   :  { %v5409_v32 = vpop.eup %5408 }
0x2462   :  { %2144 = vperm.xlu1 %5301, %v5409_v32  }
0x2466   :  { %5302 = vset.pattern.permute.xlu1 %v5598_v35 }
0x24dd   :  { %v2145_v39 = vpop.permute.xlu1 %2144 }
0x24de   :  { %v2147_v14 = vmul.f32 %v2145_v39, %v2137_v59 }
0x24e0   :  { %v2148_v43 = vsel %vm181_vm3, %v2147_v14, %v6322_v15 }
0x24e1   :  { %4569 = vmatmul.mubr.msk.f32.vlgmr.msra.gmra.mxu1 %vm1688_vm7, %v2148_v43 }
0x24e2   :  { %5064 = vmatpush3.msra.mxu1 %v6041_v18  ;;  %5071 = vmatprep.mubr.msk.f32.mxu1 %vm5595_vm2, %v5594_v2 }
0x24e3   :  { %5065 = vmatprep.subr.mxu1 %v5594_v2 }
0x24e4   :  { %5066 = vmatpush3.msra.mxu1 %v6046_v19 }
0x24e5   :  { %5067 = vmatprep.subr.mxu1 %v5594_v2 }
0x24e6   :  { %5068 = vmatpush3.msra.mxu1 %v6053_v21 }
0x24e7   :  { %5069 = vmatprep.subr.mxu1 %v5594_v2 }
0x24e8   :  { %5070 = vmatpush3.msra.mxu1 %v6060_v22 }
0x24e9   :  { %5089 = vmatprep.subr.mxu1 %v5594_v2 }
0x25a1   :  { %v2218_v44 = vpop.f32.mrf.mxu1 }
0x25a2   :  { %v2219_v45 = vadd.f32 %v2218_v44, %v6244_v41 }
0x25a3   :  { %v2220_v31 = vpop.f32.mrf.mxu1 }
0x25a4   :  { %v2221_v50 = vadd.f32 %v2220_v31, %v6248_v42  ;;  %2226 = vrot.lane.b32.xlu1 %v2219_v45, %s5600_s30  ;;  %v2224_v56 = vadd.f32 %v2223_v54, %v2219_v45 }
0x25a6   :  { %2247 = vrot.lane.b32.xlu0 %v2221_v50, %s5597_s24 }
0x25aa   :  { %2237 = vrot.lane.b32.xlu0 %v2221_v50, %s5600_s30 }
0x2616   :  { %v2227_v9 = vpop.permute.xlu1 %2226 }
0x2617   :  { %v2229_v12 = vadd.f32 %v2227_v9, %v2224_v56 }
0x2618   :  { %v2248_v32 = vpop.permute.xlu0 %2247 }
0x2619   :  { %v4570_v61 = vmul.f32 -1.442695, %v2229_v12 }
0x261b   :  { %5410 = vpow2.f32 %v4570_v61 }
0x261c   :  { %v2238_v45 = vpop.permute.xlu0 %2237 }
0x261d   :  { %v2240_v50 = vadd.f32 %v2238_v45, %v2224_v56 }
0x261f   :  { %v4571_v54 = vmul.f32 -1.442695, %v2240_v50 }
0x2628   :  { %v5411_v53 = vpop.eup %5410 }
0x2629   :  { %v2233_v59 = vadd.f32 1.0, %v5411_v53 }
0x262b   :  { %5412 = vrcp.f32 %v2233_v59 }
0x2638   :  { %v5413_v63 = vpop.eup %5412 }
0x2639   :  { %v2250_v39 = vmul.f32 %v5413_v63, %v2248_v32 }
0x263b   :  { %2252 = vrot.lane.b32.xlu1 %v2250_v39, %s5596_s21 }
0x26ad   :  { %v2253_v43 = vpop.permute.xlu1 %2252 }
0x26ae   :  { %v2255_v44 = vadd.f32 %v2253_v43, %v2224_v56 }
0x26b0   :  { %5414 = vtanh.f32 %v2255_v44 }
0x26b1   :  { %5416 = vpow2.f32 %v4571_v54 }
0x26bd   :  { %v5415_v31 = vpop.eup %5414 }
0x26be   :  { %2259 = vrot.lane.b32.xlu1 %v5415_v31, %s5597_s24  ;;  %v5417_v9 = vpop.eup %5416 }
0x26bf   :  { %v2244_v12 = vadd.f32 1.0, %v5417_v9 }
0x26c1   :  { %5418 = vrcp.f32 %v2244_v12 }
0x26c2   :  { %2270 = vrot.lane.b32.xlu1 %v2147_v14, %s5600_s30 }
0x26ce   :  { %v5419_v61 = vpop.eup %5418 }
0x26cf   :  { %v2257_v53 = vsub.f32 1.0, %v5419_v61  ;;  %v2263_v63 = vmul.f32 %v5419_v61, %v6322_v15 }
0x2730   :  { %v2260_v59 = vpop.permute.xlu1 %2259 }
0x2731   :  { %v2262_v32 = vmul.f32 %v2260_v59, %v2257_v53 }
0x2733   :  { %v6437_v39 = vadd.f32 %v2263_v63, %v2262_v32 }
0x2734   :  { %v2271_v43 = vpop.permute.xlu1 %2270 }
0x2735   :  { %2266 = vrot.lane.b32.xlu0 %v6437_v39, %s5597_s24 }
0x27a7   :  { %v2267_v14 = vpop.permute.xlu0 %2266 }
0x27a8   :  { %v2273_v56 = vsel %vm181_vm3, %v2267_v14, %v2271_v43 }
0x27a9   :  { %5061 = vmatmul.mubr.msk.f32.vlgmr.msra.gmra.mxu0 %vm1688_vm7, %v2273_v56 }
0x27aa   :  { %5086 = vmatprep.mubr.msk.f32.mxu0 %vm5595_vm2, %v5594_v2 }
0x2869   :  { %v2343_v44 = vpop.f32.mrf.mxu0 }
0x286a   :  { %v6446_v31 = vadd.f32 %v6333_v58, %v2343_v44 }
0x286b   :  { %v5062_v15 = vpop.f32.mrf.mxu0 }
0x286c   :  { %v2361_v45 = vrot.slane %v6446_v31, 6  ;;  %v2363_v50 = vrot.slane %v6446_v31, 4  ;;  %v2365_v9 = vrot.slane %v6446_v31, 2 }
0x286e   :  { %v2367_v54 = vsel %vm1226_vm4, %v6446_v31, %v2361_v45 }
0x286f   :  { %2374 = vrot.lane.b32.xlu1 %v2367_v54, %s5601_s20  ;;  %v2368_v12 = vsel %vm86_vm0, %v2367_v54, %v2363_v50 }
0x2870   :  { %v2369_v61 = vsel %vm1229_vm5, %v2368_v12, %v2365_v9 }
0x2871   :  { %2372 = vrot.lane.b32.xlu0 %v2369_v61, %s5601_s20 }
0x28e1   :  { %v2375_v32 = vpop.permute.xlu1 %2374 }
0x28e2   :  { %v2380_v43 = vadd.f32 %v2375_v32, %v6075_v37 }
0x28e3   :  { %v2373_v53 = vpop.permute.xlu0 %2372 }
0x28e4   :  { %v2378_v59 = vadd.f32 %v2373_v53, %v6036_v17  ;;  %v2379_v63 = vadd.f32 %v2373_v53, %v6069_v28 }
0x28e6   :  { %5420 = vtanh.f32 %v2378_v59 }
0x28e7   :  { %5422 = vtanh.f32 %v2379_v63 }
0x28e8   :  { %5424 = vtanh.f32 %v2380_v43 }
0x28f3   :  { %v5421_v14 = vpop.eup %5420 }
0x28f4   :  { %5072 = vmatmul.mubr.msk.f32.vlgmr.msra.gmra.mxu1 %vm181_vm3, %v5421_v14  ;;  %v5423_v56 = vpop.eup %5422  ;;  %v2347_v14 = vmul.f32 %v6375_v48, %v6381_v49 }
0x28f5   :  { %5074 = vmatprep.mubr.msk.f32.mxu1 %vm5595_vm2, %v5594_v2  ;;  %5090 = vmatpush3.msra.mxu1 %v6265_v0  ;;  %v5425_v44 = vpop.eup %5424 }
0x28f6   :  { %5091 = vmatprep.subr.mxu1 %v5594_v2 }
0x28f7   :  { %5092 = vmatpush3.msra.mxu1 %v6270_v24 }
0x28f8   :  { %5075 = vmatmul.mubr.msk.f32.gmra.mxu1 %vm181_vm3, %v5423_v56  ;;  %5093 = vmatprep.subr.mxu1 %v5594_v2  ;;  %v6489_v56 = vadd.f32 %v2347_v14, %v6446_v31 }
0x28f9   :  { %5077 = vmatprep.mubr.msk.f32.mxu1 %vm5595_vm2, %v5594_v2  ;;  %5094 = vmatpush3.msra.mxu1 %v6277_v25 }
0x28fa   :  { %5095 = vmatprep.subr.mxu1 %v5594_v2 }
0x28fb   :  { %5096 = vmatpush3.msra.mxu1 %v6284_v29 }
0x28fc   :  { %5078 = vmatmul.mubr.msk.f32.gmra.mxu1 %vm181_vm3, %v5425_v44  ;;  %5097 = vmatprep.subr.mxu1 %v5594_v2 }
0x28fd   :  { %5098 = vmatpush3.msra.mxu1 %v6291_v30  ;;  %5105 = vmatprep.mubr.msk.f32.mxu1 %vm5595_vm2, %v5594_v2 }
0x28fe   :  { %5099 = vmatprep.subr.mxu1 %v5594_v2 }
0x28ff   :  { %5100 = vmatpush3.msra.mxu1 %v6298_v34 }
0x2900   :  { %5101 = vmatprep.subr.mxu1 %v5594_v2 }
0x2901   :  { %5102 = vmatpush3.msra.mxu1 %v6306_v38 }
0x2902   :  { %5103 = vmatprep.subr.mxu1 %v5594_v2 }
0x2903   :  { %5104 = vmatpush3.msra.mxu1 %v6317_v47 }
0x2904   :  { %5125 = vmatprep.subr.mxu1 %v5594_v2 }
0x29b4   :  { %v2459_v15 = vpop.f32.mrf.mxu1 }
0x29b5   :  { %v2473_v59 = vmul.f32 1.442695, %v2459_v15 }
0x29b6   :  { %v5073_v45 = vpop.f32.mrf.mxu1 }
0x29b8   :  { %v2464_v50 = vpop.f32.mrf.mxu1 }
0x29b9   :  { %v2475_v54 = vmul.f32 1.442695, %v2464_v50 }
0x29ba   :  { %v5076_v9 = vpop.f32.mrf.mxu1 }
0x29bb   :  { %5426 = vpow2.f32 %v2475_v54 }
0x29bc   :  { %v2469_v12 = vpop.f32.mrf.mxu1 }
0x29bd   :  { %v2477_v61 = vmul.f32 1.442695, %v2469_v12 }
0x29be   :  { %v5079_v53 = vpop.f32.mrf.mxu1 }
0x29bf   :  { %5428 = vpow2.f32 %v2477_v61 }
0x29c0   :  { %5430 = vpow2.f32 %v2473_v59 }
0x29c8   :  { %v5427_v63 = vpop.eup %5426 }
0x29c9   :  { %2486 = vperm.xlu1 %5302, %v5427_v63  }
0x29cc   :  { %v5429_v32 = vpop.eup %5428 }
0x29cd   :  { %2491 = vperm.xlu0 %5297, %v5429_v32   ;;  %5303 = vset.pattern.permute.xlu1 %v5599_v4  ;;  %v5431_v43 = vpop.eup %5430 }
0x29d1   :  { %2481 = vperm.xlu0 %5297, %v5431_v43  }
0x29d5   :  { %2351 = vperm.xlu0 %5297, %v6489_v56  }
0x2a44   :  { %v2487_v44 = vpop.permute.xlu1 %2486 }
0x2a45   :  { %v2495_v50 = vmul.f32 %v2487_v44, %v6103_v60 }
0x2a48   :  { %v2492_v15 = vpop.permute.xlu0 %2491 }
0x2a49   :  { %v2496_v45 = vmul.f32 %v2492_v15, %v6098_v57 }
0x2a4b   :  { %5081 = vmatpush3.msk.msra.mxu0 %vm86_vm0, %v2496_v45 }
0x2a4c   :  { %5082 = vmatprep.subr.mxu0 %v5594_v2  ;;  %v2482_v54 = vpop.permute.xlu0 %2481 }
0x2a4d   :  { %v2494_v9 = vmul.f32 %v2482_v54, %v6109_v62  ;;  %5083 = vmatpush3.msra.mxu0 %v2495_v50 }
0x2a4e   :  { %5084 = vmatprep.subr.mxu0 %v5594_v2 }
0x2a4f   :  { %5085 = vmatpush3.msra.mxu0 %v2494_v9 }
0x2a50   :  { %5087 = vmatmul.mubr.msk.f32.vlgmr.msra.gmra.mxu0 %vm1575_vm6, %v6116_v1  ;;  %2597 = vmatprep.subr.mxu0 %v6126_v33 }
0x2a51   :  { %2598 = vmatpush1.msra.mxu0 %v6131_v5  ;;  %2645 = vmatprep.mubr.f32.mxu0 %v5594_v2 }
0x2a52   :  { %2599 = vmatprep.subr.mxu0 %v6136_v3 }
0x2a53   :  { %2600 = vmatpush1.msra.mxu0 %v6142_v8 }
0x2a54   :  { %2601 = vmatprep.subr.mxu0 %v6148_v10 }
0x2a55   :  { %2602 = vmatpush1.msra.mxu0 %v6154_v6 }
0x2a56   :  { %2603 = vmatprep.subr.mxu0 %v6160_v11 }
0x2a57   :  { %2604 = vmatpush1.msra.mxu0 %v6166_v51 }
0x2a58   :  { %2605 = vmatprep.subr.mxu0 %v6172_v7 }
0x2a59   :  { %2606 = vmatpush1.msra.mxu0 %v6178_v13 }
0x2a5a   :  { %2607 = vmatprep.subr.mxu0 %v6184_v16 }
0x2a5b   :  { %2608 = vmatpush1.msra.mxu0 %v6190_v20 }
0x2a5c   :  { %2609 = vmatprep.subr.mxu0 %v6196_v23 }
0x2a5d   :  { %2610 = vmatpush1.msra.mxu0 %v6204_v55 }
0x2a5e   :  { %2611 = vmatprep.subr.mxu0 %v6210_v26 }
0x2a5f   :  { %2612 = vmatpush1.msra.mxu0 %v6216_v27 }
0x2a60   :  { %5108 = vmatprep.subr.mxu0 %v5594_v2 }
0x2b10   :  { %v2566_v1 = vpop.f32.mrf.mxu0 }
0x2b11   :  { %5432 = vrcp.f32 %v2566_v1 }
0x2b12   :  { %v5088_v33 = vpop.f32.mrf.mxu0 }
0x2b1e   :  { %v5433_v5 = vpop.eup %5432 }
0x2b1f   :  { %2573 = vperm.xlu1 %5303, %v5433_v5  }
0x2b23   :  { %5304 = vset.pattern.permute.xlu1 %v5598_v35 }
0x2b9a   :  { %v2574_v3 = vpop.permute.xlu1 %2573 }
0x2b9b   :  { %v2576_v8 = vmul.f32 %v2574_v3, %v2566_v1 }
0x2b9d   :  { %v2577_v10 = vsel %vm181_vm3, %v2576_v8, %v6437_v39 }
0x2b9e   :  { %4578 = vmatmul.mubr.msk.f32.vlgmr.msra.gmra.mxu0 %vm1688_vm7, %v2577_v10 }
0x2b9f   :  { %5109 = vmatpush3.msra.mxu0 %v6041_v18  ;;  %5116 = vmatprep.mubr.msk.f32.mxu0 %vm5595_vm2, %v5594_v2 }
0x2ba0   :  { %5110 = vmatprep.subr.mxu0 %v5594_v2 }
0x2ba1   :  { %5111 = vmatpush3.msra.mxu0 %v6046_v19  ;;  %v6537_v19 = vpop.permute.xlu0 %2351 }
0x2ba2   :  { %5112 = vmatprep.subr.mxu0 %v5594_v2 }
0x2ba3   :  { %5113 = vmatpush3.msra.mxu0 %v6053_v21  ;;  %v2652_v21 = vmul.f32 %v6258_v46, %v6537_v19 }
0x2ba4   :  { %5114 = vmatprep.subr.mxu0 %v5594_v2 }
0x2ba5   :  { %5115 = vmatpush3.msra.mxu0 %v6060_v22 }
0x2ba6   :  { %5134 = vmatprep.subr.mxu0 %v5594_v2 }
0x2c5e   :  { %v2647_v6 = vpop.f32.mrf.mxu0 }
0x2c5f   :  { %v2648_v18 = vadd.f32 %v2647_v6, %v6244_v41 }
0x2c60   :  { %v2649_v11 = vpop.f32.mrf.mxu0 }
0x2c61   :  { %v2650_v51 = vadd.f32 %v2649_v11, %v6248_v42  ;;  %2655 = vrot.lane.b32.xlu1 %v2648_v18, %s5600_s30  ;;  %v2653_v22 = vadd.f32 %v2652_v21, %v2648_v18 }
0x2c63   :  { %2676 = vrot.lane.b32.xlu0 %v2650_v51, %s5597_s24 }
0x2c67   :  { %2666 = vrot.lane.b32.xlu0 %v2650_v51, %s5600_s30 }
0x2cd3   :  { %v2656_v7 = vpop.permute.xlu1 %2655 }
0x2cd4   :  { %v2658_v13 = vadd.f32 %v2656_v7, %v2653_v22 }
0x2cd5   :  { %v2677_v26 = vpop.permute.xlu0 %2676 }
0x2cd6   :  { %v4579_v16 = vmul.f32 -1.442695, %v2658_v13 }
0x2cd8   :  { %5434 = vpow2.f32 %v4579_v16 }
0x2cd9   :  { %v2667_v46 = vpop.permute.xlu0 %2666 }
0x2cda   :  { %v2669_v61 = vadd.f32 %v2667_v46, %v2653_v22 }
0x2cdc   :  { %v4580_v53 = vmul.f32 -1.442695, %v2669_v61 }
0x2ce5   :  { %v5435_v20 = vpop.eup %5434 }
0x2ce6   :  { %v2662_v23 = vadd.f32 1.0, %v5435_v20 }
0x2ce8   :  { %5436 = vrcp.f32 %v2662_v23 }
0x2cf5   :  { %v5437_v55 = vpop.eup %5436 }
0x2cf6   :  { %v2679_v27 = vmul.f32 %v5437_v55, %v2677_v26 }
0x2cf8   :  { %2681 = vrot.lane.b32.xlu1 %v2679_v27, %s5596_s21 }
0x2d6a   :  { %v2682_v49 = vpop.permute.xlu1 %2681 }
0x2d6b   :  { %v2684_v31 = vadd.f32 %v2682_v49, %v2653_v22  ;;  %v2776_v49 = vmul.f32 %v6375_v48, %v6489_v56  ;;  %v6609_v56 = vld [vmem:[%s7161_s18] sm:$0x3] }
0x2d6d   :  { %5438 = vtanh.f32 %v2684_v31 }
0x2d6e   :  { %5440 = vpow2.f32 %v4580_v53 }
0x2d7a   :  { %v5439_v12 = vpop.eup %5438 }
0x2d7b   :  { %2688 = vrot.lane.b32.xlu1 %v5439_v12, %s5597_s24  ;;  %v5441_v59 = vpop.eup %5440 }
0x2d7c   :  { %v2673_v63 = vadd.f32 1.0, %v5441_v59 }
0x2d7e   :  { %5442 = vrcp.f32 %v2673_v63 }
0x2d7f   :  { %2699 = vrot.lane.b32.xlu1 %v2576_v8, %s5600_s30 }
0x2d8b   :  { %v5443_v32 = vpop.eup %5442 }
0x2d8c   :  { %v2686_v43 = vsub.f32 1.0, %v5443_v32  ;;  %v2692_v44 = vmul.f32 %v5443_v32, %v6437_v39  ;;  %v6616_v32 = vld [vmem:[%s7154_s11 + $0x78] sm:$0xff] }
0x2ded   :  { %v2689_v14 = vpop.permute.xlu1 %2688 }
0x2dee   :  { %v2691_v15 = vmul.f32 %v2689_v14, %v2686_v43  ;;  %v6622_v43 = vld [vmem:[%s7154_s11 + $0x70] sm:$0xff]  ;;  %v6629_v14 = vld [vmem:[%s7154_s11 + $0x68] sm:$0xff] }
0x2df0   :  { %v6545_v45 = vadd.f32 %v2692_v44, %v2691_v15  ;;  %v6635_v44 = vld [vmem:[%s7154_s11 + $0x60] sm:$0xff]  ;;  %v6641_v15 = vld [vmem:[%s7154_s11 + $0x58] sm:$0xff] }
0x2df1   :  { %v2700_v50 = vpop.permute.xlu1 %2699 }
0x2df2   :  { %2695 = vrot.lane.b32.xlu0 %v6545_v45, %s5597_s24 }
0x2e64   :  { %v2696_v54 = vpop.permute.xlu0 %2695 }
0x2e65   :  { %v2702_v9 = vsel %vm181_vm3, %v2696_v54, %v2700_v50  ;;  %v6647_v50 = vld [vmem:[%s7154_s11 + $0x50] sm:$0xff]  ;;  %v6653_v54 = vld [vmem:[%s7154_s11 + $0x48] sm:$0xff] }
0x2e66   :  { %5106 = vmatmul.mubr.msk.f32.vlgmr.msra.gmra.mxu1 %vm1688_vm7, %v2702_v9  ;;  %v6659_v9 = vld [vmem:[%s7154_s11 + $0x40] sm:$0xff] }
0x2e67   :  { %5131 = vmatprep.mubr.msk.f32.mxu1 %vm5595_vm2, %v5594_v2 }
0x2f26   :  { %v2772_v1 = vpop.f32.mrf.mxu1 }
0x2f27   :  { %v6554_v33 = vadd.f32 %v6333_v58, %v2772_v1  ;;  %v6665_v1 = vld [vmem:[%s7154_s11 + $0x38] sm:$0xff] }
0x2f28   :  { %v5107_v39 = vpop.f32.mrf.mxu1 }
0x2f29   :  { %v2790_v5 = vrot.slane %v6554_v33, 6  ;;  %v2792_v3 = vrot.slane %v6554_v33, 4  ;;  %v2794_v10 = vrot.slane %v6554_v33, 2  ;;  %v6597_v31 = vadd.f32 %v2776_v49, %v6554_v33  ;;  %v6677_v39 = vld [vmem:[%s7154_s11 + $0x28] sm:$0xff] }
0x2f2b   :  { %v2796_v8 = vsel %vm1226_vm4, %v6554_v33, %v2790_v5  ;;  %v6671_v33 = vld [vmem:[%s7154_s11 + $0x30] sm:$0xff]  ;;  %v6683_v5 = vld [vmem:[%s7154_s11 + $0x20] sm:$0xff] }
0x2f2c   :  { %2803 = vrot.lane.b32.xlu1 %v2796_v8, %s5601_s20  ;;  %v2797_v6 = vsel %vm86_vm0, %v2796_v8, %v2792_v3  ;;  %v6689_v3 = vld [vmem:[%s7154_s11 + $0x18] sm:$0xff]  ;;  %v6695_v8 = vld [vmem:[%s7154_s11 + $0x10] sm:$0xff] }
0x2f2d   :  { %v2798_v18 = vsel %vm1229_vm5, %v2797_v6, %v2794_v10  ;;  %v6701_v10 = vld [vmem:[%s7154_s11 + $0x8] sm:$0xff]  ;;  %v6707_v6 = vld [vmem:[%s7154_s11] sm:$0xff] }
0x2f2e   :  { %2801 = vrot.lane.b32.xlu0 %v2798_v18, %s5601_s20 }
0x2f9e   :  { %v2804_v22 = vpop.permute.xlu1 %2803 }
0x2f9f   :  { %v2809_v7 = vadd.f32 %v2804_v22, %v6075_v37 }
0x2fa0   :  { %v2802_v11 = vpop.permute.xlu0 %2801 }
0x2fa1   :  { %v2807_v51 = vadd.f32 %v2802_v11, %v6036_v17  ;;  %v2808_v21 = vadd.f32 %v2802_v11, %v6069_v28 }
0x2fa3   :  { %5444 = vtanh.f32 %v2807_v51 }
0x2fa4   :  { %5446 = vtanh.f32 %v2808_v21 }
0x2fa5   :  { %5448 = vtanh.f32 %v2809_v7 }
0x2fb0   :  { %v5445_v13 = vpop.eup %5444 }
0x2fb1   :  { %5117 = vmatmul.mubr.msk.f32.vlgmr.msra.gmra.mxu0 %vm181_vm3, %v5445_v13  ;;  %v5447_v16 = vpop.eup %5446  ;;  %v6718_v13 = vld [vmem:[%s7152_s9 + $0x18] sm:$0xff] }
0x2fb2   :  { %5119 = vmatprep.mubr.msk.f32.mxu0 %vm5595_vm2, %v5594_v2  ;;  %5135 = vmatpush3.msra.mxu0 %v6265_v0  ;;  %v5449_v20 = vpop.eup %5448 }
0x2fb3   :  { %5136 = vmatprep.subr.mxu0 %v5594_v2 }
0x2fb4   :  { %5137 = vmatpush3.msra.mxu0 %v6270_v24 }
0x2fb5   :  { %5120 = vmatmul.mubr.msk.f32.gmra.mxu0 %vm181_vm3, %v5447_v16  ;;  %5138 = vmatprep.subr.mxu0 %v5594_v2  ;;  %v6727_v16 = vld [vmem:[%s7152_s9 + $0x10] sm:$0xff] }
0x2fb6   :  { %5122 = vmatprep.mubr.msk.f32.mxu0 %vm5595_vm2, %v5594_v2  ;;  %5139 = vmatpush3.msra.mxu0 %v6277_v25 }
0x2fb7   :  { %5140 = vmatprep.subr.mxu0 %v5594_v2 }
0x2fb8   :  { %5141 = vmatpush3.msra.mxu0 %v6284_v29 }
0x2fb9   :  { %5123 = vmatmul.mubr.msk.f32.gmra.mxu0 %vm181_vm3, %v5449_v20  ;;  %5142 = vmatprep.subr.mxu0 %v5594_v2  ;;  %v6734_v20 = vld [vmem:[%s7152_s9 + $0x8] sm:$0xff] }
0x2fba   :  { %5143 = vmatpush3.msra.mxu0 %v6291_v30  ;;  %5150 = vmatprep.mubr.msk.f32.mxu0 %vm5595_vm2, %v5594_v2 }
0x2fbb   :  { %5144 = vmatprep.subr.mxu0 %v5594_v2 }
0x2fbc   :  { %5145 = vmatpush3.msra.mxu0 %v6298_v34 }
0x2fbd   :  { %5146 = vmatprep.subr.mxu0 %v5594_v2 }
0x2fbe   :  { %5147 = vmatpush3.msra.mxu0 %v6306_v38 }
0x2fbf   :  { %5148 = vmatprep.subr.mxu0 %v5594_v2 }
0x2fc0   :  { %5149 = vmatpush3.msra.mxu0 %v6317_v47 }
0x2fc1   :  { %5170 = vmatprep.subr.mxu0 %v5594_v2 }
0x3071   :  { %v2888_v0 = vpop.f32.mrf.mxu0 }
0x3072   :  { %v2902_v34 = vmul.f32 1.442695, %v2888_v0  ;;  %v6741_v0 = vld [vmem:[%s7152_s9] sm:$0xff] }
0x3073   :  { %v5118_v24 = vpop.f32.mrf.mxu0 }
0x3075   :  { %v2893_v25 = vpop.f32.mrf.mxu0 }
0x3076   :  { %v2904_v29 = vmul.f32 1.442695, %v2893_v25 }
0x3077   :  { %v5121_v30 = vpop.f32.mrf.mxu0 }
0x3078   :  { %5450 = vpow2.f32 %v2904_v29 }
0x3079   :  { %v2898_v23 = vpop.f32.mrf.mxu0 }
0x307a   :  { %v2906_v55 = vmul.f32 1.442695, %v2898_v23 }
0x307b   :  { %v5124_v26 = vpop.f32.mrf.mxu0 }
0x307c   :  { %5452 = vpow2.f32 %v2906_v55  ;;  %v6755_v55 = vld [vmem:[%s7153_s10] ss:$0 sm:$0xff] }
0x307d   :  { %5454 = vpow2.f32 %v2902_v34 }
0x3085   :  { %v5451_v27 = vpop.eup %5450 }
0x3086   :  { %2915 = vperm.xlu1 %5304, %v5451_v27  }
0x3089   :  { %v5453_v38 = vpop.eup %5452 }
0x308a   :  { %2920 = vperm.xlu0 %5297, %v5453_v38   ;;  %5305 = vset.pattern.permute.xlu1 %v5599_v4  ;;  %v5455_v47 = vpop.eup %5454 }
0x308e   :  { %2910 = vperm.xlu0 %5297, %v5455_v47  }
0x3092   :  { %2780 = vperm.xlu0 %5297, %v6597_v31  }
0x3101   :  { %v2916_v12 = vpop.permute.xlu1 %2915 }
0x3102   :  { %v2924_v53 = vmul.f32 %v2916_v12, %v6103_v60 }
0x3105   :  { %v2921_v46 = vpop.permute.xlu0 %2920 }
0x3106   :  { %v2925_v61 = vmul.f32 %v2921_v46, %v6098_v57 }
0x3108   :  { %5126 = vmatpush3.msk.msra.mxu1 %vm86_vm0, %v2925_v61 }
0x3109   :  { %5127 = vmatprep.subr.mxu1 %v5594_v2  ;;  %v2911_v59 = vpop.permute.xlu0 %2910 }
0x310a   :  { %v2923_v63 = vmul.f32 %v2911_v59, %v6109_v62  ;;  %5128 = vmatpush3.msra.mxu1 %v2924_v53 }
0x310b   :  { %5129 = vmatprep.subr.mxu1 %v5594_v2 }
0x310c   :  { %5130 = vmatpush3.msra.mxu1 %v2923_v63 }
0x310d   :  { %5132 = vmatmul.mubr.msk.f32.vlgmr.msra.gmra.mxu1 %vm1575_vm6, %v6609_v56  ;;  %3026 = vmatprep.subr.mxu1 %v6616_v32  ;;  %v6750_v23 = vpop.permute.xlu0 %2780 }
0x310e   :  { %3027 = vmatpush1.msra.mxu1 %v6622_v43  ;;  %3074 = vmatprep.mubr.f32.mxu1 %v5594_v2  ;;  %v3081_v26 = vmul.f32 %v6755_v55, %v6750_v23 }
0x310f   :  { %3028 = vmatprep.subr.mxu1 %v6629_v14 }
0x3110   :  { %3029 = vmatpush1.msra.mxu1 %v6635_v44 }
0x3111   :  { %3030 = vmatprep.subr.mxu1 %v6641_v15 }
0x3112   :  { %3031 = vmatpush1.msra.mxu1 %v6647_v50 }
0x3113   :  { %3032 = vmatprep.subr.mxu1 %v6653_v54 }
0x3114   :  { %3033 = vmatpush1.msra.mxu1 %v6659_v9 }
0x3115   :  { %3034 = vmatprep.subr.mxu1 %v6665_v1 }
0x3116   :  { %3035 = vmatpush1.msra.mxu1 %v6671_v33 }
0x3117   :  { %3036 = vmatprep.subr.mxu1 %v6677_v39 }
0x3118   :  { %3037 = vmatpush1.msra.mxu1 %v6683_v5 }
0x3119   :  { %3038 = vmatprep.subr.mxu1 %v6689_v3 }
0x311a   :  { %3039 = vmatpush1.msra.mxu1 %v6695_v8 }
0x311b   :  { %3040 = vmatprep.subr.mxu1 %v6701_v10 }
0x311c   :  { %3041 = vmatpush1.msra.mxu1 %v6707_v6 }
0x311d   :  { %5153 = vmatprep.subr.mxu1 %v5594_v2 }
0x31cd   :  { %v2995_v18 = vpop.f32.mrf.mxu1 }
0x31ce   :  { %5456 = vrcp.f32 %v2995_v18 }
0x31cf   :  { %v5133_v11 = vpop.f32.mrf.mxu1 }
0x31db   :  { %v5457_v51 = vpop.eup %5456 }
0x31dc   :  { %3002 = vperm.xlu1 %5305, %v5457_v51  }
0x31e0   :  { %5306 = vset.pattern.permute.xlu1 %v5598_v35 }
0x3257   :  { %v3003_v21 = vpop.permute.xlu1 %3002 }
0x3258   :  { %v3005_v22 = vmul.f32 %v3003_v21, %v2995_v18 }
0x325a   :  { %v3006_v7 = vsel %vm181_vm3, %v3005_v22, %v6545_v45 }
0x325b   :  { %4587 = vmatmul.mubr.msk.f32.vlgmr.msra.gmra.mxu1 %vm1688_vm7, %v3006_v7 }
0x325c   :  { %5154 = vmatpush3.msra.mxu1 %v6718_v13  ;;  %5161 = vmatprep.mubr.msk.f32.mxu1 %vm5595_vm2, %v5594_v2 }
0x325d   :  { %5155 = vmatprep.subr.mxu1 %v5594_v2 }
0x325e   :  { %5156 = vmatpush3.msra.mxu1 %v6727_v16 }
0x325f   :  { %5157 = vmatprep.subr.mxu1 %v5594_v2 }
0x3260   :  { %5158 = vmatpush3.msra.mxu1 %v6734_v20 }
0x3261   :  { %5159 = vmatprep.subr.mxu1 %v5594_v2 }
0x3262   :  { %5160 = vmatpush3.msra.mxu1 %v6741_v0 }
0x3263   :  { %5179 = vmatprep.subr.mxu1 %v5594_v2 }
0x331b   :  { %v3076_v24 = vpop.f32.mrf.mxu1 }
0x331c   :  { %v3077_v25 = vadd.f32 %v3076_v24, %v6244_v41 }
0x331d   :  { %v3078_v29 = vpop.f32.mrf.mxu1 }
0x331e   :  { %v3079_v30 = vadd.f32 %v3078_v29, %v6248_v42  ;;  %3084 = vrot.lane.b32.xlu1 %v3077_v25, %s5600_s30  ;;  %v3082_v34 = vadd.f32 %v3081_v26, %v3077_v25 }
0x3320   :  { %3105 = vrot.lane.b32.xlu0 %v3079_v30, %s5597_s24 }
0x3324   :  { %3095 = vrot.lane.b32.xlu0 %v3079_v30, %s5600_s30 }
0x3390   :  { %v3085_v27 = vpop.permute.xlu1 %3084 }
0x3391   :  { %v3087_v38 = vadd.f32 %v3085_v27, %v3082_v34 }
0x3392   :  { %v3106_v61 = vpop.permute.xlu0 %3105 }
0x3393   :  { %v4588_v47 = vmul.f32 -1.442695, %v3087_v38 }
0x3395   :  { %5458 = vpow2.f32 %v4588_v47 }
0x3396   :  { %v3096_v11 = vpop.permute.xlu0 %3095 }
0x3397   :  { %v3098_v51 = vadd.f32 %v3096_v11, %v3082_v34 }
0x3399   :  { %v4589_v21 = vmul.f32 -1.442695, %v3098_v51 }
0x33a2   :  { %v5459_v49 = vpop.eup %5458 }
0x33a3   :  { %v3091_v12 = vadd.f32 1.0, %v5459_v49 }
0x33a5   :  { %5460 = vrcp.f32 %v3091_v12 }
0x33b2   :  { %v5461_v46 = vpop.eup %5460 }
0x33b3   :  { %v3108_v53 = vmul.f32 %v5461_v46, %v3106_v61 }
0x33b5   :  { %3110 = vrot.lane.b32.xlu1 %v3108_v53, %s5596_s21 }
0x3427   :  { %v3111_v59 = vpop.permute.xlu1 %3110 }
0x3428   :  { %v3113_v63 = vadd.f32 %v3111_v59, %v3082_v34 }
0x342a   :  { %5462 = vtanh.f32 %v3113_v63 }
0x342b   :  { %5464 = vpow2.f32 %v4589_v21 }
0x3437   :  { %v5463_v18 = vpop.eup %5462 }
0x3438   :  { %3117 = vrot.lane.b32.xlu1 %v5463_v18, %s5597_s24  ;;  %v5465_v7 = vpop.eup %5464 }
0x3439   :  { %v3102_v24 = vadd.f32 1.0, %v5465_v7 }
0x343b   :  { %5466 = vrcp.f32 %v3102_v24 }
0x343c   :  { %3128 = vrot.lane.b32.xlu1 %v3005_v22, %s5600_s30 }
0x3448   :  { %v5467_v25 = vpop.eup %5466 }
0x3449   :  { %v3115_v29 = vsub.f32 1.0, %v5467_v25  ;;  %v3121_v26 = vmul.f32 %v5467_v25, %v6545_v45  ;;  %v6792_v25 = vld [vmem:[%s7156_s13 + $0x38] sm:$0xff] }
0x34aa   :  { %v3118_v30 = vpop.permute.xlu1 %3117 }
0x34ab   :  { %v3120_v27 = vmul.f32 %v3118_v30, %v3115_v29  ;;  %v6799_v30 = vld [vmem:[%s7156_s13 + $0x30] sm:$0xff] }
0x34ad   :  { %v6763_v38 = vadd.f32 %v3121_v26, %v3120_v27  ;;  %v6809_v26 = vld [vmem:[%s7156_s13 + $0x28] sm:$0xff] }
0x34ae   :  { %v3129_v47 = vpop.permute.xlu1 %3128 }
0x34af   :  { %3124 = vrot.lane.b32.xlu0 %v6763_v38, %s5597_s24 }
0x3521   :  { %v3125_v22 = vpop.permute.xlu0 %3124 }
0x3522   :  { %v3131_v34 = vsel %vm181_vm3, %v3125_v22, %v3129_v47  ;;  %v6816_v47 = vld [vmem:[%s7156_s13 + $0x20] sm:$0xff]  ;;  %v6824_v22 = vld [vmem:[%s7156_s13 + $0x18] sm:$0xff] }
0x3523   :  { %5151 = vmatmul.mubr.msk.f32.vlgmr.msra.gmra.mxu0 %vm1688_vm7, %v3131_v34  ;;  %v6833_v34 = vld [vmem:[%s7156_s13 + $0x10] sm:$0xff] }
0x3524   :  { %5176 = vmatprep.mubr.msk.f32.mxu0 %vm5595_vm2, %v5594_v2 }
0x35e3   :  { %v3201_v49 = vpop.f32.mrf.mxu0 }
0x35e4   :  { %v6772_v12 = vadd.f32 %v6333_v58, %v3201_v49  ;;  %v6840_v49 = vld [vmem:[%s7156_s13 + $0x8] sm:$0xff] }
0x35e5   :  { %v5152_v45 = vpop.f32.mrf.mxu0 }
0x35e6   :  { %v3219_v46 = vrot.slane %v6772_v12, 6  ;;  %v3221_v61 = vrot.slane %v6772_v12, 4  ;;  %v3223_v59 = vrot.slane %v6772_v12, 2  ;;  %v6847_v45 = vld [vmem:[%s7156_s13] sm:$0xff] }
0x35e8   :  { %v3225_v53 = vsel %vm1226_vm4, %v6772_v12, %v3219_v46 }
0x35e9   :  { %3232 = vrot.lane.b32.xlu1 %v3225_v53, %s5601_s20  ;;  %v3226_v63 = vsel %vm86_vm0, %v3225_v53, %v3221_v61 }
0x35ea   :  { %v3227_v18 = vsel %vm1229_vm5, %v3226_v63, %v3223_v59 }
0x35eb   :  { %3230 = vrot.lane.b32.xlu0 %v3227_v18, %s5601_s20 }
0x365b   :  { %v3233_v21 = vpop.permute.xlu1 %3232 }
0x365c   :  { %v3238_v7 = vadd.f32 %v3233_v21, %v6075_v37 }
0x365d   :  { %v3231_v58 = vpop.permute.xlu0 %3230 }
0x365e   :  { %v3236_v11 = vadd.f32 %v3231_v58, %v6036_v17  ;;  %v3237_v51 = vadd.f32 %v3231_v58, %v6069_v28 }
0x3660   :  { %5468 = vtanh.f32 %v3236_v11 }
0x3661   :  { %5470 = vtanh.f32 %v3237_v51 }
0x3662   :  { %5472 = vtanh.f32 %v3238_v7 }
0x366d   :  { %v5469_v24 = vpop.eup %5468 }
0x366e   :  { %5162 = vmatmul.mubr.msk.f32.vlgmr.msra.gmra.mxu1 %vm181_vm3, %v5469_v24  ;;  %v5471_v29 = vpop.eup %5470 }
0x366f   :  { %5164 = vmatprep.mubr.msk.f32.mxu1 %vm5595_vm2, %v5594_v2  ;;  %5180 = vmatpush3.msra.mxu1 %v6792_v25  ;;  %v5473_v27 = vpop.eup %5472 }
0x3670   :  { %5181 = vmatprep.subr.mxu1 %v5594_v2 }
0x3671   :  { %5182 = vmatpush3.msra.mxu1 %v6799_v30 }
0x3672   :  { %5165 = vmatmul.mubr.msk.f32.gmra.mxu1 %vm181_vm3, %v5471_v29  ;;  %5183 = vmatprep.subr.mxu1 %v5594_v2  ;;  %v3205_v29 = vmul.f32 %v6375_v48, %v6597_v31 }
0x3673   :  { %5167 = vmatprep.mubr.msk.f32.mxu1 %vm5595_vm2, %v5594_v2  ;;  %5184 = vmatpush3.msra.mxu1 %v6809_v26 }
0x3674   :  { %5185 = vmatprep.subr.mxu1 %v5594_v2 }
0x3675   :  { %5186 = vmatpush3.msra.mxu1 %v6816_v47 }
0x3676   :  { %5168 = vmatmul.mubr.msk.f32.gmra.mxu1 %vm181_vm3, %v5473_v27  ;;  %5187 = vmatprep.subr.mxu1 %v5594_v2  ;;  %v6855_v27 = vadd.f32 %v3205_v29, %v6772_v12 }
0x3677   :  { %5188 = vmatpush3.msra.mxu1 %v6824_v22  ;;  %5195 = vmatprep.mubr.msk.f32.mxu1 %vm5595_vm2, %v5594_v2 }
0x3678   :  { %5189 = vmatprep.subr.mxu1 %v5594_v2 }
0x3679   :  { %5190 = vmatpush3.msra.mxu1 %v6833_v34 }
0x367a   :  { %5191 = vmatprep.subr.mxu1 %v5594_v2 }
0x367b   :  { %5192 = vmatpush3.msra.mxu1 %v6840_v49 }
0x367c   :  { %5193 = vmatprep.subr.mxu1 %v5594_v2 }
0x367d   :  { %5194 = vmatpush3.msra.mxu1 %v6847_v45 }
0x367e   :  { %5215 = vmatprep.subr.mxu1 %v5594_v2 }
0x372e   :  { %v3317_v46 = vpop.f32.mrf.mxu1 }
0x372f   :  { %v3331_v51 = vmul.f32 1.442695, %v3317_v46 }
0x3730   :  { %v5163_v61 = vpop.f32.mrf.mxu1 }
0x3732   :  { %v3322_v53 = vpop.f32.mrf.mxu1 }
0x3733   :  { %v3333_v59 = vmul.f32 1.442695, %v3322_v53 }
0x3734   :  { %v5166_v63 = vpop.f32.mrf.mxu1 }
0x3735   :  { %5474 = vpow2.f32 %v3333_v59 }
0x3736   :  { %v3327_v18 = vpop.f32.mrf.mxu1 }
0x3737   :  { %v3335_v58 = vmul.f32 1.442695, %v3327_v18 }
0x3738   :  { %v5169_v11 = vpop.f32.mrf.mxu1 }
0x3739   :  { %5476 = vpow2.f32 %v3335_v58 }
0x373a   :  { %5478 = vpow2.f32 %v3331_v51 }
0x3742   :  { %v5475_v21 = vpop.eup %5474 }
0x3743   :  { %3344 = vperm.xlu1 %5306, %v5475_v21  }
0x3746   :  { %v5477_v7 = vpop.eup %5476 }
0x3747   :  { %3349 = vperm.xlu0 %5297, %v5477_v7   ;;  %5307 = vset.pattern.permute.xlu1 %v5599_v4  ;;  %v5479_v24 = vpop.eup %5478 }
0x374b   :  { %3339 = vperm.xlu0 %5297, %v5479_v24  }
0x374f   :  { %3209 = vperm.xlu0 %5297, %v6855_v27  }
0x37be   :  { %v3345_v61 = vpop.permute.xlu1 %3344 }
0x37bf   :  { %v3353_v59 = vmul.f32 %v3345_v61, %v6103_v60 }
0x37c2   :  { %v3350_v46 = vpop.permute.xlu0 %3349 }
0x37c3   :  { %v3354_v53 = vmul.f32 %v3350_v46, %v6098_v57 }
0x37c5   :  { %5171 = vmatpush3.msk.msra.mxu0 %vm86_vm0, %v3354_v53 }
0x37c6   :  { %5172 = vmatprep.subr.mxu0 %v5594_v2  ;;  %v3340_v63 = vpop.permute.xlu0 %3339 }
0x37c7   :  { %v3352_v18 = vmul.f32 %v3340_v63, %v6109_v62  ;;  %5173 = vmatpush3.msra.mxu0 %v3353_v59 }
0x37c8   :  { %5174 = vmatprep.subr.mxu0 %v5594_v2 }
0x37c9   :  { %5175 = vmatpush3.msra.mxu0 %v3352_v18 }
0x37ca   :  { %5177 = vmatmul.mubr.msk.f32.vlgmr.msra.gmra.mxu0 %vm1575_vm6, %v6609_v56  ;;  %3455 = vmatprep.subr.mxu0 %v6616_v32  ;;  %v6903_v61 = vpop.permute.xlu0 %3209 }
0x37cb   :  { %3456 = vmatpush1.msra.mxu0 %v6622_v43  ;;  %3503 = vmatprep.mubr.f32.mxu0 %v5594_v2  ;;  %v3510_v46 = vmul.f32 %v6755_v55, %v6903_v61 }
0x37cc   :  { %3457 = vmatprep.subr.mxu0 %v6629_v14 }
0x37cd   :  { %3458 = vmatpush1.msra.mxu0 %v6635_v44 }
0x37ce   :  { %3459 = vmatprep.subr.mxu0 %v6641_v15 }
0x37cf   :  { %3460 = vmatpush1.msra.mxu0 %v6647_v50 }
0x37d0   :  { %3461 = vmatprep.subr.mxu0 %v6653_v54 }
0x37d1   :  { %3462 = vmatpush1.msra.mxu0 %v6659_v9 }
0x37d2   :  { %3463 = vmatprep.subr.mxu0 %v6665_v1 }
0x37d3   :  { %3464 = vmatpush1.msra.mxu0 %v6671_v33 }
0x37d4   :  { %3465 = vmatprep.subr.mxu0 %v6677_v39 }
0x37d5   :  { %3466 = vmatpush1.msra.mxu0 %v6683_v5 }
0x37d6   :  { %3467 = vmatprep.subr.mxu0 %v6689_v3 }
0x37d7   :  { %3468 = vmatpush1.msra.mxu0 %v6695_v8 }
0x37d8   :  { %3469 = vmatprep.subr.mxu0 %v6701_v10 }
0x37d9   :  { %3470 = vmatpush1.msra.mxu0 %v6707_v6 }
0x37da   :  { %5198 = vmatprep.subr.mxu0 %v5594_v2 }
0x388a   :  { %v3424_v48 = vpop.f32.mrf.mxu0 }
0x388b   :  { %5480 = vrcp.f32 %v3424_v48 }
0x388c   :  { %v5178_v31 = vpop.f32.mrf.mxu0 }
0x3898   :  { %v5481_v12 = vpop.eup %5480 }
0x3899   :  { %3431 = vperm.xlu1 %5307, %v5481_v12  }
0x389d   :  { %5308 = vset.pattern.permute.xlu1 %v5598_v35 }
0x3914   :  { %v3432_v58 = vpop.permute.xlu1 %3431 }
0x3915   :  { %v3434_v11 = vmul.f32 %v3432_v58, %v3424_v48 }
0x3917   :  { %v3435_v51 = vsel %vm181_vm3, %v3434_v11, %v6763_v38 }
0x3918   :  { %4596 = vmatmul.mubr.msk.f32.vlgmr.msra.gmra.mxu0 %vm1688_vm7, %v3435_v51 }
0x3919   :  { %5199 = vmatpush3.msra.mxu0 %v6718_v13  ;;  %5206 = vmatprep.mubr.msk.f32.mxu0 %vm5595_vm2, %v5594_v2 }
0x391a   :  { %5200 = vmatprep.subr.mxu0 %v5594_v2 }
0x391b   :  { %5201 = vmatpush3.msra.mxu0 %v6727_v16 }
0x391c   :  { %5202 = vmatprep.subr.mxu0 %v5594_v2 }
0x391d   :  { %5203 = vmatpush3.msra.mxu0 %v6734_v20 }
0x391e   :  { %5204 = vmatprep.subr.mxu0 %v5594_v2 }
0x391f   :  { %5205 = vmatpush3.msra.mxu0 %v6741_v0 }
0x3920   :  { %5224 = vmatprep.subr.mxu0 %v5594_v2 }
0x39d8   :  { %v3505_v21 = vpop.f32.mrf.mxu0 }
0x39d9   :  { %v3506_v7 = vadd.f32 %v3505_v21, %v6244_v41 }
0x39da   :  { %v3507_v24 = vpop.f32.mrf.mxu0 }
0x39db   :  { %v3508_v29 = vadd.f32 %v3507_v24, %v6248_v42  ;;  %3513 = vrot.lane.b32.xlu1 %v3506_v7, %s5600_s30  ;;  %v3511_v53 = vadd.f32 %v3510_v46, %v3506_v7 }
0x39dd   :  { %3534 = vrot.lane.b32.xlu0 %v3508_v29, %s5597_s24 }
0x39e1   :  { %3524 = vrot.lane.b32.xlu0 %v3508_v29, %s5600_s30 }
0x3a4d   :  { %v3514_v59 = vpop.permute.xlu1 %3513 }
0x3a4e   :  { %v3516_v63 = vadd.f32 %v3514_v59, %v3511_v53 }
0x3a4f   :  { %v3535_v58 = vpop.permute.xlu0 %3534 }
0x3a50   :  { %v4597_v18 = vmul.f32 -1.442695, %v3516_v63 }
0x3a52   :  { %5482 = vpow2.f32 %v4597_v18 }
0x3a53   :  { %v3525_v7 = vpop.permute.xlu0 %3524 }
0x3a54   :  { %v3527_v46 = vadd.f32 %v3525_v7, %v3511_v53 }
0x3a56   :  { %v4598_v59 = vmul.f32 -1.442695, %v3527_v46 }
0x3a5f   :  { %v5483_v48 = vpop.eup %5482 }
0x3a60   :  { %v3520_v31 = vadd.f32 1.0, %v5483_v48 }
0x3a62   :  { %5484 = vrcp.f32 %v3520_v31 }
0x3a6f   :  { %v5485_v12 = vpop.eup %5484 }
0x3a70   :  { %v3537_v51 = vmul.f32 %v5485_v12, %v3535_v58 }
0x3a72   :  { %3539 = vrot.lane.b32.xlu1 %v3537_v51, %s5596_s21 }
0x3ae4   :  { %v3540_v21 = vpop.permute.xlu1 %3539 }
0x3ae5   :  { %v3542_v24 = vadd.f32 %v3540_v21, %v3511_v53 }
0x3ae7   :  { %5486 = vtanh.f32 %v3542_v24 }
0x3ae8   :  { %5488 = vpow2.f32 %v4598_v59 }
0x3af4   :  { %v5487_v29 = vpop.eup %5486 }
0x3af5   :  { %3546 = vrot.lane.b32.xlu1 %v5487_v29, %s5597_s24  ;;  %v5489_v63 = vpop.eup %5488 }
0x3af6   :  { %v3531_v18 = vadd.f32 1.0, %v5489_v63 }
0x3af8   :  { %5490 = vrcp.f32 %v3531_v18 }
0x3af9   :  { %3557 = vrot.lane.b32.xlu1 %v3434_v11, %s5600_s30 }
0x3b05   :  { %v5491_v48 = vpop.eup %5490 }
0x3b06   :  { %v3544_v31 = vsub.f32 1.0, %v5491_v48  ;;  %v3550_v58 = vmul.f32 %v5491_v48, %v6763_v38  ;;  %v6922_v38 = vld [vmem:[%s7157_s14] ss:$0 sm:$0xff] }
0x3b67   :  { %v3547_v12 = vpop.permute.xlu1 %3546 }
0x3b68   :  { %v3549_v51 = vmul.f32 %v3547_v12, %v3544_v31 }
0x3b6a   :  { %v6911_v21 = vadd.f32 %v3550_v58, %v3549_v51 }
0x3b6b   :  { %v3558_v24 = vpop.permute.xlu1 %3557 }
0x3b6c   :  { %3553 = vrot.lane.b32.xlu0 %v6911_v21, %s5597_s24 }
0x3bde   :  { %v3554_v11 = vpop.permute.xlu0 %3553 }
0x3bdf   :  { %v3560_v53 = vsel %vm181_vm3, %v3554_v11, %v3558_v24 }
0x3be0   :  { %5196 = vmatmul.mubr.msk.f32.vlgmr.msra.gmra.mxu1 %vm1688_vm7, %v3560_v53 }
0x3be1   :  { %5221 = vmatprep.mubr.msk.f32.mxu1 %vm5595_vm2, %v5594_v2 }
0x3ca0   :  { %v3630_v29 = vpop.f32.mrf.mxu1 }
0x3ca1   :  { %v6925_v7 = vadd.f32 %v6922_v38, %v3630_v29 }
0x3ca2   :  { %v5197_v46 = vpop.f32.mrf.mxu1 }
0x3ca3   :  { %v3648_v59 = vrot.slane %v6925_v7, 6  ;;  %v3650_v63 = vrot.slane %v6925_v7, 4  ;;  %v3652_v48 = vrot.slane %v6925_v7, 2 }
0x3ca5   :  { %v3654_v18 = vsel %vm1226_vm4, %v6925_v7, %v3648_v59 }
0x3ca6   :  { %3661 = vrot.lane.b32.xlu1 %v3654_v18, %s5601_s20  ;;  %v3655_v31 = vsel %vm86_vm0, %v3654_v18, %v3650_v63 }
0x3ca7   :  { %v3656_v12 = vsel %vm1229_vm5, %v3655_v31, %v3652_v48 }
0x3ca8   :  { %3659 = vrot.lane.b32.xlu0 %v3656_v12, %s5601_s20 }
0x3d18   :  { %v3662_v11 = vpop.permute.xlu1 %3661 }
0x3d19   :  { %v3667_v53 = vadd.f32 %v3662_v11, %v6075_v37 }
0x3d1a   :  { %v3660_v58 = vpop.permute.xlu0 %3659 }
0x3d1b   :  { %v3665_v51 = vadd.f32 %v3660_v58, %v6036_v17  ;;  %v3666_v24 = vadd.f32 %v3660_v58, %v6069_v28 }
0x3d1d   :  { %5492 = vtanh.f32 %v3665_v51 }
0x3d1e   :  { %5494 = vtanh.f32 %v3666_v24 }
0x3d1f   :  { %5496 = vtanh.f32 %v3667_v53 }
0x3d2a   :  { %v5493_v29 = vpop.eup %5492 }
0x3d2b   :  { %5207 = vmatmul.mubr.msk.f32.vlgmr.msra.gmra.mxu0 %vm181_vm3, %v5493_v29  ;;  %v5495_v46 = vpop.eup %5494 }
0x3d2c   :  { %5209 = vmatprep.mubr.msk.f32.mxu0 %vm5595_vm2, %v5594_v2  ;;  %5225 = vmatpush3.msra.mxu0 %v6792_v25  ;;  %v5497_v59 = vpop.eup %5496 }
0x3d2d   :  { %5226 = vmatprep.subr.mxu0 %v5594_v2 }
0x3d2e   :  { %5227 = vmatpush3.msra.mxu0 %v6799_v30 }
0x3d2f   :  { %5210 = vmatmul.mubr.msk.f32.gmra.mxu0 %vm181_vm3, %v5495_v46  ;;  %5228 = vmatprep.subr.mxu0 %v5594_v2 }
0x3d30   :  { %5212 = vmatprep.mubr.msk.f32.mxu0 %vm5595_vm2, %v5594_v2  ;;  %5229 = vmatpush3.msra.mxu0 %v6809_v26 }
0x3d31   :  { %5230 = vmatprep.subr.mxu0 %v5594_v2 }
0x3d32   :  { %5231 = vmatpush3.msra.mxu0 %v6816_v47 }
0x3d33   :  { %5213 = vmatmul.mubr.msk.f32.gmra.mxu0 %vm181_vm3, %v5497_v59  ;;  %5232 = vmatprep.subr.mxu0 %v5594_v2  ;;  %v6965_v59 = vld [vmem:[#allocation2] ss:$0 sm:$0xff] }
0x3d34   :  { %5233 = vmatpush3.msra.mxu0 %v6824_v22  ;;  %5240 = vmatprep.mubr.msk.f32.mxu0 %vm5595_vm2, %v5594_v2 }
0x3d35   :  { %5234 = vmatprep.subr.mxu0 %v5594_v2 }
0x3d36   :  { %5235 = vmatpush3.msra.mxu0 %v6833_v34 }
0x3d37   :  { %5236 = vmatprep.subr.mxu0 %v5594_v2 }
0x3d38   :  { %5237 = vmatpush3.msra.mxu0 %v6840_v49 }
0x3d39   :  { %5238 = vmatprep.subr.mxu0 %v5594_v2 }
0x3d3a   :  { %5239 = vmatpush3.msra.mxu0 %v6847_v45 }
0x3d3b   :  { %5260 = vmatprep.subr.mxu0 %v5594_v2 }
0x3deb   :  { %v3746_v63 = vpop.f32.mrf.mxu0 }
0x3dec   :  { %v3760_v11 = vmul.f32 1.442695, %v3746_v63 }
0x3ded   :  { %v5208_v18 = vpop.f32.mrf.mxu0 }
0x3dee   :  { %v3634_v18 = vmul.f32 %v6965_v59, %v6855_v27 }
0x3def   :  { %v3751_v48 = vpop.f32.mrf.mxu0 }
0x3df0   :  { %v3762_v31 = vmul.f32 1.442695, %v3751_v48  ;;  %v6970_v48 = vadd.f32 %v3634_v18, %v6925_v7 }
0x3df1   :  { %v5211_v12 = vpop.f32.mrf.mxu0 }
0x3df2   :  { %5498 = vpow2.f32 %v3762_v31 }
0x3df3   :  { %v3756_v58 = vpop.f32.mrf.mxu0 }
0x3df4   :  { %v3764_v51 = vmul.f32 1.442695, %v3756_v58 }
0x3df5   :  { %v5214_v24 = vpop.f32.mrf.mxu0 }
0x3df6   :  { %5500 = vpow2.f32 %v3764_v51 }
0x3df7   :  { %5502 = vpow2.f32 %v3760_v11 }
0x3dff   :  { %v5499_v53 = vpop.eup %5498 }
0x3e00   :  { %3773 = vperm.xlu1 %5308, %v5499_v53  }
0x3e03   :  { %v5501_v29 = vpop.eup %5500 }
0x3e04   :  { %3778 = vperm.xlu0 %5297, %v5501_v29   ;;  %5309 = vset.pattern.permute.xlu1 %v5599_v4  ;;  %v5503_v46 = vpop.eup %5502 }
0x3e08   :  { %3768 = vperm.xlu0 %5297, %v5503_v46  }
0x3e0c   :  { %3638 = vperm.xlu0 %5297, %v6970_v48  }
0x3e7b   :  { %v3774_v63 = vpop.permute.xlu1 %3773 }
0x3e7c   :  { %v3782_v58 = vmul.f32 %v3774_v63, %v6103_v60 }
0x3e7f   :  { %v3779_v31 = vpop.permute.xlu0 %3778 }
0x3e80   :  { %v3783_v12 = vmul.f32 %v3779_v31, %v6098_v57 }
0x3e82   :  { %5216 = vmatpush3.msk.msra.mxu1 %vm86_vm0, %v3783_v12 }
0x3e83   :  { %5217 = vmatprep.subr.mxu1 %v5594_v2  ;;  %v3769_v51 = vpop.permute.xlu0 %3768 }
0x3e84   :  { %v3781_v24 = vmul.f32 %v3769_v51, %v6109_v62  ;;  %5218 = vmatpush3.msra.mxu1 %v3782_v58 }
0x3e85   :  { %5219 = vmatprep.subr.mxu1 %v5594_v2 }
0x3e86   :  { %5220 = vmatpush3.msra.mxu1 %v3781_v24 }
0x3e87   :  { %5222 = vmatmul.mubr.msk.f32.vlgmr.msra.gmra.mxu1 %vm1575_vm6, %v6609_v56  ;;  %3884 = vmatprep.subr.mxu1 %v6616_v32 }
0x3e88   :  { %3885 = vmatpush1.msra.mxu1 %v6622_v43  ;;  %3932 = vmatprep.mubr.f32.mxu1 %v5594_v2 }
0x3e89   :  { %3886 = vmatprep.subr.mxu1 %v6629_v14 }
0x3e8a   :  { %3887 = vmatpush1.msra.mxu1 %v6635_v44 }
0x3e8b   :  { %3888 = vmatprep.subr.mxu1 %v6641_v15 }
0x3e8c   :  { %3889 = vmatpush1.msra.mxu1 %v6647_v50 }
0x3e8d   :  { %3890 = vmatprep.subr.mxu1 %v6653_v54 }
0x3e8e   :  { %3891 = vmatpush1.msra.mxu1 %v6659_v9 }
0x3e8f   :  { %3892 = vmatprep.subr.mxu1 %v6665_v1 }
0x3e90   :  { %3893 = vmatpush1.msra.mxu1 %v6671_v33 }
0x3e91   :  { %3894 = vmatprep.subr.mxu1 %v6677_v39 }
0x3e92   :  { %3895 = vmatpush1.msra.mxu1 %v6683_v5 }
0x3e93   :  { %3896 = vmatprep.subr.mxu1 %v6689_v3 }
0x3e94   :  { %3897 = vmatpush1.msra.mxu1 %v6695_v8 }
0x3e95   :  { %3898 = vmatprep.subr.mxu1 %v6701_v10 }
0x3e96   :  { %3899 = vmatpush1.msra.mxu1 %v6707_v6 }
0x3e97   :  { %5243 = vmatprep.subr.mxu1 %v5594_v2 }
0x3f47   :  { %v3853_v27 = vpop.f32.mrf.mxu1 }
0x3f48   :  { %5504 = vrcp.f32 %v3853_v27 }
0x3f49   :  { %v5223_v7 = vpop.f32.mrf.mxu1 }
0x3f55   :  { %v5505_v11 = vpop.eup %5504 }
0x3f56   :  { %3860 = vperm.xlu1 %5309, %v5505_v11  }
0x3f5a   :  { %5310 = vset.pattern.permute.xlu1 %v5598_v35 }
0x3fd1   :  { %v3861_v53 = vpop.permute.xlu1 %3860 }
0x3fd2   :  { %v3863_v29 = vmul.f32 %v3861_v53, %v3853_v27 }
0x3fd4   :  { %v3864_v46 = vsel %vm181_vm3, %v3863_v29, %v6911_v21 }
0x3fd5   :  { %4605 = vmatmul.mubr.msk.f32.vlgmr.msra.gmra.mxu1 %vm1688_vm7, %v3864_v46 }
0x3fd6   :  { %5244 = vmatpush3.msra.mxu1 %v6718_v13  ;;  %5251 = vmatprep.mubr.msk.f32.mxu1 %vm5595_vm2, %v5594_v2 }
0x3fd7   :  { %5245 = vmatprep.subr.mxu1 %v5594_v2 }
0x3fd8   :  { %5246 = vmatpush3.msra.mxu1 %v6727_v16  ;;  %v7018_v16 = vpop.permute.xlu0 %3638 }
0x3fd9   :  { %5247 = vmatprep.subr.mxu1 %v5594_v2 }
0x3fda   :  { %5248 = vmatpush3.msra.mxu1 %v6734_v20  ;;  %v3939_v20 = vmul.f32 %v6755_v55, %v7018_v16 }
0x3fdb   :  { %5249 = vmatprep.subr.mxu1 %v5594_v2 }
0x3fdc   :  { %5250 = vmatpush3.msra.mxu1 %v6741_v0 }
0x3fdd   :  { %5269 = vmatprep.subr.mxu1 %v5594_v2 }
0x4095   :  { %v3934_v35 = vpop.f32.mrf.mxu1 }
0x4096   :  { %v3935_v13 = vadd.f32 %v3934_v35, %v6244_v41 }
0x4097   :  { %v3936_v18 = vpop.f32.mrf.mxu1 }
0x4098   :  { %v3937_v63 = vadd.f32 %v3936_v18, %v6248_v42  ;;  %3942 = vrot.lane.b32.xlu1 %v3935_v13, %s5600_s30  ;;  %v3940_v0 = vadd.f32 %v3939_v20, %v3935_v13 }
0x409a   :  { %3963 = vrot.lane.b32.xlu0 %v3937_v63, %s5597_s24 }
0x409e   :  { %3953 = vrot.lane.b32.xlu0 %v3937_v63, %s5600_s30 }
0x410a   :  { %v3943_v31 = vpop.permute.xlu1 %3942 }
0x410b   :  { %v3945_v12 = vadd.f32 %v3943_v31, %v3940_v0 }
0x410c   :  { %v3964_v7 = vpop.permute.xlu0 %3963 }
0x410d   :  { %v4606_v58 = vmul.f32 -1.442695, %v3945_v12 }
0x410f   :  { %5506 = vpow2.f32 %v4606_v58 }
0x4110   :  { %v3954_v13 = vpop.permute.xlu0 %3953 }
0x4111   :  { %v3956_v18 = vadd.f32 %v3954_v13, %v3940_v0 }
0x4113   :  { %v4607_v63 = vmul.f32 -1.442695, %v3956_v18 }
0x411c   :  { %v5507_v51 = vpop.eup %5506 }
0x411d   :  { %v3949_v24 = vadd.f32 1.0, %v5507_v51 }
0x411f   :  { %5508 = vrcp.f32 %v3949_v24 }
0x412c   :  { %v5509_v27 = vpop.eup %5508 }
0x412d   :  { %v3966_v11 = vmul.f32 %v5509_v27, %v3964_v7 }
0x412f   :  { %3968 = vrot.lane.b32.xlu1 %v3966_v11, %s5596_s21 }
0x41a1   :  { %v3969_v53 = vpop.permute.xlu1 %3968 }
0x41a2   :  { %v3971_v46 = vadd.f32 %v3969_v53, %v3940_v0 }
0x41a4   :  { %5510 = vtanh.f32 %v3971_v46 }
0x41a5   :  { %5512 = vpow2.f32 %v4607_v63 }
0x41b1   :  { %v5511_v35 = vpop.eup %5510 }
0x41b2   :  { %3975 = vrot.lane.b32.xlu1 %v5511_v35, %s5597_s24  ;;  %v5513_v20 = vpop.eup %5512 }
0x41b3   :  { %v3960_v31 = vadd.f32 1.0, %v5513_v20 }
0x41b5   :  { %5514 = vrcp.f32 %v3960_v31 }
0x41b6   :  { %3986 = vrot.lane.b32.xlu1 %v3863_v29, %s5600_s30 }
0x41c2   :  { %v5515_v12 = vpop.eup %5514 }
0x41c3   :  { %v3973_v58 = vsub.f32 1.0, %v5515_v12  ;;  %v3979_v24 = vmul.f32 %v5515_v12, %v6911_v21 }
0x4224   :  { %v3976_v51 = vpop.permute.xlu1 %3975 }
0x4225   :  { %v3978_v27 = vmul.f32 %v3976_v51, %v3973_v58 }
0x4227   :  { %v7026_v7 = vadd.f32 %v3979_v24, %v3978_v27 }
0x4228   :  { %v3987_v11 = vpop.permute.xlu1 %3986 }
0x4229   :  { %3982 = vrot.lane.b32.xlu0 %v7026_v7, %s5597_s24 }
0x429b   :  { %v3983_v29 = vpop.permute.xlu0 %3982 }
0x429c   :  { %v3989_v0 = vsel %vm181_vm3, %v3983_v29, %v3987_v11 }
0x429d   :  { %5241 = vmatmul.mubr.msk.f32.vlgmr.msra.gmra.mxu0 %vm1688_vm7, %v3989_v0 }
0x429e   :  { %5266 = vmatprep.mubr.msk.f32.mxu0 %vm5595_vm2, %v5594_v2 }
0x435d   :  { %v4059_v53 = vpop.f32.mrf.mxu0 }
0x435e   :  { %v4060_v46 = vadd.f32 %v6922_v38, %v4059_v53 }
0x435f   :  { %v5242_v35 = vpop.f32.mrf.mxu0 }
0x4360   :  { %v4077_v21 = vrot.slane %v4060_v46, 6  ;;  %v4079_v13 = vrot.slane %v4060_v46, 4  ;;  %v4081_v63 = vrot.slane %v4060_v46, 2 }
0x4362   :  { %v4083_v18 = vsel %vm1226_vm4, %v4060_v46, %v4077_v21 }
0x4363   :  { %4090 = vrot.lane.b32.xlu1 %v4083_v18, %s5601_s20  ;;  %v4084_v20 = vsel %vm86_vm0, %v4083_v18, %v4079_v13 }
0x4364   :  { %v4085_v31 = vsel %vm1229_vm5, %v4084_v20, %v4081_v63 }
0x4365   :  { %4088 = vrot.lane.b32.xlu0 %v4085_v31, %s5601_s20 }
0x43d5   :  { %v4091_v24 = vpop.permute.xlu1 %4090 }
0x43d6   :  { %v4096_v27 = vadd.f32 %v4091_v24, %v6075_v37 }
0x43d7   :  { %v4089_v12 = vpop.permute.xlu0 %4088 }
0x43d8   :  { %v4094_v58 = vadd.f32 %v4089_v12, %v6036_v17  ;;  %v4095_v51 = vadd.f32 %v4089_v12, %v6069_v28 }
0x43da   :  { %5516 = vtanh.f32 %v4094_v58 }
0x43db   :  { %5518 = vtanh.f32 %v4095_v51 }
0x43dc   :  { %5520 = vtanh.f32 %v4096_v27 }
0x43e7   :  { %v5517_v11 = vpop.eup %5516 }
0x43e8   :  { %5252 = vmatmul.mubr.msk.f32.vlgmr.msra.gmra.mxu1 %vm181_vm3, %v5517_v11  ;;  %v5519_v29 = vpop.eup %5518 }
0x43e9   :  { %5254 = vmatprep.mubr.msk.f32.mxu1 %vm5595_vm2, %v5594_v2  ;;  %5270 = vmatpush3.msra.mxu1 %v6792_v25  ;;  %v5521_v17 = vpop.eup %5520 }
0x43ea   :  { %5271 = vmatprep.subr.mxu1 %v5594_v2 }
0x43eb   :  { %5272 = vmatpush3.msra.mxu1 %v6799_v30 }
0x43ec   :  { %5255 = vmatmul.mubr.msk.f32.gmra.mxu1 %vm181_vm3, %v5519_v29  ;;  %5273 = vmatprep.subr.mxu1 %v5594_v2 }
0x43ed   :  { %5257 = vmatprep.mubr.msk.f32.mxu1 %vm5595_vm2, %v5594_v2  ;;  %5274 = vmatpush3.msra.mxu1 %v6809_v26 }
0x43ee   :  { %5275 = vmatprep.subr.mxu1 %v5594_v2 }
0x43ef   :  { %5276 = vmatpush3.msra.mxu1 %v6816_v47 }
0x43f0   :  { %5258 = vmatmul.mubr.msk.f32.gmra.mxu1 %vm181_vm3, %v5521_v17  ;;  %5277 = vmatprep.subr.mxu1 %v5594_v2 }
0x43f1   :  { %5278 = vmatpush3.msra.mxu1 %v6824_v22  ;;  %5285 = vmatprep.mubr.msk.f32.mxu1 %vm5595_vm2, %v5594_v2 }
0x43f2   :  { %5279 = vmatprep.subr.mxu1 %v5594_v2 }
0x43f3   :  { %5280 = vmatpush3.msra.mxu1 %v6833_v34 }
0x43f4   :  { %5281 = vmatprep.subr.mxu1 %v5594_v2 }
0x43f5   :  { %5282 = vmatpush3.msra.mxu1 %v6840_v49 }
0x43f6   :  { %5283 = vmatprep.subr.mxu1 %v5594_v2 }
0x43f7   :  { %5284 = vmatpush3.msra.mxu1 %v6847_v45  ;;  %v4063_v45 = vmul.f32 %v6965_v59, %v6970_v48 }
0x43f9   :  { %v7070_v21 = vadd.f32 %v4063_v45, %v4060_v46 }
0x44a8   :  { %v4175_v28 = vpop.f32.mrf.mxu1 }
0x44a9   :  { %v4189_v53 = vmul.f32 1.442695, %v4175_v28 }
0x44aa   :  { %v5253_v37 = vpop.f32.mrf.mxu1 }
0x44ac   :  { %v4180_v25 = vpop.f32.mrf.mxu1 }
0x44ad   :  { %v4191_v30 = vmul.f32 1.442695, %v4180_v25 }
0x44ae   :  { %v5256_v26 = vpop.f32.mrf.mxu1 }
0x44af   :  { %5522 = vpow2.f32 %v4191_v30 }
0x44b0   :  { %v4185_v47 = vpop.f32.mrf.mxu1 }
0x44b1   :  { %v4193_v22 = vmul.f32 1.442695, %v4185_v47 }
0x44b2   :  { %v5259_v0 = vpop.f32.mrf.mxu1 }
0x44b3   :  { %5524 = vpow2.f32 %v4193_v22  ;;  %v4492_v22 = vmul.f32 %v6965_v59, %v7070_v21 }
0x44b4   :  { %5526 = vpow2.f32 %v4189_v53 }
0x44bc   :  { %v5523_v34 = vpop.eup %5522 }
0x44bd   :  { %4202 = vperm.xlu1 %5310, %v5523_v34   ;;  %v2356_v34 = vsub.s32 2, %v6237_v36 }
0x44c0   :  { %v5525_v35 = vpop.eup %5524 }
0x44c1   :  { %4207 = vperm.xlu0 %5297, %v5525_v35   ;;  %5311 = vset.pattern.permute.xlu1 %v5599_v4  ;;  %v5527_v49 = vpop.eup %5526 }
0x44c5   :  { %4197 = vperm.xlu0 %5297, %v5527_v49   ;;  %v2785_v49 = vsub.s32 3, %v6237_v36 }
0x44c9   :  { %4067 = vperm.xlu0 %5297, %v7070_v21   ;;  %v3643_v21 = vsub.s32 5, %v6237_v36 }
0x4538   :  { %v4203_v13 = vpop.permute.xlu1 %4202 }
0x4539   :  { %v4211_v20 = vmul.f32 %v4203_v13, %v6103_v60 }
0x453c   :  { %v4208_v18 = vpop.permute.xlu0 %4207 }
0x453d   :  { %v4212_v63 = vmul.f32 %v4208_v18, %v6098_v57  ;;  %v4549_v18 = vld [vmem:[%s7160_s17] ss:$0 sm:$0xff] }
0x453f   :  { %5261 = vmatpush3.msk.msra.mxu0 %vm86_vm0, %v4212_v63 }
0x4540   :  { %5262 = vmatprep.subr.mxu0 %v5594_v2  ;;  %v4198_v4 = vpop.permute.xlu0 %4197 }
0x4541   :  { %v4210_v31 = vmul.f32 %v4198_v4, %v6109_v62  ;;  %5263 = vmatpush3.msra.mxu0 %v4211_v20  ;;  %v4072_v4 = vsub.s32 6, %v6237_v36 }
0x4542   :  { %5264 = vmatprep.subr.mxu0 %v5594_v2 }
0x4543   :  { %5265 = vmatpush3.msra.mxu0 %v4210_v31 }
0x4544   :  { %5267 = vmatmul.mubr.msk.f32.vlgmr.msra.gmra.mxu0 %vm1575_vm6, %v6609_v56  ;;  %4313 = vmatprep.subr.mxu0 %v6616_v32 }
0x4545   :  { %4314 = vmatpush1.msra.mxu0 %v6622_v43  ;;  %4361 = vmatprep.mubr.f32.mxu0 %v5594_v2 }
0x4546   :  { %4315 = vmatprep.subr.mxu0 %v6629_v14 }
0x4547   :  { %4316 = vmatpush1.msra.mxu0 %v6635_v44 }
0x4548   :  { %4317 = vmatprep.subr.mxu0 %v6641_v15 }
0x4549   :  { %4318 = vmatpush1.msra.mxu0 %v6647_v50  ;;  %v7106_v50 = vpop.permute.xlu0 %4067 }
0x454a   :  { %4319 = vmatprep.subr.mxu0 %v6653_v54  ;;  %v4368_v54 = vmul.f32 %v6755_v55, %v7106_v50 }
0x454b   :  { %4320 = vmatpush1.msra.mxu0 %v6659_v9 }
0x454c   :  { %4321 = vmatprep.subr.mxu0 %v6665_v1 }
0x454d   :  { %4322 = vmatpush1.msra.mxu0 %v6671_v33 }
0x454e   :  { %4323 = vmatprep.subr.mxu0 %v6677_v39 }
0x454f   :  { %4324 = vmatpush1.msra.mxu0 %v6683_v5 }
0x4550   :  { %4325 = vmatprep.subr.mxu0 %v6689_v3 }
0x4551   :  { %4326 = vmatpush1.msra.mxu0 %v6695_v8 }
0x4552   :  { %4327 = vmatprep.subr.mxu0 %v6701_v10 }
0x4553   :  { %4328 = vmatpush1.msra.mxu0 %v6707_v6 }
0x4604   :  { %v4282_v2 = vpop.f32.mrf.mxu0 }
0x4605   :  { %5528 = vrcp.f32 %v4282_v2 }
0x4606   :  { %v5268_v57 = vpop.f32.mrf.mxu0 }
0x4612   :  { %v5529_v60 = vpop.eup %5528 }
0x4613   :  { %4289 = vperm.xlu1 %5311, %v5529_v60  }
0x468e   :  { %v4290_v62 = vpop.permute.xlu1 %4289 }
0x468f   :  { %v4292_v56 = vmul.f32 %v4290_v62, %v4282_v2  ;;  %v4501_v62 = vsub.s32 7, %v6237_v36 }
0x4691   :  { %v4293_v32 = vsel %vm181_vm3, %v4292_v56, %v7026_v7 }
0x4692   :  { %4614 = vmatmul.mubr.msk.f32.vlgmr.msra.gmra.mxu0 %vm1688_vm7, %v4293_v32 }
0x4752   :  { %v4363_v43 = vpop.f32.mrf.mxu0 }
0x4753   :  { %v4364_v14 = vadd.f32 %v4363_v43, %v6244_v41 }
0x4754   :  { %v4365_v44 = vpop.f32.mrf.mxu0 }
0x4755   :  { %v4366_v15 = vadd.f32 %v4365_v44, %v6248_v42  ;;  %4371 = vrot.lane.b32.xlu1 %v4364_v14, %s5600_s30  ;;  %v4369_v9 = vadd.f32 %v4368_v54, %v4364_v14 }
0x4757   :  { %4392 = vrot.lane.b32.xlu0 %v4366_v15, %s5597_s24 }
0x475b   :  { %4382 = vrot.lane.b32.xlu0 %v4366_v15, %s5600_s30 }
0x47c7   :  { %v4372_v1 = vpop.permute.xlu1 %4371 }
0x47c8   :  { %v4374_v33 = vadd.f32 %v4372_v1, %v4369_v9 }
0x47c9   :  { %v4393_v3 = vpop.permute.xlu0 %4392 }
0x47ca   :  { %v4615_v39 = vmul.f32 -1.442695, %v4374_v33 }
0x47cc   :  { %5530 = vpow2.f32 %v4615_v39 }
0x47cd   :  { %v4383_v55 = vpop.permute.xlu0 %4382 }
0x47ce   :  { %v4385_v46 = vadd.f32 %v4383_v55, %v4369_v9 }
0x47d0   :  { %v4616_v12 = vmul.f32 -1.442695, %v4385_v46 }
0x47d9   :  { %v5531_v41 = vpop.eup %5530 }
0x47da   :  { %v4378_v5 = vadd.f32 1.0, %v5531_v41 }
0x47dc   :  { %5532 = vrcp.f32 %v4378_v5 }
0x47e9   :  { %v5533_v42 = vpop.eup %5532 }
0x47ea   :  { %v4395_v8 = vmul.f32 %v5533_v42, %v4393_v3 }
0x47ec   :  { %4397 = vrot.lane.b32.xlu1 %v4395_v8, %s5596_s21 }
0x485e   :  { %v4398_v10 = vpop.permute.xlu1 %4397 }
0x485f   :  { %v4400_v6 = vadd.f32 %v4398_v10, %v4369_v9 }
0x4861   :  { %5534 = vtanh.f32 %v4400_v6 }
0x4862   :  { %5536 = vpow2.f32 %v4616_v12 }
0x486e   :  { %v5535_v48 = vpop.eup %5534 }
0x486f   :  { %4404 = vrot.lane.b32.xlu1 %v5535_v48, %s5597_s24  ;;  %v5537_v58 = vpop.eup %5536 }
0x4870   :  { %v4389_v51 = vadd.f32 1.0, %v5537_v58 }
0x4872   :  { %5538 = vrcp.f32 %v4389_v51 }
0x4873   :  { %4415 = vrot.lane.b32.xlu1 %v4292_v56, %s5600_s30 }
0x487f   :  { %v5539_v24 = vpop.eup %5538 }
0x4880   :  { %v4402_v27 = vsub.f32 1.0, %v5539_v24  ;;  %v4408_v29 = vmul.f32 %v5539_v24, %v7026_v7  ;;  %v1345_v7 = vld [vmem:[%s7159_s16] sm:$0xff]  ;;  %s5602_s16 = smov [#allocation3]  }
0x4881   :  { %v1928_v35 = vrot.slane %v1345_v7, %v1684_v40  ;;  %v2357_v45 = vrot.slane %v1345_v7, %v2356_v34  ;;  %v2786_v59 = vrot.slane %v1345_v7, %v2785_v49  ;;  %v3644_v2 = vrot.slane %v1345_v7, %v3643_v21  ;;  %s4513_s17 = sshll.u32 %s5602_s16, 4  ;;  %s4514_s17 = int_to_ptr.vmem [resolvable:$true] %s4513_s17 }
0x4882   :  { %s5572_s20 = scalar_lea.vmem %s4514_s17, 32  ;;  %p5577_p1 = scmp.lt.s32.totalorder %s4514_s17, %s4514_s17 }
0x4883   :  { %v1929_v13 = vmul.f32 %v1928_v35, %v6429_v52  ;;  %v2358_v63 = vmul.f32 %v2357_v45, %v6537_v19  ;;  %v2787_v31 = vmul.f32 %v2786_v59, %v6750_v23  ;;  %v4073_v52 = vrot.slane %v1345_v7, %v4072_v4  ;;  %p5573_p0 = scmp.ne.s32.totalorder %s4514_s17, %s5572_s20  ;;  %p5578_p2 = scmp.lt.s32.totalorder %s5572_s20, %s5572_s20 }
0x4884   :  { %v3645_v32 = vmul.f32 %v3644_v2, %v7018_v16  ;;  %v4502_v19 = vrot.slane %v1345_v7, %v4501_v62 }
0x4885   :  { %v1930_v40 = vadd.f32 %v4549_v18, %v1929_v13  ;;  %v4074_v14 = vmul.f32 %v4073_v52, %v7106_v50  ;;  %p5579_p3 = por %p5578_p2, %p5577_p1 }
0x4887   :  { %v2359_v57 = vadd.f32 %v2358_v63, %v1930_v40  ;;  %p5580_p4 = pnand %p5579_p3, %p5573_p0 }
0x4889   :  { %v2788_v56 = vadd.f32 %v2787_v31, %v2359_v57 }
0x48e1   :  { %v4405_v11 = vpop.permute.xlu1 %4404 }
0x48e2   :  { %v4407_v17 = vmul.f32 %v4405_v11, %v4402_v27 }
0x48e4   :  { %v4409_v28 = vadd.f32 %v4408_v29, %v4407_v17 }
0x48e5   :  { %v4416_v37 = vpop.permute.xlu1 %4415 }
0x48e6   :  { %4411 = vrot.lane.b32.xlu0 %v4409_v28, %s5597_s24 }
0x4958   :  { %v4412_v25 = vpop.permute.xlu0 %4411 }
0x4959   :  { %v4418_v30 = vsel %vm181_vm3, %v4412_v25, %v4416_v37 }
0x495a   :  { %5286 = vmatmul.mubr.msk.f32.vlgmr.msra.gmra.mxu1 %vm1688_vm7, %v4418_v30 }
0x4a1a   :  { %v4488_v26 = vpop.f32.mrf.mxu1 }
0x4a1b   :  { %v4489_v47 = vadd.f32 %v6922_v38, %v4488_v26  ;;  %v3214_v38 = vsub.s32 4, %v6237_v36 }
0x4a1c   :  { %v5287_v0 = vpop.f32.mrf.mxu1 }
0x4a1d   :  { %v4493_v53 = vadd.f32 %v4492_v22, %v4489_v47  ;;  %v3215_v20 = vrot.slane %v1345_v7, %v3214_v38 }
0x4a1f   :  { %4496 = vperm.xlu0 %5297, %v4493_v53   ;;  %v3216_v60 = vmul.f32 %v3215_v20, %v6903_v61 }
0x4a21   :  { %v3217_v43 = vadd.f32 %v3216_v60, %v2788_v56 }
0x4a23   :  { %v3646_v44 = vadd.f32 %v3645_v32, %v3217_v43 }
0x4a25   :  { %v4075_v54 = vadd.f32 %v4074_v14, %v3646_v44 }
0x4a9a   :  { %v4497_v15 = vpop.permute.xlu0 %4496 }
0x4a9b   :  { %v4503_v23 = vmul.f32 %v4502_v19, %v4497_v15 }
0x4a9d   :  { %v4504_v9 = vadd.f32 %v4503_v23, %v4075_v54 }
0x4a9f   :  { %4506 = vst.msk [vmem:[#allocation3] sm:$0x3] %vm4505_vm8, %v4504_v9 }
0x4aa0   :  { %5583 = shalt.err (!%p5580_p4)
}
0x4aa1   :  { %4516 = dma.vmem_to_hbm [thread:$0]  %s4514_s17, 32, %s7162_s19, [#allocation4]  }
0x4aa2   :  { %5592 = dma.done.wait [#allocation4], 32  }
0x4aa3   :  { %5593 = vsyncadd [#allocation4], 4294967264 }
0x4aa4   :  { %4520 = vsyncpa [#allocation4], 1 }

</bundles_post_ra>
